<compile_context>
chip_gen: v7x
topology: tpu7x:2x2x1
jax: 0.10.0
libtpu: 0.0.40
codegen_flags: <defaults>
</compile_context>

<pallas_src>
import functools

import jax
import jax.numpy as jnp
from jax import lax
from jax.experimental import pallas as pl
from jax.experimental.pallas import tpu as pltpu

# ---------------- model hyper-parameters --------------------------------------------
NSAMPLES = 8
NTNF = 103                      # fixed by the module
NHIDDENS = [64, 64]
NLATENT = 32
LEAKY_SLOPE = 0.01              # nn.LeakyReLU default
BN_EPS = 1e-5                   # nn.BatchNorm1d default

PAD = 128                       # lane-padded feature width for every activation
N_LAYERS = 2 * len(NHIDDENS) + 2   # enc linears + fused head + dec linears + output
IN_W = 2 * PAD                  # input slab:  [x_pad | eps placed at lanes 160:192]
OUT_W = 2 * PAD                 # output slab: [recon_pad | (mu|logsigma)_pad]
EPS_OFF = PAD + NLATENT         # lane offset of eps within the input slab

BATCH = 512
# 2 grid steps for BATCH=512: keeps the batch axis "parallel"-shardable across the
# two TensorCores on v7x while amortizing per-step overhead on v5e/v6e.
BLOCK_B = 256


# ---------------- kernel -------------------------------------------------------------
def _vae_kernel(in_ref, w_ref, b_ref, out_ref, *, n_enc, n_dec):
    x = in_ref[:, :PAD]                  # (Bb, 128) bf16: [depths | tnf | 0-pad]
    eps = in_ref[:, PAD:]                # (Bb, 128) bf16: eps in lanes [32, 64)
    biases = b_ref[...]                  # (8, 128) f32

    def lin(h, i):
        # bf16 operands on the MXU, f32 accumulation; bias add stays f32.
        return jnp.dot(h.astype(jnp.bfloat16), w_ref[i],
                       preferred_element_type=jnp.float32) + biases[i:i + 1, :]

    def lrelu(h):
        return jnp.where(h >= 0.0, h, LEAKY_SLOPE * h)

    # (1, PAD) lane masks; jnp.where broadcasts them over the batch rows.
    lane = lax.broadcasted_iota(jnp.int32, (1, PAD), 1)
    is_ls = (lane >= NLATENT) & (lane < 2 * NLATENT)
    is_depth = lane < NSAMPLES

    # ---- encoder (dropout = identity in eval; each BN folded into the next linear) --
    h = x
    li = 0
    for _ in range(n_enc):
        h = lrelu(lin(h, li))
        li += 1

    # ---- fused mu | logsigma head: lanes [0,32)=mu, [32,64)=raw logsigma ------------
    head = lin(h, li)
    li += 1
    softplus = jnp.maximum(head, 0.0) + jnp.log1p(jnp.exp(-jnp.abs(head)))
    head_out = jnp.where(is_ls, softplus, head)      # [mu | softplus(logsigma) | 0]

    # ---- reparameterize without lane shifts -----------------------------------------
    # lanes [0,32) = mu, lanes [32,64) = eps * exp(logsigma/2).  The decoder's first
    # weight has its NLATENT input rows duplicated, so the next matmul computes
    # exactly (mu + eps*exp(logsigma/2)) @ W.
    latent = jnp.where(is_ls, eps.astype(jnp.float32) * jnp.exp(head_out * 0.5),
                       head_out)

    # ---- decoder ---------------------------------------------------------------------
    h = latent
    for _ in range(n_dec):
        h = lrelu(lin(h, li))
        li += 1
    recon = lin(h, li)                   # lanes [0, NSAMPLES+NTNF) valid, rest 0

    # ---- softmax over the first NSAMPLES lanes, in place (iota mask, no slicing) ----
    masked = jnp.where(is_depth, recon, -1e30)
    m = jnp.max(masked, axis=-1, keepdims=True)
    e = jnp.exp(masked - m)
    s = jnp.sum(e, axis=-1, keepdims=True)
    r = pl.reciprocal(s, approx=True)
    r = r * (2.0 - s * r)                # one Newton step -> ~f32-exact, EUP-cheap
    recon_out = jnp.where(is_depth, e * r, recon)

    # ---- one lane-dense output slab: two aligned 128-lane stores ---------------------
    out_ref[:, :PAD] = recon_out
    out_ref[:, PAD:] = head_out


# ---------------- wrapper ------------------------------------------------------------
@functools.partial(jax.jit, static_argnames=("block_b",))
def vae_forward(depths, tnf, eps, packed_w, packed_b, block_b=BLOCK_B):
    b = depths.shape[0]

    # One lane-dense (b, 256) bf16 input slab, built with a single concatenate:
    #   lanes [0,8)=depths, [8,111)=tnf, [111,160)=0, [160,192)=eps, [192,256)=0.
    z_mid = jnp.zeros((b, EPS_OFF - (NSAMPLES + NTNF)), jnp.float32)
    z_end = jnp.zeros((b, IN_W - EPS_OFF - NLATENT), jnp.float32)
    xin = jnp.concatenate([depths, tnf, z_mid, eps, z_end],
                          axis=1).astype(jnp.bfloat16)

    bp = pl.cdiv(b, block_b) * block_b
    if bp != b:
        xin = jnp.pad(xin, ((0, bp - b), (0, 0)))

    kernel = functools.partial(_vae_kernel,
                               n_enc=len(NHIDDENS), n_dec=len(NHIDDENS))

    cost = pl.CostEstimate(
        flops=2 * N_LAYERS * bp * PAD * PAD,
        transcendentals=5 * bp * PAD,
        bytes_accessed=(bp * IN_W * 2                 # bf16 input slab
                        + N_LAYERS * PAD * PAD * 2    # bf16 weight slab
                        + 8 * PAD * 4                 # f32 bias slab
                        + bp * OUT_W * 4),            # f32 output slab
    )

    out = pl.pallas_call(
        kernel,
        out_shape=jax.ShapeDtypeStruct((bp, OUT_W), jnp.float32),
        grid_spec=pltpu.PrefetchScalarGridSpec(
            num_scalar_prefetch=0,
            grid=(bp // block_b,),
            in_specs=[
                pl.BlockSpec((block_b, IN_W), lambda i: (i, 0)),          # x | eps
                # parameter slabs: constant index_map -> DMA'd once, VMEM-resident
                pl.BlockSpec((N_LAYERS, PAD, PAD), lambda i: (0, 0, 0)),  # weights bf16
                pl.BlockSpec((8, PAD), lambda i: (0, 0)),                 # biases f32
            ],
            out_specs=pl.BlockSpec((block_b, OUT_W), lambda i: (i, 0)),
        ),
        compiler_params=pltpu.CompilerParams(
            dimension_semantics=("parallel",)),
        cost_estimate=cost,
    )(xin, packed_w, packed_b)

    out = out[:b]
    depths_out = out[:, :NSAMPLES]
    tnf_out = out[:, NSAMPLES:NSAMPLES + NTNF]
    mu = out[:, PAD:PAD + NLATENT]
    logsigma = out[:, PAD + NLATENT:PAD + 2 * NLATENT]
    return depths_out, tnf_out, mu, logsigma


# ---------------- deterministic parameter construction --------------------------------
def _linear(key, nin, nout):
    k1, k2 = jax.random.split(key)
    bound = 1.0 / float(nin) ** 0.5      # PyTorch Linear default init range
    w = jax.random.uniform(k1, (nin, nout), jnp.float32, -bound, bound)
    b = jax.random.uniform(k2, (nout,), jnp.float32, -bound, bound)
    return w, b


def _bn(key, n):
    k1, k2, k3, k4 = jax.random.split(key, 4)
    gamma = jax.random.uniform(k1, (n,), jnp.float32, 0.5, 1.5)
    beta = jax.random.normal(k2, (n,), jnp.float32) * 0.1
    rm = jax.random.normal(k3, (n,), jnp.float32) * 0.1
    rv = jax.random.uniform(k4, (n,), jnp.float32, 0.5, 1.5)
    return gamma, beta, rm, rv


def build_raw_params(key):
    keys = iter(jax.random.split(key, 16))
    enc = []
    for nin, nout in zip([NSAMPLES + NTNF] + NHIDDENS, NHIDDENS):
        enc.append(_linear(next(keys), nin, nout) + _bn(next(keys), nout))
    mu = _linear(next(keys), NHIDDENS[-1], NLATENT)
    ls = _linear(next(keys), NHIDDENS[-1], NLATENT)
    dec = []
    for nin, nout in zip([NLATENT] + NHIDDENS[::-1], NHIDDENS[::-1]):
        dec.append(_linear(next(keys), nin, nout) + _bn(next(keys), nout))
    out = _linear(next(keys), NHIDDENS[0], NSAMPLES + NTNF)
    return dict(enc=enc, mu=mu, ls=ls, dec=dec, out=out)


def pack_params(p):
    """Fold eval-mode BatchNorms into the following Linear, fuse the mu/logsigma heads,
    zero-pad to 128 lanes, and pack into one bf16 weight slab + one f32 bias slab."""

    def bn_affine(gamma, beta, rm, rv):
        scale = gamma / jnp.sqrt(rv + BN_EPS)
        return scale, beta - rm * scale

    def fold(scale, shift, w, b):
        # (x*scale + shift) @ w + b  ==  x @ (scale[:,None]*w) + (shift @ w + b)
        return scale[:, None] * w, shift @ w + b

    layers = []            # (w, b) in kernel layer order, already BN-folded
    pending = None         # affine of the previous layer's BN, folded into the next

    for (w, b, g, bt, rm, rv) in p["enc"]:
        if pending is not None:
            w, b = fold(*pending, w, b)
        layers.append((w, b))
        pending = bn_affine(g, bt, rm, rv)

    # fused mu | logsigma head (consumes the last encoder BN)
    wmu, bmu = p["mu"]
    wls, bls = p["ls"]
    wh = jnp.concatenate([wmu, wls], axis=1)
    bh = jnp.concatenate([bmu, bls])
    wh, bh = fold(*pending, wh, bh)
    layers.append((wh, bh))
    pending = None

    first_dec = True
    for (w, b, g, bt, rm, rv) in p["dec"]:
        if first_dec:
            # Duplicate the NLATENT input rows: the kernel feeds this layer
            # [mu | eps*exp(logsigma/2)] instead of (mu + eps*exp(logsigma/2)).
            w = jnp.concatenate([w, w], axis=0)
            first_dec = False
        if pending is not None:
            w, b = fold(*pending, w, b)
        layers.append((w, b))
        pending = bn_affine(g, bt, rm, rv)

    wo, bo = p["out"]
    wo, bo = fold(*pending, wo, bo)
    layers.append((wo, bo))

    assert len(layers) == N_LAYERS
    w_slab = jnp.zeros((N_LAYERS, PAD, PAD), jnp.float32)
    b_slab = jnp.zeros((8, PAD), jnp.float32)
    for i, (w, b) in enumerate(layers):
        nin, nout = w.shape
        w_slab = w_slab.at[i, :nin, :nout].set(w)
        b_slab = b_slab.at[i, :nout].set(b)
    return w_slab.astype(jnp.bfloat16), b_slab


# ---------------- main ---------------------------------------------------------------
if __name__ == "__main__":
    key = jax.random.PRNGKey(0)
    kd, kt, ke, kp = jax.random.split(key, 4)

    depths_in = jax.nn.softmax(
        jax.random.normal(kd, (BATCH, NSAMPLES), jnp.float32), axis=1)
    tnf_in = jax.random.normal(kt, (BATCH, NTNF), jnp.float32) * 0.1
    eps = jax.random.normal(ke, (BATCH, NLATENT), jnp.float32)

    packed_w, packed_b = pack_params(build_raw_params(kp))

    outs = vae_forward(depths_in, tnf_in, eps, packed_w, packed_b)
    outs = jax.block_until_ready(outs)
    depths_out, tnf_out, mu, logsigma = outs

    assert depths_out.shape == (BATCH, NSAMPLES)
    assert tnf_out.shape == (BATCH, NTNF)
    assert mu.shape == (BATCH, NLATENT)
    assert logsigma.shape == (BATCH, NLATENT)
    for o in outs:
        assert bool(jnp.all(jnp.isfinite(o)))
    # softplus output must be non-negative
    assert bool(jnp.all(logsigma >= 0.0))
    # depths_out rows must sum to 1 (softmax over samples)
    assert bool(jnp.allclose(jnp.sum(depths_out, axis=1), 1.0, atol=1e-3))

    print("KERNEL_OK")
</pallas_src>

<mosaic_0001>
module attributes {stable_mosaic.version = 11 : i64} {
  func.func @_vae_kernel(%arg0: i32, %arg1: memref<256x256xbf16, #tpu.memory_space<vmem>>, %arg2: memref<6x128x128xbf16, #tpu.memory_space<vmem>>, %arg3: memref<8x128xf32, #tpu.memory_space<vmem>>, %arg4: memref<256x256xf32, #tpu.memory_space<vmem>>) attributes {dimension_semantics = [#tpu.dimension_semantics<parallel>], iteration_bounds = array<i64: 2>, scalar_prefetch = 0 : i64, scratch_operands = 0 : i64, tpu.core_type = #tpu.core_type<tc>, window_params = [{transform_indices = @transform_0, window_bounds = array<i64: 256, 256>}, {pipeline_mode = #tpu.pipeline_mode<synchronous>, transform_indices = @transform_1, window_bounds = array<i64: 6, 128, 128>}, {pipeline_mode = #tpu.pipeline_mode<synchronous>, transform_indices = @transform_2, window_bounds = array<i64: 8, 128>}, {transform_indices = @transform_3, window_bounds = array<i64: 256, 256>}]} {
    %c0 = arith.constant 0 : index
    %c0_0 = arith.constant 0 : index
    %0 = vector.load %arg1[%c0, %c0_0] : memref<256x256xbf16, #tpu.memory_space<vmem>>, vector<256x128xbf16>
    %c0_1 = arith.constant 0 : index
    %c128 = arith.constant 128 : index
    %1 = vector.load %arg1[%c0_1, %c128] : memref<256x256xbf16, #tpu.memory_space<vmem>>, vector<256x128xbf16>
    %c0_2 = arith.constant 0 : index
    %c0_3 = arith.constant 0 : index
    %2 = vector.load %arg3[%c0_2, %c0_3] : memref<8x128xf32, #tpu.memory_space<vmem>>, vector<8x128xf32>
    %3 = tpu.iota {dimensions = array<i32: 1>} : vector<1x128xi32>
    %c32_i32 = arith.constant 32 : i32
    %4 = vector.broadcast %c32_i32 : i32 to vector<1x128xi32>
    %5 = arith.cmpi sge, %3, %4 : vector<1x128xi32>
    %c64_i32 = arith.constant 64 : i32
    %6 = vector.broadcast %c64_i32 : i32 to vector<1x128xi32>
    %7 = arith.cmpi slt, %3, %6 : vector<1x128xi32>
    %8 = arith.andi %5, %7 : vector<1x128xi1>
    %c8_i32 = arith.constant 8 : i32
    %9 = vector.broadcast %c8_i32 : i32 to vector<1x128xi32>
    %10 = arith.cmpi slt, %3, %9 : vector<1x128xi32>
    %c0_4 = arith.constant 0 : index
    %c0_5 = arith.constant 0 : index
    %c0_6 = arith.constant 0 : index
    %11 = vector.load %arg2[%c0_4, %c0_5, %c0_6] : memref<6x128x128xbf16, #tpu.memory_space<vmem>>, vector<1x128x128xbf16>
    %12 = vector.shape_cast %11 : vector<1x128x128xbf16> to vector<128x128xbf16>
    %cst = arith.constant dense<0.000000e+00> : vector<256x128xf32>
    %13 = tpu.matmul %0, %12, %cst {dimension_numbers = #tpu.dot_dimension_numbers<[1], [0], [0], [1], [0, 0, 1, 1], [], []>} : vector<256x128xbf16>, vector<128x128xbf16>, vector<256x128xf32> -> vector<256x128xf32>
    %14 = vector.extract_strided_slice %2 {offsets = [0, 0], sizes = [1, 128], strides = [1, 1]} : vector<8x128xf32> to vector<1x128xf32>
    %15 = vector.broadcast %14 : vector<1x128xf32> to vector<256x128xf32>
    %16 = arith.addf %13, %15 : vector<256x128xf32>
    %cst_7 = arith.constant 0.000000e+00 : f32
    %17 = vector.broadcast %cst_7 : f32 to vector<256x128xf32>
    %18 = arith.cmpf oge, %16, %17 : vector<256x128xf32>
    %cst_8 = arith.constant 0.00999999977 : f32
    %19 = vector.broadcast %cst_8 : f32 to vector<256x128xf32>
    %20 = arith.mulf %19, %16 : vector<256x128xf32>
    %21 = arith.select %18, %16, %20 : vector<256x128xi1>, vector<256x128xf32>
    %22 = arith.truncf %21 : vector<256x128xf32> to vector<256x128xbf16>
    %c1 = arith.constant 1 : index
    %c0_9 = arith.constant 0 : index
    %c0_10 = arith.constant 0 : index
    %23 = vector.load %arg2[%c1, %c0_9, %c0_10] : memref<6x128x128xbf16, #tpu.memory_space<vmem>>, vector<1x128x128xbf16>
    %24 = vector.shape_cast %23 : vector<1x128x128xbf16> to vector<128x128xbf16>
    %cst_11 = arith.constant dense<0.000000e+00> : vector<256x128xf32>
    %25 = tpu.matmul %22, %24, %cst_11 {dimension_numbers = #tpu.dot_dimension_numbers<[1], [0], [0], [1], [0, 0, 1, 1], [], []>} : vector<256x128xbf16>, vector<128x128xbf16>, vector<256x128xf32> -> vector<256x128xf32>
    %26 = vector.extract_strided_slice %2 {offsets = [1, 0], sizes = [1, 128], strides = [1, 1]} : vector<8x128xf32> to vector<1x128xf32>
    %27 = vector.broadcast %26 : vector<1x128xf32> to vector<256x128xf32>
    %28 = arith.addf %25, %27 : vector<256x128xf32>
    %cst_12 = arith.constant 0.000000e+00 : f32
    %29 = vector.broadcast %cst_12 : f32 to vector<256x128xf32>
    %30 = arith.cmpf oge, %28, %29 : vector<256x128xf32>
    %cst_13 = arith.constant 0.00999999977 : f32
    %31 = vector.broadcast %cst_13 : f32 to vector<256x128xf32>
    %32 = arith.mulf %31, %28 : vector<256x128xf32>
    %33 = arith.select %30, %28, %32 : vector<256x128xi1>, vector<256x128xf32>
    %34 = arith.truncf %33 : vector<256x128xf32> to vector<256x128xbf16>
    %c2 = arith.constant 2 : index
    %c0_14 = arith.constant 0 : index
    %c0_15 = arith.constant 0 : index
    %35 = vector.load %arg2[%c2, %c0_14, %c0_15] : memref<6x128x128xbf16, #tpu.memory_space<vmem>>, vector<1x128x128xbf16>
    %36 = vector.shape_cast %35 : vector<1x128x128xbf16> to vector<128x128xbf16>
    %cst_16 = arith.constant dense<0.000000e+00> : vector<256x128xf32>
    %37 = tpu.matmul %34, %36, %cst_16 {dimension_numbers = #tpu.dot_dimension_numbers<[1], [0], [0], [1], [0, 0, 1, 1], [], []>} : vector<256x128xbf16>, vector<128x128xbf16>, vector<256x128xf32> -> vector<256x128xf32>
    %38 = vector.extract_strided_slice %2 {offsets = [2, 0], sizes = [1, 128], strides = [1, 1]} : vector<8x128xf32> to vector<1x128xf32>
    %39 = vector.broadcast %38 : vector<1x128xf32> to vector<256x128xf32>
    %40 = arith.addf %37, %39 : vector<256x128xf32>
    %cst_17 = arith.constant 0.000000e+00 : f32
    %41 = vector.broadcast %cst_17 : f32 to vector<256x128xf32>
    %42 = arith.maximumf %40, %41 : vector<256x128xf32>
    %43 = math.absf %40 : vector<256x128xf32>
    %cst_18 = arith.constant 0.000000e+00 : f32
    %44 = vector.broadcast %cst_18 : f32 to vector<256x128xf32>
    %45 = arith.subf %44, %43 : vector<256x128xf32>
    %46 = math.exp %45 : vector<256x128xf32>
    %47 = math.log1p %46 : vector<256x128xf32>
    %48 = arith.addf %42, %47 : vector<256x128xf32>
    %49 = vector.shape_cast %8 : vector<1x128xi1> to vector<1x128xi1>
    %50 = vector.broadcast %49 : vector<1x128xi1> to vector<256x128xi1>
    %51 = arith.select %50, %48, %40 : vector<256x128xi1>, vector<256x128xf32>
    %52 = arith.extf %1 : vector<256x128xbf16> to vector<256x128xf32>
    %cst_19 = arith.constant 5.000000e-01 : f32
    %53 = vector.broadcast %cst_19 : f32 to vector<256x128xf32>
    %54 = arith.mulf %51, %53 : vector<256x128xf32>
    %55 = math.exp %54 : vector<256x128xf32>
    %56 = arith.mulf %52, %55 : vector<256x128xf32>
    %57 = vector.shape_cast %8 : vector<1x128xi1> to vector<1x128xi1>
    %58 = vector.broadcast %57 : vector<1x128xi1> to vector<256x128xi1>
    %59 = arith.select %58, %56, %51 : vector<256x128xi1>, vector<256x128xf32>
    %60 = arith.truncf %59 : vector<256x128xf32> to vector<256x128xbf16>
    %c3 = arith.constant 3 : index
    %c0_20 = arith.constant 0 : index
    %c0_21 = arith.constant 0 : index
    %61 = vector.load %arg2[%c3, %c0_20, %c0_21] : memref<6x128x128xbf16, #tpu.memory_space<vmem>>, vector<1x128x128xbf16>
    %62 = vector.shape_cast %61 : vector<1x128x128xbf16> to vector<128x128xbf16>
    %cst_22 = arith.constant dense<0.000000e+00> : vector<256x128xf32>
    %63 = tpu.matmul %60, %62, %cst_22 {dimension_numbers = #tpu.dot_dimension_numbers<[1], [0], [0], [1], [0, 0, 1, 1], [], []>} : vector<256x128xbf16>, vector<128x128xbf16>, vector<256x128xf32> -> vector<256x128xf32>
    %64 = vector.extract_strided_slice %2 {offsets = [3, 0], sizes = [1, 128], strides = [1, 1]} : vector<8x128xf32> to vector<1x128xf32>
    %65 = vector.broadcast %64 : vector<1x128xf32> to vector<256x128xf32>
    %66 = arith.addf %63, %65 : vector<256x128xf32>
    %cst_23 = arith.constant 0.000000e+00 : f32
    %67 = vector.broadcast %cst_23 : f32 to vector<256x128xf32>
    %68 = arith.cmpf oge, %66, %67 : vector<256x128xf32>
    %cst_24 = arith.constant 0.00999999977 : f32
    %69 = vector.broadcast %cst_24 : f32 to vector<256x128xf32>
    %70 = arith.mulf %69, %66 : vector<256x128xf32>
    %71 = arith.select %68, %66, %70 : vector<256x128xi1>, vector<256x128xf32>
    %72 = arith.truncf %71 : vector<256x128xf32> to vector<256x128xbf16>
    %c4 = arith.constant 4 : index
    %c0_25 = arith.constant 0 : index
    %c0_26 = arith.constant 0 : index
    %73 = vector.load %arg2[%c4, %c0_25, %c0_26] : memref<6x128x128xbf16, #tpu.memory_space<vmem>>, vector<1x128x128xbf16>
    %74 = vector.shape_cast %73 : vector<1x128x128xbf16> to vector<128x128xbf16>
    %cst_27 = arith.constant dense<0.000000e+00> : vector<256x128xf32>
    %75 = tpu.matmul %72, %74, %cst_27 {dimension_numbers = #tpu.dot_dimension_numbers<[1], [0], [0], [1], [0, 0, 1, 1], [], []>} : vector<256x128xbf16>, vector<128x128xbf16>, vector<256x128xf32> -> vector<256x128xf32>
    %76 = vector.extract_strided_slice %2 {offsets = [4, 0], sizes = [1, 128], strides = [1, 1]} : vector<8x128xf32> to vector<1x128xf32>
    %77 = vector.broadcast %76 : vector<1x128xf32> to vector<256x128xf32>
    %78 = arith.addf %75, %77 : vector<256x128xf32>
    %cst_28 = arith.constant 0.000000e+00 : f32
    %79 = vector.broadcast %cst_28 : f32 to vector<256x128xf32>
    %80 = arith.cmpf oge, %78, %79 : vector<256x128xf32>
    %cst_29 = arith.constant 0.00999999977 : f32
    %81 = vector.broadcast %cst_29 : f32 to vector<256x128xf32>
    %82 = arith.mulf %81, %78 : vector<256x128xf32>
    %83 = arith.select %80, %78, %82 : vector<256x128xi1>, vector<256x128xf32>
    %84 = arith.truncf %83 : vector<256x128xf32> to vector<256x128xbf16>
    %c5 = arith.constant 5 : index
    %c0_30 = arith.constant 0 : index
    %c0_31 = arith.constant 0 : index
    %85 = vector.load %arg2[%c5, %c0_30, %c0_31] : memref<6x128x128xbf16, #tpu.memory_space<vmem>>, vector<1x128x128xbf16>
    %86 = vector.shape_cast %85 : vector<1x128x128xbf16> to vector<128x128xbf16>
    %cst_32 = arith.constant dense<0.000000e+00> : vector<256x128xf32>
    %87 = tpu.matmul %84, %86, %cst_32 {dimension_numbers = #tpu.dot_dimension_numbers<[1], [0], [0], [1], [0, 0, 1, 1], [], []>} : vector<256x128xbf16>, vector<128x128xbf16>, vector<256x128xf32> -> vector<256x128xf32>
    %88 = vector.extract_strided_slice %2 {offsets = [5, 0], sizes = [1, 128], strides = [1, 1]} : vector<8x128xf32> to vector<1x128xf32>
    %89 = vector.broadcast %88 : vector<1x128xf32> to vector<256x128xf32>
    %90 = arith.addf %87, %89 : vector<256x128xf32>
    %cst_33 = arith.constant -1.000000e+30 : f32
    %91 = vector.shape_cast %10 : vector<1x128xi1> to vector<1x128xi1>
    %92 = vector.broadcast %91 : vector<1x128xi1> to vector<256x128xi1>
    %93 = vector.broadcast %cst_33 : f32 to vector<256x128xf32>
    %94 = arith.select %92, %90, %93 : vector<256x128xi1>, vector<256x128xf32>
    %cst_34 = arith.constant dense<0xFF800000> : vector<256xf32>
    %95 = vector.multi_reduction <maximumf>, %94, %cst_34 [1] : vector<256x128xf32> to vector<256xf32>
    %96 = vector.shape_cast %95 : vector<256xf32> to vector<256x1xf32>
    %97 = vector.broadcast %96 : vector<256x1xf32> to vector<256x128xf32>
    %98 = arith.subf %94, %97 : vector<256x128xf32>
    %99 = math.exp %98 : vector<256x128xf32>
    %cst_35 = arith.constant dense<0.000000e+00> : vector<256xf32>
    %100 = vector.multi_reduction <add>, %99, %cst_35 [1] : vector<256x128xf32> to vector<256xf32>
    %101 = vector.shape_cast %100 : vector<256xf32> to vector<256x1xf32>
    %102 = tpu.reciprocal %101 {approx = true} : vector<256x1xf32> -> vector<256x1xf32>
    %103 = arith.mulf %101, %102 : vector<256x1xf32>
    %cst_36 = arith.constant 2.000000e+00 : f32
    %104 = vector.broadcast %cst_36 : f32 to vector<256x1xf32>
    %105 = arith.subf %104, %103 : vector<256x1xf32>
    %106 = arith.mulf %102, %105 : vector<256x1xf32>
    %107 = vector.broadcast %106 : vector<256x1xf32> to vector<256x128xf32>
    %108 = arith.mulf %99, %107 : vector<256x128xf32>
    %109 = vector.shape_cast %10 : vector<1x128xi1> to vector<1x128xi1>
    %110 = vector.broadcast %109 : vector<1x128xi1> to vector<256x128xi1>
    %111 = arith.select %110, %108, %90 : vector<256x128xi1>, vector<256x128xf32>
    %c0_37 = arith.constant 0 : index
    %c0_38 = arith.constant 0 : index
    %112 = vector.load %arg4[%c0_37, %c0_38] : memref<256x256xf32, #tpu.memory_space<vmem>>, vector<256x128xf32>
    tpu.vector_store %arg4[%c0_37, %c0_38], %111 {strides = array<i32>} : memref<256x256xf32, #tpu.memory_space<vmem>>, vector<256x128xf32>,
    %c0_39 = arith.constant 0 : index
    %c128_40 = arith.constant 128 : index
    %113 = vector.load %arg4[%c0_39, %c128_40] : memref<256x256xf32, #tpu.memory_space<vmem>>, vector<256x128xf32>
    tpu.vector_store %arg4[%c0_39, %c128_40], %51 {strides = array<i32>} : memref<256x256xf32, #tpu.memory_space<vmem>>, vector<256x128xf32>,
    return
  }
  func.func @transform_0(%arg0: i32) -> (i32, i32) {
    %c0_i32 = arith.constant 0 : i32
    %c0_i32_0 = arith.constant 0 : i32
    return %arg0, %c0_i32 : i32, i32
  }
  func.func @transform_1(%arg0: i32) -> (i32, i32, i32) {
    %c0_i32 = arith.constant 0 : i32
    %c0_i32_0 = arith.constant 0 : i32
    %c0_i32_1 = arith.constant 0 : i32
    %c0_i32_2 = arith.constant 0 : i32
    return %c0_i32, %c0_i32_0, %c0_i32_1 : i32, i32, i32
  }
  func.func @transform_2(%arg0: i32) -> (i32, i32) {
    %c0_i32 = arith.constant 0 : i32
    %c0_i32_0 = arith.constant 0 : i32
    %c0_i32_1 = arith.constant 0 : i32
    return %c0_i32, %c0_i32_0 : i32, i32
  }
  func.func @transform_3(%arg0: i32) -> (i32, i32) {
    %c0_i32 = arith.constant 0 : i32
    %c0_i32_0 = arith.constant 0 : i32
    return %arg0, %c0_i32 : i32, i32
  }
}

</mosaic_0001>

<bundles_post_ra>
// kernel: vae_forward.1
= control target key start
LH: loop header
LB: loop body
LE: loop exit
PB: predicated region body
PF: predicated region fallthrough
CT: control target
= control target key end

     0   :  { %s4480_s12 = smov 0   ;;  %s6289_s0 = inlined_call_operand.vmem [shape: bf16[512,256], index: 0, kind: input, shape index: {}]   ;;  %s6290_s1 = inlined_call_operand.vmem [shape: bf16[6,128,128], index: 1, kind: input, shape index: {}]   ;;  %s6291_s2 = inlined_call_operand.vmem [shape: f32[8,128], index: 2, kind: input, shape index: {}]   ;;  %s6292_s3 = inlined_call_operand.vmem [shape: f32[512,256], index: 3, kind: output, shape index: {}]  }
   0x1 LB: > { %s3468_s13 = sadd.s32 4294967295, %s4458_s12   ;;  %p3472_p0 = scmp.ge.s32.totalorder %s4458_s12, 1  ;;  %s4458_s12 = sphi %s4480_s12, %s13_s12  }
   0x2   : > { %p139_p1 = scmp.lt.s32.totalorder %s4458_s12, 3 }
   0x4   : > { %p140_p2 = pnand %p3472_p0, %p139_p1 }
   0x6   : > { %143 = sbr.rel (%p140_p2) target bundleno = 1909 (0x775), region = 32 }
   0xd   : > { %v4067_v0 = vld [vmem:[%s6290_s1] sm:$0xff]   ;;  %s3473_s16 = sshll.u32 %s3468_s13, 5  ;;  %v4068_v1 = vld [vmem:[%s6290_s1 + $0x8] sm:$0xff]   ;;  %v4069_v2 = vld [vmem:[%s6290_s1 + $0x10] sm:$0xff]   ;;  %v245_v39 = vlaneseq }
   0xe   : > { %p166_p3 = scmp.lt.s32.totalorder %s3473_s16, 63  ;;  %3771 = vmatprep.subr.bf16.mxu0 %v4067_v0  ;;  %v4070_v3 = vld [vmem:[%s6290_s1 + $0x18] sm:$0xff]   ;;  %v4071_v5 = vld [vmem:[%s6290_s1 + $0x20] sm:$0xff]   ;;  %v4072_v6 = vld [vmem:[%s6290_s1 + $0x28] sm:$0xff]  }
   0xf   : > { %3772 = vmatpush3.bf16.msra.mxu0 %v4067_v0  ;;  %v4073_v7 = vld [vmem:[%s6290_s1 + $0x30] sm:$0xff]   ;;  %v4074_v8 = vld [vmem:[%s6290_s1 + $0x38] sm:$0xff]   ;;  %v4091_v9 = vld [vmem:[%s6290_s1 + $0x40] sm:$0xff]   ;;  %v4582_v40 = vshrl.u32 %v245_v39, 7 }
  0x10   : > { %s6492_s16 = smov (!%p166_p3, %s3473_s16), 63  ;;  %3773 = vmatprep.subr.bf16.mxu0 %v4068_v1  ;;  %v4092_v10 = vld [vmem:[%s6290_s1 + $0x48] sm:$0xff]   ;;  %3819 = vmatprep.subr.bf16.mxu1 %v4091_v9  ;;  %v4093_v12 = vld [vmem:[%s6290_s1 + $0x50] sm:$0xff]   ;;  %v4094_v14 = vld [vmem:[%s6290_s1 + $0x58] sm:$0xff]  }
  0x11   : > { %s3625_s21 = sshll.u32 %s6492_s16, 3  ;;  %3820 = vmatpush3.bf16.msra.mxu1 %v4091_v9  ;;  %v4095_v15 = vld [vmem:[%s6290_s1 + $0x60] sm:$0xff]   ;;  %v4096_v29 = vld [vmem:[%s6290_s1 + $0x68] sm:$0xff]   ;;  %v4097_v30 = vld [vmem:[%s6290_s1 + $0x70] sm:$0xff]   ;;  %6335 = vst [vmem:[#allocation2_spill] sm:$0xff] %v4582_v40  ;;  %v269_v41 = vsub.s32 0, %v4582_v40 }
  0x12   : > { %s4503_s24 = scalar_lea.vmem %s6289_s0, %s3625_s21  ;;  %3821 = vmatprep.subr.bf16.mxu1 %v4092_v10  ;;  %v4098_v31 = vld [vmem:[%s6290_s1 + $0x78] sm:$0xff]   ;;  %v4099_v32 = vld [vmem:[%s6290_s1 + $0x80] sm:$0xff]   ;;  %v4100_v33 = vld [vmem:[%s6290_s1 + $0x88] sm:$0xff]   ;;  %s3626_s10 = sshll.u32 %s6492_s16, 4 }
  0x13   : > { %3774 = vmatpush3.bf16.msra.mxu0 %v4068_v1  ;;  %v4075_v4 = vld [vmem:[%s4503_s24] ss:$8 sps:$4 sm:$0xff]   ;;  %v4076_v11 = vld [vmem:[%s4503_s24 + $0x10] ss:$8 sps:$4 sm:$0xff]   ;;  %s4827_s13 = scalar_lea.vmem %s6292_s3, %s3626_s10 }
  0x14   : > { %3775 = vmatprep.subr.bf16.mxu0 %v4069_v2  ;;  %3787 = vmatprep.mubr.bf16.mxu0 %v4075_v4  ;;  %v4077_v13 = vld [vmem:[%s4503_s24 + $0x20] ss:$8 sps:$4 sm:$0xff]   ;;  %v4078_v16 = vld [vmem:[%s4503_s24 + $0x30] ss:$8 sps:$4 sm:$0xff]  }
  0x15   : > { %3822 = vmatpush3.bf16.msra.mxu1 %v4092_v10  ;;  %v4079_v17 = vld [vmem:[%s4503_s24 + $0x40] ss:$8 sps:$4 sm:$0xff]   ;;  %v4080_v18 = vld [vmem:[%s4503_s24 + $0x50] ss:$8 sps:$4 sm:$0xff]  }
  0x16   : > { %3823 = vmatprep.subr.bf16.mxu1 %v4093_v12  ;;  %v4081_v19 = vld [vmem:[%s4503_s24 + $0x60] ss:$8 sps:$4 sm:$0xff]   ;;  %v4082_v20 = vld [vmem:[%s4503_s24 + $0x70] ss:$8 sps:$4 sm:$0xff]  }
  0x17   : > { %3776 = vmatpush3.bf16.msra.mxu0 %v4069_v2  ;;  %v4083_v21 = vld [vmem:[%s4503_s24 + $0x80] ss:$8 sps:$4 sm:$0xff]   ;;  %v4084_v22 = vld [vmem:[%s4503_s24 + $0x90] ss:$8 sps:$4 sm:$0xff]  }
  0x18   : > { %3777 = vmatprep.subr.bf16.mxu0 %v4070_v3  ;;  %v4085_v23 = vld [vmem:[%s4503_s24 + $0xa0] ss:$8 sps:$4 sm:$0xff]   ;;  %v4086_v24 = vld [vmem:[%s4503_s24 + $0xb0] ss:$8 sps:$4 sm:$0xff]  }
  0x19   : > { %3824 = vmatpush3.bf16.msra.mxu1 %v4093_v12  ;;  %v4087_v25 = vld [vmem:[%s4503_s24 + $0xc0] ss:$8 sps:$4 sm:$0xff]   ;;  %v4088_v26 = vld [vmem:[%s4503_s24 + $0xd0] ss:$8 sps:$4 sm:$0xff]  }
  0x1a   : > { %3825 = vmatprep.subr.bf16.mxu1 %v4094_v14  ;;  %v4089_v27 = vld [vmem:[%s4503_s24 + $0xe0] ss:$8 sps:$4 sm:$0xff]   ;;  %v4090_v28 = vld [vmem:[%s4503_s24 + $0xf0] ss:$8 sps:$4 sm:$0xff]  }
  0x1b   : > { %3778 = vmatpush3.bf16.msra.mxu0 %v4070_v3  ;;  %v4101_v34 = vld [vmem:[%s6290_s1 + $0x90] sm:$0xff]   ;;  %v4102_v35 = vld [vmem:[%s6290_s1 + $0x98] sm:$0xff]   ;;  %v4103_v36 = vld [vmem:[%s6290_s1 + $0xa0] sm:$0xff]  }
  0x1c   : > { %3779 = vmatprep.subr.bf16.mxu0 %v4071_v5  ;;  %v4104_v37 = vld [vmem:[%s6290_s1 + $0xa8] sm:$0xff]   ;;  %v4105_v38 = vld [vmem:[%s6290_s1 + $0xb0] sm:$0xff]   ;;  %v4588_v42 = vld [vmem:[%s6291_s2] sm:$0xff] }
  0x1d   : > { %3826 = vmatpush3.bf16.msra.mxu1 %v4094_v14  ;;  %v4591_v43 = vrot.slane %v4588_v42, %v269_v41 }
  0x1e   : > { %3827 = vmatprep.subr.bf16.mxu1 %v4095_v15 }
  0x1f   : > { %3780 = vmatpush3.bf16.msra.mxu0 %v4071_v5 }
  0x20   : > { %3781 = vmatprep.subr.bf16.mxu0 %v4072_v6 }
  0x21   : > { %3828 = vmatpush3.bf16.msra.mxu1 %v4095_v15 }
  0x22   : > { %3829 = vmatprep.subr.bf16.mxu1 %v4096_v29 }
  0x23   : > { %3782 = vmatpush3.bf16.msra.mxu0 %v4072_v6 }
  0x24   : > { %3783 = vmatprep.subr.bf16.mxu0 %v4073_v7 }
  0x25   : > { %3830 = vmatpush3.bf16.msra.mxu1 %v4096_v29 }
  0x26   : > { %3831 = vmatprep.subr.bf16.mxu1 %v4097_v30 }
  0x27   : > { %3784 = vmatpush3.bf16.msra.mxu0 %v4073_v7 }
  0x28   : > { %3785 = vmatprep.subr.bf16.mxu0 %v4074_v8 }
  0x29   : > { %3832 = vmatpush3.bf16.msra.mxu1 %v4097_v30 }
  0x2a   : > { %3833 = vmatprep.subr.bf16.mxu1 %v4098_v31 }
  0x2b   : > { %3786 = vmatpush3.bf16.msra.mxu0 %v4074_v8 }
  0x2c   : > { %3867 = vmatprep.subr.bf16.mxu0 %v4099_v32 }
  0x2d   : > { %3834 = vmatpush3.bf16.msra.mxu1 %v4098_v31 }
  0x2e   : > { %3788 = vmatmul.mubr.bf16.vlgmr.msra.gmra.mrb[0].mxu0 %v4076_v11 }
  0x2f   : > { %3791 = vmatprep.mubr.bf16.mxu0 %v4077_v13  ;;  %3868 = vmatpush3.bf16.msra.mxu0 %v4099_v32 }
  0x30   : > { %3869 = vmatprep.subr.bf16.mxu0 %v4100_v33 }
  0x33   : > { %3870 = vmatpush3.bf16.msra.mxu0 %v4100_v33 }
  0x34   : > { %3871 = vmatprep.subr.bf16.mxu0 %v4101_v34 }
  0x36   : > { %3792 = vmatmul.mubr.bf16.gmra.mrb[4].mxu0 %v4078_v16 }
  0x37   : > { %3795 = vmatprep.mubr.bf16.mxu0 %v4079_v17  ;;  %3872 = vmatpush3.bf16.msra.mxu0 %v4101_v34 }
  0x38   : > { %3873 = vmatprep.subr.bf16.mxu0 %v4102_v35 }
  0x3b   : > { %3874 = vmatpush3.bf16.msra.mxu0 %v4102_v35 }
  0x3c   : > { %3875 = vmatprep.subr.bf16.mxu0 %v4103_v36 }
  0x3e   : > { %3796 = vmatmul.mubr.bf16.gmra.mrb[8].mxu0 %v4080_v18 }
  0x3f   : > { %3799 = vmatprep.mubr.bf16.mxu0 %v4081_v19  ;;  %3876 = vmatpush3.bf16.msra.mxu0 %v4103_v36 }
  0x40   : > { %3877 = vmatprep.subr.bf16.mxu0 %v4104_v37 }
  0x43   : > { %3878 = vmatpush3.bf16.msra.mxu0 %v4104_v37 }
  0x44   : > { %3879 = vmatprep.subr.bf16.mxu0 %v4105_v38 }
  0x46   : > { %3800 = vmatmul.mubr.bf16.gmra.mrb[12].mxu0 %v4082_v20 }
  0x47   : > { %3803 = vmatprep.mubr.bf16.mxu0 %v4083_v21  ;;  %3880 = vmatpush3.bf16.msra.mxu0 %v4105_v38 }
  0x4e   : > { %3804 = vmatmul.mubr.bf16.gmra.mrb[16].mxu0 %v4084_v22 }
  0x4f   : > { %3807 = vmatprep.mubr.bf16.mxu0 %v4085_v23 }
  0x56   : > { %3808 = vmatmul.mubr.bf16.gmra.mrb[20].mxu0 %v4086_v24 }
  0x57   : > { %3811 = vmatprep.mubr.bf16.mxu0 %v4087_v25 }
  0x5e   : > { %3812 = vmatmul.mubr.bf16.gmra.mrb[24].mxu0 %v4088_v26 }
  0x5f   : > { %3815 = vmatprep.mubr.bf16.mxu0 %v4089_v27 }
  0x66   : > { %3816 = vmatmul.mubr.bf16.gmra.mrb[28].mxu0 %v4090_v28 }
 0x101   : > { %v3789_v44 = vpop.f32.mrb[0].mxu0 }
 0x102   : > { %v458_v45 = vadd.f32 %v3789_v44, %v4591_v43  ;;  %v449_v46 = vpop.f32.mrb[1].mxu0 }
 0x103   : > { %v450_v47 = vadd.f32 %v449_v46, %v4591_v43  ;;  %v3790_v48 = vpop.f32.mrb[2].mxu0 }
 0x104   : > { %v610_v49 = vmul.f32 0.01, %v458_v45  ;;  %v461_v50 = vadd.f32 %v3790_v48, %v4591_v43  ;;  %v452_v51 = vpop.f32.mrb[3].mxu0  ;;  %vm578_vm0 = vcmp.ge.f32.partialorder %v458_v45, 0.0 }
 0x105   : > { %v608_v52 = vmul.f32 0.01, %v450_v47  ;;  %v453_v53 = vadd.f32 %v452_v51, %v4591_v43  ;;  %vm576_vm2 = vcmp.ge.f32.partialorder %v450_v47, 0.0 }
 0x106   : > { %vm579_vm1 = vcmp.ge.f32.partialorder %v461_v50, 0.0  ;;  %v611_v54 = vmul.f32 0.01, %v461_v50  ;;  %v642_v56 = vsel %vm578_vm0, %v458_v45, %v610_v49 }
 0x107   : > { %v609_v55 = vmul.f32 0.01, %v453_v53  ;;  %vm577_vm3 = vcmp.ge.f32.partialorder %v453_v53, 0.0  ;;  %v640_v59 = vsel %vm576_vm2, %v450_v47, %v608_v52 }
 0x108   : > { %v643_v57 = vsel %vm579_vm1, %v461_v50, %v611_v54 }
 0x109   : > { %v3793_v58 = vpop.f32.mrb[4].mxu0  ;;  %v641_v60 = vsel %vm577_vm3, %v453_v53, %v609_v55  ;;  %v673_v61 = vpack.c.bf16 %v643_v57, %v642_v56 }
 0x10a   : > { %v474_v62 = vadd.f32 %v3793_v58, %v4591_v43  ;;  %v465_v63 = vpop.f32.mrb[5].mxu0  ;;  %v672_v0 = vpack.c.bf16 %v641_v60, %v640_v59 }
 0x10b   : > { %v466_v1 = vadd.f32 %v465_v63, %v4591_v43  ;;  %v3794_v2 = vpop.f32.mrb[6].mxu0 }
 0x10c   : > { %v614_v3 = vmul.f32 0.01, %v474_v62  ;;  %v477_v4 = vadd.f32 %v3794_v2, %v4591_v43  ;;  %v468_v5 = vpop.f32.mrb[7].mxu0  ;;  %3835 = vmatprep.mubr.bf16.mxu1 %v672_v0  ;;  %vm582_vm4 = vcmp.ge.f32.partialorder %v474_v62, 0.0 }
 0x10d   : > { %v612_v6 = vmul.f32 0.01, %v466_v1  ;;  %v469_v7 = vadd.f32 %v468_v5, %v4591_v43  ;;  %3836 = vmatmul.mubr.bf16.vlgmr.msra.gmra.mrb[0].mxu1 %v673_v61  ;;  %vm580_vm5 = vcmp.ge.f32.partialorder %v466_v1, 0.0 }
 0x10e   : > { %vm583_vm6 = vcmp.ge.f32.partialorder %v477_v4, 0.0  ;;  %v615_v8 = vmul.f32 0.01, %v477_v4  ;;  %v646_v10 = vsel %vm582_vm4, %v474_v62, %v614_v3 }
 0x10f   : > { %vm581_vm7 = vcmp.ge.f32.partialorder %v469_v7, 0.0  ;;  %v613_v9 = vmul.f32 0.01, %v469_v7  ;;  %v644_v13 = vsel %vm580_vm5, %v466_v1, %v612_v6 }
 0x110   : > { %v647_v11 = vsel %vm583_vm6, %v477_v4, %v615_v8 }
 0x111   : > { %v3797_v12 = vpop.f32.mrb[8].mxu0  ;;  %v645_v14 = vsel %vm581_vm7, %v469_v7, %v613_v9  ;;  %v675_v15 = vpack.c.bf16 %v647_v11, %v646_v10 }
 0x112   : > { %v490_v16 = vadd.f32 %v3797_v12, %v4591_v43  ;;  %v481_v17 = vpop.f32.mrb[9].mxu0  ;;  %v674_v18 = vpack.c.bf16 %v645_v14, %v644_v13 }
 0x113   : > { %v482_v19 = vadd.f32 %v481_v17, %v4591_v43  ;;  %v3798_v20 = vpop.f32.mrb[10].mxu0 }
 0x114   : > { %v618_v21 = vmul.f32 0.01, %v490_v16  ;;  %v493_v22 = vadd.f32 %v3798_v20, %v4591_v43  ;;  %v484_v23 = vpop.f32.mrb[11].mxu0  ;;  %3839 = vmatprep.mubr.bf16.mxu1 %v674_v18  ;;  %vm586_vm8 = vcmp.ge.f32.partialorder %v490_v16, 0.0 }
 0x115   : > { %v616_v24 = vmul.f32 0.01, %v482_v19  ;;  %v485_v25 = vadd.f32 %v484_v23, %v4591_v43  ;;  %3840 = vmatmul.mubr.bf16.gmra.mrb[4].mxu1 %v675_v15  ;;  %vm584_vm9 = vcmp.ge.f32.partialorder %v482_v19, 0.0 }
 0x116   : > { %vm587_vm10 = vcmp.ge.f32.partialorder %v493_v22, 0.0  ;;  %v619_v26 = vmul.f32 0.01, %v493_v22  ;;  %v650_v28 = vsel %vm586_vm8, %v490_v16, %v618_v21 }
 0x117   : > { %vm585_vm11 = vcmp.ge.f32.partialorder %v485_v25, 0.0  ;;  %v617_v27 = vmul.f32 0.01, %v485_v25  ;;  %v648_v31 = vsel %vm584_vm9, %v482_v19, %v616_v24 }
 0x118   : > { %v651_v29 = vsel %vm587_vm10, %v493_v22, %v619_v26 }
 0x119   : > { %v3801_v30 = vpop.f32.mrb[12].mxu0  ;;  %v649_v32 = vsel %vm585_vm11, %v485_v25, %v617_v27  ;;  %v677_v33 = vpack.c.bf16 %v651_v29, %v650_v28 }
 0x11a   : > { %v506_v34 = vadd.f32 %v3801_v30, %v4591_v43  ;;  %v497_v35 = vpop.f32.mrb[13].mxu0  ;;  %v676_v36 = vpack.c.bf16 %v649_v32, %v648_v31 }
 0x11b   : > { %v498_v37 = vadd.f32 %v497_v35, %v4591_v43  ;;  %v3802_v38 = vpop.f32.mrb[14].mxu0 }
 0x11c   : > { %v622_v41 = vmul.f32 0.01, %v506_v34  ;;  %v509_v44 = vadd.f32 %v3802_v38, %v4591_v43  ;;  %v500_v45 = vpop.f32.mrb[15].mxu0  ;;  %3843 = vmatprep.mubr.bf16.mxu1 %v676_v36  ;;  %vm590_vm12 = vcmp.ge.f32.partialorder %v506_v34, 0.0 }
 0x11d   : > { %v620_v46 = vmul.f32 0.01, %v498_v37  ;;  %v501_v47 = vadd.f32 %v500_v45, %v4591_v43  ;;  %3844 = vmatmul.mubr.bf16.gmra.mrb[8].mxu1 %v677_v33  ;;  %vm588_vm13 = vcmp.ge.f32.partialorder %v498_v37, 0.0 }
 0x11e   : > { %vm591_vm14 = vcmp.ge.f32.partialorder %v509_v44, 0.0  ;;  %v623_v48 = vmul.f32 0.01, %v509_v44  ;;  %v654_v50 = vsel %vm590_vm12, %v506_v34, %v622_v41 }
 0x11f   : > { %vm589_vm15 = vcmp.ge.f32.partialorder %v501_v47, 0.0  ;;  %v621_v49 = vmul.f32 0.01, %v501_v47  ;;  %v652_v53 = vsel %vm588_vm13, %v498_v37, %v620_v46 }
 0x120   : > { %v655_v51 = vsel %vm591_vm14, %v509_v44, %v623_v48 }
 0x121   : > { %v3805_v52 = vpop.f32.mrb[16].mxu0  ;;  %v653_v54 = vsel %vm589_vm15, %v501_v47, %v621_v49  ;;  %v679_v55 = vpack.c.bf16 %v655_v51, %v654_v50 }
 0x122   : > { %v522_v56 = vadd.f32 %v3805_v52, %v4591_v43  ;;  %v513_v57 = vpop.f32.mrb[17].mxu0  ;;  %v678_v58 = vpack.c.bf16 %v653_v54, %v652_v53 }
 0x123   : > { %v514_v59 = vadd.f32 %v513_v57, %v4591_v43  ;;  %v3806_v60 = vpop.f32.mrb[18].mxu0 }
 0x124   : > { %v626_v61 = vmul.f32 0.01, %v522_v56  ;;  %v525_v62 = vadd.f32 %v3806_v60, %v4591_v43  ;;  %v516_v63 = vpop.f32.mrb[19].mxu0  ;;  %3847 = vmatprep.mubr.bf16.mxu1 %v678_v58  ;;  %vm594_vm0 = vcmp.ge.f32.partialorder %v522_v56, 0.0 }
 0x125   : > { %v624_v0 = vmul.f32 0.01, %v514_v59  ;;  %v517_v1 = vadd.f32 %v516_v63, %v4591_v43  ;;  %3848 = vmatmul.mubr.bf16.gmra.mrb[12].mxu1 %v679_v55  ;;  %vm592_vm1 = vcmp.ge.f32.partialorder %v514_v59, 0.0 }
 0x126   : > { %vm595_vm2 = vcmp.ge.f32.partialorder %v525_v62, 0.0  ;;  %v627_v2 = vmul.f32 0.01, %v525_v62  ;;  %v658_v4 = vsel %vm594_vm0, %v522_v56, %v626_v61 }
 0x127   : > { %vm593_vm3 = vcmp.ge.f32.partialorder %v517_v1, 0.0  ;;  %v625_v3 = vmul.f32 0.01, %v517_v1  ;;  %v656_v7 = vsel %vm592_vm1, %v514_v59, %v624_v0 }
 0x128   : > { %v659_v5 = vsel %vm595_vm2, %v525_v62, %v627_v2 }
 0x129   : > { %v3809_v6 = vpop.f32.mrb[20].mxu0  ;;  %v657_v8 = vsel %vm593_vm3, %v517_v1, %v625_v3  ;;  %v681_v9 = vpack.c.bf16 %v659_v5, %v658_v4  ;;  %v4106_v4 = vld [vmem:[%s6290_s1 + $0xb8] sm:$0xff]   ;;  %v707_v5 = vsub.s32 1, %v4582_v40 }
 0x12a   : > { %v538_v10 = vadd.f32 %v3809_v6, %v4591_v43  ;;  %v529_v11 = vpop.f32.mrb[21].mxu0  ;;  %v680_v12 = vpack.c.bf16 %v657_v8, %v656_v7  ;;  %3881 = vmatprep.subr.bf16.mxu0 %v4106_v4 }
 0x12b   : > { %v530_v13 = vadd.f32 %v529_v11, %v4591_v43  ;;  %v3810_v14 = vpop.f32.mrb[22].mxu0  ;;  %3882 = vmatpush3.bf16.msra.mxu0 %v4106_v4  ;;  %v4633_v6 = vrot.slane %v4588_v42, %v707_v5 }
 0x12c   : > { %v630_v15 = vmul.f32 0.01, %v538_v10  ;;  %v541_v16 = vadd.f32 %v3810_v14, %v4591_v43  ;;  %v532_v17 = vpop.f32.mrb[23].mxu0  ;;  %3851 = vmatprep.mubr.bf16.mxu1 %v680_v12  ;;  %vm598_vm4 = vcmp.ge.f32.partialorder %v538_v10, 0.0 }
 0x12d   : > { %v628_v18 = vmul.f32 0.01, %v530_v13  ;;  %v533_v19 = vadd.f32 %v532_v17, %v4591_v43  ;;  %3852 = vmatmul.mubr.bf16.gmra.mrb[16].mxu1 %v681_v9  ;;  %vm596_vm5 = vcmp.ge.f32.partialorder %v530_v13, 0.0 }
 0x12e   : > { %vm599_vm6 = vcmp.ge.f32.partialorder %v541_v16, 0.0  ;;  %v631_v20 = vmul.f32 0.01, %v541_v16  ;;  %v662_v22 = vsel %vm598_vm4, %v538_v10, %v630_v15 }
 0x12f   : > { %vm597_vm7 = vcmp.ge.f32.partialorder %v533_v19, 0.0  ;;  %v629_v21 = vmul.f32 0.01, %v533_v19  ;;  %v660_v25 = vsel %vm596_vm5, %v530_v13, %v628_v18 }
 0x130   : > { %v663_v23 = vsel %vm599_vm6, %v541_v16, %v631_v20 }
 0x131   : > { %v3813_v24 = vpop.f32.mrb[24].mxu0  ;;  %v661_v26 = vsel %vm597_vm7, %v533_v19, %v629_v21  ;;  %v683_v27 = vpack.c.bf16 %v663_v23, %v662_v22 }
 0x132   : > { %v554_v28 = vadd.f32 %v3813_v24, %v4591_v43  ;;  %v545_v29 = vpop.f32.mrb[25].mxu0  ;;  %v682_v30 = vpack.c.bf16 %v661_v26, %v660_v25 }
 0x133   : > { %v546_v31 = vadd.f32 %v545_v29, %v4591_v43  ;;  %v3814_v32 = vpop.f32.mrb[26].mxu0 }
 0x134   : > { %v634_v33 = vmul.f32 0.01, %v554_v28  ;;  %v557_v34 = vadd.f32 %v3814_v32, %v4591_v43  ;;  %v548_v35 = vpop.f32.mrb[27].mxu0  ;;  %3855 = vmatprep.mubr.bf16.mxu1 %v682_v30  ;;  %vm602_vm8 = vcmp.ge.f32.partialorder %v554_v28, 0.0 }
 0x135   : > { %v632_v36 = vmul.f32 0.01, %v546_v31  ;;  %v549_v37 = vadd.f32 %v548_v35, %v4591_v43  ;;  %3856 = vmatmul.mubr.bf16.gmra.mrb[20].mxu1 %v683_v27  ;;  %vm600_vm9 = vcmp.ge.f32.partialorder %v546_v31, 0.0 }
 0x136   : > { %vm603_vm10 = vcmp.ge.f32.partialorder %v557_v34, 0.0  ;;  %v635_v38 = vmul.f32 0.01, %v557_v34  ;;  %v666_v44 = vsel %vm602_vm8, %v554_v28, %v634_v33 }
 0x137   : > { %vm601_vm11 = vcmp.ge.f32.partialorder %v549_v37, 0.0  ;;  %v633_v41 = vmul.f32 0.01, %v549_v37  ;;  %v664_v47 = vsel %vm600_vm9, %v546_v31, %v632_v36 }
 0x138   : > { %v667_v45 = vsel %vm603_vm10, %v557_v34, %v635_v38 }
 0x139   : > { %v3817_v46 = vpop.f32.mrb[28].mxu0  ;;  %v665_v48 = vsel %vm601_vm11, %v549_v37, %v633_v41  ;;  %v685_v49 = vpack.c.bf16 %v667_v45, %v666_v44 }
 0x13a   : > { %v570_v50 = vadd.f32 %v3817_v46, %v4591_v43  ;;  %v561_v51 = vpop.f32.mrb[29].mxu0  ;;  %v684_v52 = vpack.c.bf16 %v665_v48, %v664_v47 }
 0x13b   : > { %v562_v53 = vadd.f32 %v561_v51, %v4591_v43  ;;  %v3818_v54 = vpop.f32.mrb[30].mxu0 }
 0x13c   : > { %v638_v55 = vmul.f32 0.01, %v570_v50  ;;  %v573_v56 = vadd.f32 %v3818_v54, %v4591_v43  ;;  %v564_v57 = vpop.f32.mrb[31].mxu0  ;;  %3859 = vmatprep.mubr.bf16.mxu1 %v684_v52  ;;  %vm606_vm12 = vcmp.ge.f32.partialorder %v570_v50, 0.0 }
 0x13d   : > { %v636_v58 = vmul.f32 0.01, %v562_v53  ;;  %v565_v59 = vadd.f32 %v564_v57, %v4591_v43  ;;  %3860 = vmatmul.mubr.bf16.gmra.mrb[24].mxu1 %v685_v49  ;;  %vm604_vm13 = vcmp.ge.f32.partialorder %v562_v53, 0.0  ;;  %v4107_v43 = vld [vmem:[%s6290_s1 + $0xc0] sm:$0xff]  }
 0x13e   : > { %vm607_vm14 = vcmp.ge.f32.partialorder %v573_v56, 0.0  ;;  %v639_v60 = vmul.f32 0.01, %v573_v56  ;;  %v670_v62 = vsel %vm606_vm12, %v570_v50, %v638_v55  ;;  %3915 = vmatprep.subr.bf16.mxu1 %v4107_v43 }
 0x13f   : > { %vm605_vm15 = vcmp.ge.f32.partialorder %v565_v59, 0.0  ;;  %v637_v61 = vmul.f32 0.01, %v565_v59  ;;  %v668_v0 = vsel %vm604_vm13, %v562_v53, %v636_v58  ;;  %3916 = vmatpush3.bf16.msra.mxu1 %v4107_v43 }
 0x140   : > { %v671_v63 = vsel %vm607_vm14, %v573_v56, %v639_v60 }
 0x141   : > { %v669_v1 = vsel %vm605_vm15, %v565_v59, %v637_v61  ;;  %v687_v2 = vpack.c.bf16 %v671_v63, %v670_v62 }
 0x142   : > { %v686_v3 = vpack.c.bf16 %v669_v1, %v668_v0 }
 0x144   : > { %3863 = vmatprep.mubr.bf16.mxu1 %v686_v3 }
 0x145   : > { %3864 = vmatmul.mubr.bf16.gmra.mrb[28].mxu1 %v687_v2 }
 0x1e0   : > { %v3837_v7 = vpop.f32.mrb[0].mxu1 }
 0x1e1   : > { %v800_v8 = vadd.f32 %v3837_v7, %v4633_v6  ;;  %v791_v9 = vpop.f32.mrb[1].mxu1 }
 0x1e2   : > { %v792_v10 = vadd.f32 %v791_v9, %v4633_v6  ;;  %v3838_v11 = vpop.f32.mrb[2].mxu1 }
 0x1e3   : > { %v952_v12 = vmul.f32 0.01, %v800_v8  ;;  %v803_v13 = vadd.f32 %v3838_v11, %v4633_v6  ;;  %v794_v14 = vpop.f32.mrb[3].mxu1  ;;  %vm920_vm0 = vcmp.ge.f32.partialorder %v800_v8, 0.0 }
 0x1e4   : > { %v950_v15 = vmul.f32 0.01, %v792_v10  ;;  %v795_v16 = vadd.f32 %v794_v14, %v4633_v6  ;;  %vm918_vm1 = vcmp.ge.f32.partialorder %v792_v10, 0.0 }
 0x1e5   : > { %vm921_vm2 = vcmp.ge.f32.partialorder %v803_v13, 0.0  ;;  %v953_v17 = vmul.f32 0.01, %v803_v13  ;;  %v984_v19 = vsel %vm920_vm0, %v800_v8, %v952_v12 }
 0x1e6   : > { %vm919_vm3 = vcmp.ge.f32.partialorder %v795_v16, 0.0  ;;  %v951_v18 = vmul.f32 0.01, %v795_v16  ;;  %v982_v23 = vsel %vm918_vm1, %v792_v10, %v950_v15 }
 0x1e7   : > { %v985_v20 = vsel %vm921_vm2, %v803_v13, %v953_v17 }
 0x1e8   : > { %v1015_v21 = vpack.c.bf16 %v985_v20, %v984_v19  ;;  %v3841_v22 = vpop.f32.mrb[4].mxu1  ;;  %v983_v24 = vsel %vm919_vm3, %v795_v16, %v951_v18 }
 0x1e9   : > { %v816_v25 = vadd.f32 %v3841_v22, %v4633_v6  ;;  %v807_v26 = vpop.f32.mrb[5].mxu1  ;;  %v1014_v27 = vpack.c.bf16 %v983_v24, %v982_v23 }
 0x1ea   : > { %v808_v28 = vadd.f32 %v807_v26, %v4633_v6  ;;  %v3842_v29 = vpop.f32.mrb[6].mxu1 }
 0x1eb   : > { %v956_v30 = vmul.f32 0.01, %v816_v25  ;;  %v819_v31 = vadd.f32 %v3842_v29, %v4633_v6  ;;  %v810_v32 = vpop.f32.mrb[7].mxu1  ;;  %3883 = vmatprep.mubr.bf16.mxu0 %v1014_v27  ;;  %vm924_vm4 = vcmp.ge.f32.partialorder %v816_v25, 0.0 }
 0x1ec   : > { %v954_v33 = vmul.f32 0.01, %v808_v28  ;;  %v811_v34 = vadd.f32 %v810_v32, %v4633_v6  ;;  %3884 = vmatmul.mubr.bf16.vlgmr.msra.gmra.mrb[32].mxu0 %v1015_v21  ;;  %vm922_vm5 = vcmp.ge.f32.partialorder %v808_v28, 0.0 }
 0x1ed   : > { %vm925_vm6 = vcmp.ge.f32.partialorder %v819_v31, 0.0  ;;  %v957_v35 = vmul.f32 0.01, %v819_v31  ;;  %v988_v37 = vsel %vm924_vm4, %v816_v25, %v956_v30 }
 0x1ee   : > { %vm923_vm7 = vcmp.ge.f32.partialorder %v811_v34, 0.0  ;;  %v955_v36 = vmul.f32 0.01, %v811_v34  ;;  %v986_v44 = vsel %vm922_vm5, %v808_v28, %v954_v33 }
 0x1ef   : > { %v989_v38 = vsel %vm925_vm6, %v819_v31, %v957_v35 }
 0x1f0   : > { %v3845_v41 = vpop.f32.mrb[8].mxu1  ;;  %v987_v45 = vsel %vm923_vm7, %v811_v34, %v955_v36  ;;  %v1017_v46 = vpack.c.bf16 %v989_v38, %v988_v37 }
 0x1f1   : > { %v832_v47 = vadd.f32 %v3845_v41, %v4633_v6  ;;  %v823_v48 = vpop.f32.mrb[9].mxu1  ;;  %v1016_v49 = vpack.c.bf16 %v987_v45, %v986_v44 }
 0x1f2   : > { %v824_v50 = vadd.f32 %v823_v48, %v4633_v6  ;;  %v3846_v51 = vpop.f32.mrb[10].mxu1 }
 0x1f3   : > { %v960_v52 = vmul.f32 0.01, %v832_v47  ;;  %v835_v53 = vadd.f32 %v3846_v51, %v4633_v6  ;;  %v826_v54 = vpop.f32.mrb[11].mxu1  ;;  %3887 = vmatprep.mubr.bf16.mxu0 %v1016_v49  ;;  %vm928_vm8 = vcmp.ge.f32.partialorder %v832_v47, 0.0 }
 0x1f4   : > { %v958_v55 = vmul.f32 0.01, %v824_v50  ;;  %v827_v56 = vadd.f32 %v826_v54, %v4633_v6  ;;  %3888 = vmatmul.mubr.bf16.gmra.mrb[36].mxu0 %v1017_v46  ;;  %vm926_vm9 = vcmp.ge.f32.partialorder %v824_v50, 0.0 }
 0x1f5   : > { %vm929_vm10 = vcmp.ge.f32.partialorder %v835_v53, 0.0  ;;  %v961_v57 = vmul.f32 0.01, %v835_v53  ;;  %v992_v59 = vsel %vm928_vm8, %v832_v47, %v960_v52 }
 0x1f6   : > { %vm927_vm11 = vcmp.ge.f32.partialorder %v827_v56, 0.0  ;;  %v959_v58 = vmul.f32 0.01, %v827_v56  ;;  %v990_v62 = vsel %vm926_vm9, %v824_v50, %v958_v55 }
 0x1f7   : > { %v993_v60 = vsel %vm929_vm10, %v835_v53, %v961_v57 }
 0x1f8   : > { %v3849_v61 = vpop.f32.mrb[12].mxu1  ;;  %v991_v63 = vsel %vm927_vm11, %v827_v56, %v959_v58  ;;  %v1019_v0 = vpack.c.bf16 %v993_v60, %v992_v59 }
 0x1f9   : > { %v848_v1 = vadd.f32 %v3849_v61, %v4633_v6  ;;  %v839_v2 = vpop.f32.mrb[13].mxu1  ;;  %v1018_v3 = vpack.c.bf16 %v991_v63, %v990_v62 }
 0x1fa   : > { %v840_v4 = vadd.f32 %v839_v2, %v4633_v6  ;;  %v3850_v43 = vpop.f32.mrb[14].mxu1 }
 0x1fb   : > { %v964_v5 = vmul.f32 0.01, %v848_v1  ;;  %v851_v7 = vadd.f32 %v3850_v43, %v4633_v6  ;;  %v842_v8 = vpop.f32.mrb[15].mxu1  ;;  %3891 = vmatprep.mubr.bf16.mxu0 %v1018_v3  ;;  %vm932_vm12 = vcmp.ge.f32.partialorder %v848_v1, 0.0 }
 0x1fc   : > { %v962_v9 = vmul.f32 0.01, %v840_v4  ;;  %v843_v10 = vadd.f32 %v842_v8, %v4633_v6  ;;  %3892 = vmatmul.mubr.bf16.gmra.mrb[40].mxu0 %v1019_v0  ;;  %vm930_vm13 = vcmp.ge.f32.partialorder %v840_v4, 0.0 }
 0x1fd   : > { %vm933_vm14 = vcmp.ge.f32.partialorder %v851_v7, 0.0  ;;  %v965_v11 = vmul.f32 0.01, %v851_v7  ;;  %v996_v13 = vsel %vm932_vm12, %v848_v1, %v964_v5 }
 0x1fe   : > { %vm931_vm15 = vcmp.ge.f32.partialorder %v843_v10, 0.0  ;;  %v963_v12 = vmul.f32 0.01, %v843_v10  ;;  %v994_v16 = vsel %vm930_vm13, %v840_v4, %v962_v9 }
 0x1ff   : > { %v997_v14 = vsel %vm933_vm14, %v851_v7, %v965_v11 }
 0x200   : > { %v3853_v15 = vpop.f32.mrb[16].mxu1  ;;  %v995_v17 = vsel %vm931_vm15, %v843_v10, %v963_v12  ;;  %v1021_v18 = vpack.c.bf16 %v997_v14, %v996_v13 }
 0x201   : > { %v864_v19 = vadd.f32 %v3853_v15, %v4633_v6  ;;  %v855_v20 = vpop.f32.mrb[17].mxu1  ;;  %v1020_v21 = vpack.c.bf16 %v995_v17, %v994_v16 }
 0x202   : > { %v856_v22 = vadd.f32 %v855_v20, %v4633_v6  ;;  %v3854_v23 = vpop.f32.mrb[18].mxu1 }
 0x203   : > { %v968_v24 = vmul.f32 0.01, %v864_v19  ;;  %v867_v25 = vadd.f32 %v3854_v23, %v4633_v6  ;;  %v858_v26 = vpop.f32.mrb[19].mxu1  ;;  %3895 = vmatprep.mubr.bf16.mxu0 %v1020_v21  ;;  %vm936_vm0 = vcmp.ge.f32.partialorder %v864_v19, 0.0 }
 0x204   : > { %v966_v27 = vmul.f32 0.01, %v856_v22  ;;  %v859_v28 = vadd.f32 %v858_v26, %v4633_v6  ;;  %3896 = vmatmul.mubr.bf16.gmra.mrb[44].mxu0 %v1021_v18  ;;  %vm934_vm1 = vcmp.ge.f32.partialorder %v856_v22, 0.0 }
 0x205   : > { %vm937_vm2 = vcmp.ge.f32.partialorder %v867_v25, 0.0  ;;  %v969_v29 = vmul.f32 0.01, %v867_v25  ;;  %v1000_v31 = vsel %vm936_vm0, %v864_v19, %v968_v24 }
 0x206   : > { %vm935_vm3 = vcmp.ge.f32.partialorder %v859_v28, 0.0  ;;  %v967_v30 = vmul.f32 0.01, %v859_v28  ;;  %v998_v34 = vsel %vm934_vm1, %v856_v22, %v966_v27 }
 0x207   : > { %v1001_v32 = vsel %vm937_vm2, %v867_v25, %v969_v29 }
 0x208   : > { %v3857_v33 = vpop.f32.mrb[20].mxu1  ;;  %v999_v35 = vsel %vm935_vm3, %v859_v28, %v967_v30  ;;  %v1023_v36 = vpack.c.bf16 %v1001_v32, %v1000_v31  ;;  %v4108_v31 = vld [vmem:[%s6290_s1 + $0xc8] sm:$0xff]   ;;  %v4110_v32 = vld [vmem:[%s6290_s1 + $0xd8] sm:$0xff]  }
 0x209   : > { %v880_v37 = vadd.f32 %v3857_v33, %v4633_v6  ;;  %v871_v38 = vpop.f32.mrb[21].mxu1  ;;  %v1022_v41 = vpack.c.bf16 %v999_v35, %v998_v34  ;;  %3917 = vmatprep.subr.bf16.mxu1 %v4108_v31  ;;  %v4111_v33 = vld [vmem:[%s6290_s1 + $0xe0] sm:$0xff]   ;;  %v4112_v34 = vld [vmem:[%s6290_s1 + $0xe8] sm:$0xff]   ;;  %v4113_v35 = vld [vmem:[%s6290_s1 + $0xf0] sm:$0xff]  }
 0x20a   : > { %v872_v44 = vadd.f32 %v871_v38, %v4633_v6  ;;  %v3858_v45 = vpop.f32.mrb[22].mxu1  ;;  %3918 = vmatpush3.bf16.msra.mxu1 %v4108_v31  ;;  %v4114_v38 = vld [vmem:[%s6290_s1 + $0xf8] sm:$0xff]  }
 0x20b   : > { %v972_v46 = vmul.f32 0.01, %v880_v37  ;;  %v883_v47 = vadd.f32 %v3858_v45, %v4633_v6  ;;  %v874_v48 = vpop.f32.mrb[23].mxu1  ;;  %3899 = vmatprep.mubr.bf16.mxu0 %v1022_v41  ;;  %vm940_vm4 = vcmp.ge.f32.partialorder %v880_v37, 0.0 }
 0x20c   : > { %v970_v49 = vmul.f32 0.01, %v872_v44  ;;  %v875_v50 = vadd.f32 %v874_v48, %v4633_v6  ;;  %3900 = vmatmul.mubr.bf16.gmra.mrb[48].mxu0 %v1023_v36  ;;  %vm938_vm5 = vcmp.ge.f32.partialorder %v872_v44, 0.0  ;;  %v1049_v36 = vsub.s32 2, %v4582_v40 }
 0x20d   : > { %vm941_vm6 = vcmp.ge.f32.partialorder %v883_v47, 0.0  ;;  %v973_v51 = vmul.f32 0.01, %v883_v47  ;;  %v1004_v53 = vsel %vm940_vm4, %v880_v37, %v972_v46 }
 0x20e   : > { %vm939_vm7 = vcmp.ge.f32.partialorder %v875_v50, 0.0  ;;  %v971_v52 = vmul.f32 0.01, %v875_v50  ;;  %v1002_v56 = vsel %vm938_vm5, %v872_v44, %v970_v49  ;;  %v4687_v37 = vrot.slane %v4588_v42, %v1049_v36 }
 0x20f   : > { %v1005_v54 = vsel %vm941_vm6, %v883_v47, %v973_v51 }
 0x210   : > { %v3861_v55 = vpop.f32.mrb[24].mxu1  ;;  %v1003_v57 = vsel %vm939_vm7, %v875_v50, %v971_v52  ;;  %v1025_v58 = vpack.c.bf16 %v1005_v54, %v1004_v53 }
 0x211   : > { %v896_v59 = vadd.f32 %v3861_v55, %v4633_v6  ;;  %v887_v60 = vpop.f32.mrb[25].mxu1  ;;  %v1024_v61 = vpack.c.bf16 %v1003_v57, %v1002_v56 }
 0x212   : > { %v888_v62 = vadd.f32 %v887_v60, %v4633_v6  ;;  %v3862_v63 = vpop.f32.mrb[26].mxu1 }
 0x213   : > { %v976_v0 = vmul.f32 0.01, %v896_v59  ;;  %v899_v1 = vadd.f32 %v3862_v63, %v4633_v6  ;;  %v890_v2 = vpop.f32.mrb[27].mxu1  ;;  %3903 = vmatprep.mubr.bf16.mxu0 %v1024_v61  ;;  %vm944_vm8 = vcmp.ge.f32.partialorder %v896_v59, 0.0 }
 0x214   : > { %v974_v3 = vmul.f32 0.01, %v888_v62  ;;  %v891_v4 = vadd.f32 %v890_v2, %v4633_v6  ;;  %3904 = vmatmul.mubr.bf16.gmra.mrb[52].mxu0 %v1025_v58  ;;  %vm942_vm9 = vcmp.ge.f32.partialorder %v888_v62, 0.0 }
 0x215   : > { %vm945_vm10 = vcmp.ge.f32.partialorder %v899_v1, 0.0  ;;  %v977_v43 = vmul.f32 0.01, %v899_v1  ;;  %v1008_v7 = vsel %vm944_vm8, %v896_v59, %v976_v0 }
 0x216   : > { %vm943_vm11 = vcmp.ge.f32.partialorder %v891_v4, 0.0  ;;  %v975_v5 = vmul.f32 0.01, %v891_v4  ;;  %v1006_v10 = vsel %vm942_vm9, %v888_v62, %v974_v3 }
 0x217   : > { %v1009_v8 = vsel %vm945_vm10, %v899_v1, %v977_v43 }
 0x218   : > { %v3865_v9 = vpop.f32.mrb[28].mxu1  ;;  %v1007_v11 = vsel %vm943_vm11, %v891_v4, %v975_v5  ;;  %v1027_v12 = vpack.c.bf16 %v1009_v8, %v1008_v7 }
 0x219   : > { %v912_v13 = vadd.f32 %v3865_v9, %v4633_v6  ;;  %v903_v14 = vpop.f32.mrb[29].mxu1  ;;  %v1026_v15 = vpack.c.bf16 %v1007_v11, %v1006_v10 }
 0x21a   : > { %v904_v16 = vadd.f32 %v903_v14, %v4633_v6  ;;  %v3866_v17 = vpop.f32.mrb[30].mxu1 }
 0x21b   : > { %v980_v18 = vmul.f32 0.01, %v912_v13  ;;  %v915_v19 = vadd.f32 %v3866_v17, %v4633_v6  ;;  %v906_v20 = vpop.f32.mrb[31].mxu1  ;;  %3907 = vmatprep.mubr.bf16.mxu0 %v1026_v15  ;;  %vm948_vm12 = vcmp.ge.f32.partialorder %v912_v13, 0.0 }
 0x21c   : > { %v978_v21 = vmul.f32 0.01, %v904_v16  ;;  %v907_v22 = vadd.f32 %v906_v20, %v4633_v6  ;;  %3908 = vmatmul.mubr.bf16.gmra.mrb[56].mxu0 %v1027_v12  ;;  %vm946_vm13 = vcmp.ge.f32.partialorder %v904_v16, 0.0  ;;  %v4109_v6 = vld [vmem:[%s6290_s1 + $0xd0] sm:$0xff]  }
 0x21d   : > { %vm949_vm14 = vcmp.ge.f32.partialorder %v915_v19, 0.0  ;;  %v981_v23 = vmul.f32 0.01, %v915_v19  ;;  %v1012_v25 = vsel %vm948_vm12, %v912_v13, %v980_v18  ;;  %3919 = vmatprep.subr.bf16.mxu1 %v4109_v6  ;;  %v4725_v12 = vld [vmem:[%s4503_s24 + $0x14] ss:$8 sps:$4 sm:$0xff]  }
 0x21e   : > { %vm947_vm15 = vcmp.ge.f32.partialorder %v907_v22, 0.0  ;;  %v979_v24 = vmul.f32 0.01, %v907_v22  ;;  %v1010_v27 = vsel %vm946_vm13, %v904_v16, %v978_v21  ;;  %3920 = vmatpush3.bf16.msra.mxu1 %v4109_v6  ;;  %v4731_v21 = vand.u32 127, %v245_v39 }
 0x21f   : > { %v1013_v26 = vsel %vm949_vm14, %v915_v19, %v981_v23  ;;  %3921 = vmatprep.subr.bf16.mxu1 %v4110_v32 }
 0x220   : > { %v1011_v28 = vsel %vm947_vm15, %v907_v22, %v979_v24  ;;  %v1029_v29 = vpack.c.bf16 %v1013_v26, %v1012_v25  ;;  %6339 = vst [vmem:[#allocation6_spill] sm:$0xff] %v4731_v21  ;;  %v1776_v22 = vunpack.c.l.bf16 %v4725_v12  ;;  %vm247_vm0 = vcmp.ge.s32.totalorder %v4731_v21, 32 }
 0x221   : > { %v1028_v30 = vpack.c.bf16 %v1011_v28, %v1010_v27  ;;  %v1777_v27 = vunpack.c.h.bf16 %v4725_v12  ;;  %vm248_vm1 = vcmp.lt.s32.totalorder %v4731_v21, 64 }
 0x222   : > { %3922 = vmatpush3.bf16.msra.mxu1 %v4110_v32  ;;  %vm4811_vm7 = vmand %vm247_vm0, %vm248_vm1 }
 0x223   : > { %3911 = vmatprep.mubr.bf16.mxu0 %v1028_v30  ;;  %3923 = vmatprep.subr.bf16.mxu1 %v4111_v33 }
 0x224   : > { %3912 = vmatmul.mubr.bf16.gmra.mrb[60].mxu0 %v1029_v29 }
 0x226   : > { %3924 = vmatpush3.bf16.msra.mxu1 %v4111_v33 }
 0x227   : > { %3925 = vmatprep.subr.bf16.mxu1 %v4112_v34 }
 0x22a   : > { %3926 = vmatpush3.bf16.msra.mxu1 %v4112_v34 }
 0x22b   : > { %3927 = vmatprep.subr.bf16.mxu1 %v4113_v35 }
 0x22e   : > { %3928 = vmatpush3.bf16.msra.mxu1 %v4113_v35 }
 0x22f   : > { %3929 = vmatprep.subr.bf16.mxu1 %v4114_v38 }
 0x232   : > { %3930 = vmatpush3.bf16.msra.mxu1 %v4114_v38 }
 0x2bf   : > { %v3885_v41 = vpop.f32.mrb[32].mxu0 }
 0x2c0   : > { %v4693_v44 = vadd.f32 %v3885_v41, %v4687_v37  ;;  %v1133_v45 = vpop.f32.mrb[33].mxu0 }
 0x2c1   : > { %v4696_v46 = vadd.f32 %v1133_v45, %v4687_v37  ;;  %v3886_v47 = vpop.f32.mrb[34].mxu0 }
 0x2c2   : > { %v1294_v48 = vand.u32 2147483647, %v4693_v44  ;;  %v4700_v42 = vadd.f32 %v3886_v47, %v4687_v37  ;;  %v1136_v49 = vpop.f32.mrb[35].mxu0  ;;  %v1262_v26 = vmax.f32 %v4693_v44, 0.0 }
 0x2c3   : > { %v1292_v50 = vand.u32 2147483647, %v4696_v46  ;;  %v4704_v51 = vadd.f32 %v1136_v49, %v4687_v37  ;;  %v1260_v39 = vmax.f32 %v4696_v46, 0.0 }
 0x2c4   : > { %v1326_v52 = vsub.f32 0.0, %v1294_v48  ;;  %v1295_v53 = vand.u32 2147483647, %v4700_v42  ;;  %v1263_v35 = vmax.f32 %v4700_v42, 0.0 }
 0x2c5   : > { %v1324_v54 = vsub.f32 0.0, %v1292_v50  ;;  %v1293_v55 = vand.u32 2147483647, %v4704_v51  ;;  %v1261_v36 = vmax.f32 %v4704_v51, 0.0 }
 0x2c6   : > { %v1360_v56 = vmul.f32 1.442695, %v1326_v52  ;;  %v1327_v57 = vsub.f32 0.0, %v1295_v53 }
 0x2c7   : > { %v1356_v58 = vmul.f32 1.442695, %v1324_v54  ;;  %v1325_v59 = vsub.f32 0.0, %v1293_v55  ;;  %v3889_v60 = vpop.f32.mrb[36].mxu0 }
 0x2c8   : > { %4131 = vpow2.f32 %v1360_v56  ;;  %v1362_v61 = vmul.f32 1.442695, %v1327_v57  ;;  %v4709_v62 = vadd.f32 %v3889_v60, %v4687_v37  ;;  %v1149_v63 = vpop.f32.mrb[37].mxu0 }
 0x2c9   : > { %4133 = vpow2.f32 %v1356_v58  ;;  %v1358_v0 = vmul.f32 1.442695, %v1325_v59  ;;  %v4712_v1 = vadd.f32 %v1149_v63, %v4687_v37  ;;  %v3890_v2 = vpop.f32.mrb[38].mxu0 }
 0x2ca   : > { %6336 = vst [vmem:[#allocation3_spill] sm:$0xff] %v4709_v62  ;;  %4135 = vpow2.f32 %v1362_v61  ;;  %v1298_v3 = vand.u32 2147483647, %v4709_v62  ;;  %v4716_v4 = vadd.f32 %v3890_v2, %v4687_v37  ;;  %v1152_v43 = vpop.f32.mrb[39].mxu0  ;;  %v1266_v50 = vmax.f32 %v4709_v62, 0.0 }
 0x2cb   : > { %4137 = vpow2.f32 %v1358_v0  ;;  %v1296_v5 = vand.u32 2147483647, %v4712_v1  ;;  %v4720_v7 = vadd.f32 %v1152_v43, %v4687_v37  ;;  %v1264_v53 = vmax.f32 %v4712_v1, 0.0 }
 0x2cc   : > { %6337 = vst [vmem:[#allocation4_spill] sm:$0xff] %v4716_v4  ;;  %v1330_v8 = vsub.f32 0.0, %v1298_v3  ;;  %v1299_v9 = vand.u32 2147483647, %v4716_v4  ;;  %v1267_v54 = vmax.f32 %v4716_v4, 0.0 }
 0x2cd   : > { %v1328_v10 = vsub.f32 0.0, %v1296_v5  ;;  %v1297_v11 = vand.u32 2147483647, %v4720_v7  ;;  %v1265_v58 = vmax.f32 %v4720_v7, 0.0 }
 0x2ce   : > { %v1368_v13 = vmul.f32 1.442695, %v1330_v8  ;;  %v1331_v14 = vsub.f32 0.0, %v1299_v9 }
 0x2cf   : > { %v1364_v15 = vmul.f32 1.442695, %v1328_v10  ;;  %v1329_v16 = vsub.f32 0.0, %v1297_v11  ;;  %v3893_v17 = vpop.f32.mrb[40].mxu0 }
 0x2d0   : > { %4139 = vpow2.f32 %v1368_v13  ;;  %v1370_v18 = vmul.f32 1.442695, %v1331_v14  ;;  %v4728_v19 = vadd.f32 %v3893_v17, %v4687_v37  ;;  %v1165_v20 = vpop.f32.mrb[41].mxu0 }
 0x2d1   : > { %4141 = vpow2.f32 %v1364_v15  ;;  %v1366_v23 = vmul.f32 1.442695, %v1329_v16  ;;  %v3894_v24 = vpop.f32.mrb[42].mxu0  ;;  %v4758_v59 = vadd.f32 %v1165_v20, %v4687_v37 }
 0x2d2   : > { %6338 = vst [vmem:[#allocation5_spill] sm:$0xff] %v4728_v19  ;;  %v4132_v25 = vpop.eup %4131  ;;  %4143 = vpow2.f32 %v1370_v18  ;;  %v1302_v28 = vand.u32 2147483647, %v4728_v19  ;;  %v4737_v29 = vpop.f32.mrb[43].mxu0  ;;  %v4775_v9 = vadd.f32 %v3894_v24, %v4687_v37 }
 0x2d3   : > { %v4134_v30 = vpop.eup %4133  ;;  %v1438_v31 = vadd.f32 1.0, %v4132_v25  ;;  %v1441_v6 = vmul.f32 -0.5, %v4132_v25  ;;  %4145 = vpow2.f32 %v1366_v23  ;;  %v1444_v41 = vand.u32 2147483647, %v4132_v25  ;;  %6340 = vst [vmem:[#allocation7_spill] sm:$0xff] %v4758_v59 }
 0x2d4   : > { %v4740_v32 = vpop.eup %4135  ;;  %v1420_v33 = vadd.f32 1.0, %v4134_v30  ;;  %v1423_v34 = vmul.f32 -0.5, %v4134_v30  ;;  %v1334_v47 = vsub.f32 0.0, %v1302_v28  ;;  %v1426_v49 = vand.u32 2147483647, %v4134_v30  ;;  %6345 = vst [vmem:[#allocation8_spill] sm:$0xff] %v4775_v9 }
 0x2d5   : > { %v4744_v38 = vpop.eup %4137  ;;  %4147 = vlog2.f32 %v1438_v31  ;;  %v1447_v45 = vadd.f32 1.0, %v4740_v32  ;;  %v1442_v48 = vadd.f32 1.0, %v1441_v6  ;;  %v1450_v57 = vmul.f32 -0.5, %v4740_v32 }
 0x2d6   : > { %4149 = vlog2.f32 %v1420_v33  ;;  %v1429_v52 = vadd.f32 1.0, %v4744_v38  ;;  %v1424_v56 = vadd.f32 1.0, %v1423_v34  ;;  %vm4762_vm2 = vcmp.lt.f32.partialorder %v1444_v41, 0.0004427343 }
 0x2d7   : > { %4151 = vlog2.f32 %v1447_v45  ;;  %v4753_v55 = vpop.f32.mrb[44].mxu0  ;;  %v1432_v63 = vmul.f32 -0.5, %v4744_v38  ;;  %v1376_v0 = vmul.f32 1.442695, %v1334_v47  ;;  %v1443_v43 = vmul.f32 %v4132_v25, %v1442_v48 }
 0x2d8   : > { %v4760_v60 = vpop.f32.mrb[45].mxu0  ;;  %4153 = vlog2.f32 %v1429_v52  ;;  %vm4769_vm3 = vcmp.lt.f32.partialorder %v1426_v49, 0.0004427343  ;;  %v1453_v8 = vand.u32 2147483647, %v4740_v32  ;;  %v1425_v17 = vmul.f32 %v4134_v30, %v1424_v56 }
 0x2d9   : > { %v4767_v2 = vpop.f32.mrb[46].mxu0  ;;  %v1435_v13 = vand.u32 2147483647, %v4744_v38  ;;  %4155 = vpow2.f32 %v1376_v0  ;;  %v1451_v18 = vadd.f32 1.0, %v1450_v57  ;;  %v1433_v28 = vadd.f32 1.0, %v1432_v63 }
 0x2da   : > { %v4140_v3 = vpop.eup %4139  ;;  %v4777_v10 = vpop.f32.mrb[47].mxu0  ;;  %vm4785_vm4 = vcmp.lt.f32.partialorder %v1453_v8, 0.0004427343  ;;  %v1300_v63 = vand.u32 2147483647, %v4758_v59 }
 0x2db   : > { %v4142_v11 = vpop.eup %4141  ;;  %v1474_v14 = vadd.f32 1.0, %v4140_v3  ;;  %v1477_v15 = vmul.f32 -0.5, %v4140_v3  ;;  %v1480_v24 = vand.u32 2147483647, %v4140_v3  ;;  %vm4790_vm5 = vcmp.lt.f32.partialorder %v1435_v13, 0.0004427343 }
 0x2dc   : > { %v4780_v16 = vpop.eup %4143  ;;  %v1456_v20 = vadd.f32 1.0, %v4142_v11  ;;  %v1459_v23 = vmul.f32 -0.5, %v4142_v11  ;;  %v1462_v34 = vand.u32 2147483647, %v4142_v11  ;;  %v1452_v56 = vmul.f32 %v4740_v32, %v1451_v18  ;;  %v4125_v32 = vld [vmem:[%s6290_s1 + $0x150] sm:$0xff]  }
 0x2dd   : > { %v4782_v25 = vpop.eup %4145  ;;  %4157 = vlog2.f32 %v1474_v14  ;;  %v1483_v31 = vadd.f32 1.0, %v4780_v16  ;;  %v1478_v33 = vadd.f32 1.0, %v1477_v15  ;;  %v1486_v45 = vmul.f32 -0.5, %v4780_v16 }
 0x2de   : > { %4159 = vlog2.f32 %v1456_v20  ;;  %v1465_v47 = vadd.f32 1.0, %v4782_v25  ;;  %v1460_v57 = vadd.f32 1.0, %v1459_v23  ;;  %v1434_v14 = vmul.f32 %v4744_v38, %v1433_v28 }
 0x2df   : > { %v4148_v41 = vpop.eup %4147  ;;  %4161 = vlog2.f32 %v1483_v31  ;;  %v4796_v48 = vpop.f32.mrb[48].mxu0  ;;  %vm4803_vm6 = vcmp.lt.f32.partialorder %v1480_v24, 0.0004427343  ;;  %v1479_v23 = vmul.f32 %v4140_v3, %v1478_v33  ;;  %vm4817_vm8 = vcmp.lt.f32.partialorder %v1462_v34, 0.0004427343 }
 0x2e0   : > { %v4150_v49 = vpop.eup %4149  ;;  %v1440_v52 = vmul.f32 0.6931472, %v4148_v41  ;;  %v4800_v0 = vpop.f32.mrb[49].mxu0  ;;  %4163 = vlog2.f32 %v1465_v47  ;;  %v1489_v28 = vand.u32 2147483647, %v4780_v16  ;;  %v1468_v33 = vmul.f32 -0.5, %v4782_v25 }
 0x2e1   : > { %v4152_v8 = vpop.eup %4151  ;;  %v1422_v13 = vmul.f32 0.6931472, %v4150_v49  ;;  %v4822_v24 = vpop.f32.mrb[50].mxu0 }
 0x2e2   : > { %v1446_v18 = vsel %vm4762_vm2, %v1443_v43, %v1440_v52  ;;  %v1449_v20 = vmul.f32 0.6931472, %v4152_v8  ;;  %v4154_v31 = vpop.eup %4153  ;;  %v1487_v43 = vadd.f32 1.0, %v1486_v45  ;;  %v4834_v34 = vpop.f32.mrb[51].mxu0  ;;  %v1461_v52 = vmul.f32 %v4142_v11, %v1460_v57 }
 0x2e3   : > { %v1710_v61 = vadd.f32 %v1446_v18, %v1262_v26  ;;  %v1428_v3 = vsel %vm4769_vm3, %v1425_v17, %v1422_v13  ;;  %v1431_v49 = vmul.f32 0.6931472, %v4154_v31  ;;  %v4840_v8 = vpop.eup %4155  ;;  %v1471_v17 = vand.u32 2147483647, %v4782_v25 }
 0x2e4   : > { %v1708_v41 = vadd.f32 %v1428_v3, %v1260_v39  ;;  %v1455_v47 = vsel %vm4785_vm4, %v1452_v56, %v1449_v20  ;;  %v1332_v45 = vsub.f32 0.0, %v1300_v63  ;;  %v1510_v6 = vadd.f32 1.0, %v4840_v8 }
 0x2e5   : > { %v1744_v26 = vsel %vm4811_vm7, %v1710_v61, %v4693_v44  ;;  %v1711_v5 = vadd.f32 %v1455_v47, %v1263_v35  ;;  %v1437_v11 = vsel %vm4790_vm5, %v1434_v14, %v1431_v49  ;;  %v1488_v63 = vmul.f32 %v4780_v16, %v1487_v43 }
 0x2e6   : > { %v1808_v13 = vmul.f32 0.5, %v1744_v26  ;;  %3380 = vst [vmem:[%s4827_s13 + $0x28] sm:$0xff] %v1744_v26  ;;  %v1742_v39 = vsel %vm4811_vm7, %v1708_v41, %v4696_v46  ;;  %v1709_v57 = vadd.f32 %v1437_v11, %v1261_v36  ;;  %v1469_v18 = vadd.f32 1.0, %v1468_v33 }
 0x2e7   : > { %v4158_v56 = vpop.eup %4157  ;;  %3378 = vst [vmem:[%s4827_s13 + $0x8] sm:$0xff] %v1742_v39  ;;  %v1745_v35 = vsel %vm4811_vm7, %v1711_v5, %v4700_v42  ;;  %v4862_v20 = vpop.f32.mrb[52].mxu0  ;;  %4165 = vlog2.f32 %v1510_v6  ;;  %v1806_v47 = vmul.f32 0.5, %v1742_v39  ;;  %v1372_v16 = vmul.f32 1.442695, %v1332_v45 }
 0x2e8   : > { %v4160_v31 = vpop.eup %4159  ;;  %v1842_v30 = vmul.f32 1.442695, %v1808_v13  ;;  %v1809_v14 = vmul.f32 0.5, %v1745_v35  ;;  %3381 = vst [vmem:[%s4827_s13 + $0x38] sm:$0xff] %v1745_v35  ;;  %v1476_v61 = vmul.f32 0.6931472, %v4158_v56  ;;  %v1743_v36 = vsel %vm4811_vm7, %v1709_v57, %v4704_v51 }
 0x2e9   : > { %v4865_v3 = vpop.f32.mrb[53].mxu0  ;;  %v4162_v41 = vpop.eup %4161  ;;  %v1458_v49 = vmul.f32 0.6931472, %v4160_v31  ;;  %3379 = vst [vmem:[%s4827_s13 + $0x18] sm:$0xff] %v1743_v36  ;;  %v1513_v5 = vmul.f32 -0.5, %v4840_v8  ;;  %v1807_v11 = vmul.f32 0.5, %v1743_v36  ;;  %v1470_v31 = vmul.f32 %v4782_v25, %v1469_v18 }
 0x2ea   : > { %v4870_v43 = vpop.f32.mrb[54].mxu0  ;;  %4167 = vpow2.f32 %v1842_v30  ;;  %v1844_v33 = vmul.f32 1.442695, %v1809_v14  ;;  %v1482_v26 = vsel %vm4803_vm6, %v1479_v23, %v1476_v61  ;;  %v4164_v39 = vpop.eup %4163  ;;  %v1485_v56 = vmul.f32 0.6931472, %v4162_v41 }
 0x2eb   : > { %v4876_v13 = vpop.f32.mrb[55].mxu0  ;;  %v1714_v6 = vadd.f32 %v1482_v26, %v1266_v50  ;;  %v1464_v45 = vsel %vm4817_vm8, %v1461_v52, %v1458_v49  ;;  %vm1490_vm9 = vcmp.lt.f32.partialorder %v1489_v28, 0.0004427343  ;;  %v1467_v23 = vmul.f32 0.6931472, %v4164_v39 }
 0x2ec   : > { %4169 = vpow2.f32 %v1844_v33  ;;  %v1712_v15 = vadd.f32 %v1464_v45, %v1264_v53  ;;  %v1491_v57 = vsel %vm1490_vm9, %v1488_v63, %v1485_v56  ;;  %vm1472_vm10 = vcmp.lt.f32.partialorder %v1471_v17, 0.0004427343 }
 0x2ed   : > { %v1748_v35 = vsel %vm4811_vm7, %v1714_v6, %v4709_v62  ;;  %v1838_v50 = vmul.f32 1.442695, %v1806_v47  ;;  %v1715_v53 = vadd.f32 %v1491_v57, %v1267_v54  ;;  %v1514_v28 = vadd.f32 1.0, %v1513_v5 }
 0x2ee   : > { %3384 = vst [vmem:[%s4827_s13 + $0x68] sm:$0xff] %v1748_v35  ;;  %v1746_v38 = vsel %vm4811_vm7, %v1712_v15, %v4712_v1  ;;  %v1840_v52 = vmul.f32 1.442695, %v1807_v11  ;;  %v1812_v30 = vmul.f32 0.5, %v1748_v35  ;;  %v1473_v14 = vsel %vm1472_vm10, %v1470_v31, %v1467_v23 }
 0x2ef   : > { %3382 = vst [vmem:[%s4827_s13 + $0x48] sm:$0xff] %v1746_v38  ;;  %4171 = vpow2.f32 %v1372_v16  ;;  %v4895_v63 = vpop.f32.mrb[56].mxu0  ;;  %v1749_v25 = vsel %vm4811_vm7, %v1715_v53, %v4716_v4  ;;  %v1713_v17 = vadd.f32 %v1473_v14, %v1265_v58  ;;  %v1516_v18 = vand.u32 2147483647, %v4840_v8 }
 0x2f0   : > { %v1303_v61 = vand.u32 2147483647, %v4775_v9  ;;  %v4904_v54 = vpop.f32.mrb[57].mxu0  ;;  %v1810_v41 = vmul.f32 0.5, %v1746_v38  ;;  %3385 = vst [vmem:[%s4827_s13 + $0x78] sm:$0xff] %v1749_v25  ;;  %v1270_v47 = vmax.f32 %v4728_v19, 0.0  ;;  %v4911_v49 = vadd.f32 %v4737_v29, %v4687_v37 }
 0x2f1   : > { %v1268_v36 = vmax.f32 %v4758_v59, 0.0  ;;  %v4913_v16 = vpop.f32.mrb[58].mxu0  ;;  %v4166_v58 = vpop.eup %4165  ;;  %4173 = vpow2.f32 %v1838_v50  ;;  %v1747_v33 = vsel %vm4811_vm7, %v1713_v17, %v4720_v7  ;;  %v4920_v5 = vadd.f32 %v4753_v55, %v4687_v37 }
 0x2f2   : > { %v1335_v26 = vsub.f32 0.0, %v1303_v61  ;;  %v4922_v39 = vpop.f32.mrb[59].mxu0  ;;  %4175 = vpow2.f32 %v1840_v52  ;;  %v1850_v11 = vmul.f32 1.442695, %v1812_v30  ;;  %3383 = vst [vmem:[%s4827_s13 + $0x58] sm:$0xff] %v1747_v33  ;;  %v1515_v6 = vmul.f32 %v4840_v8, %v1514_v28 }
 0x2f3   : > { %6356 = vst [vmem:[#allocation9_spill] sm:$0xff] %v4920_v5  ;;  %v1512_v29 = vmul.f32 0.6931472, %v4166_v58  ;;  %vm1517_vm11 = vcmp.lt.f32.partialorder %v1516_v18, 0.0004427343  ;;  %v4929_v23 = vadd.f32 %v4760_v60, %v4687_v37  ;;  %v1813_v57 = vmul.f32 0.5, %v1749_v25 }
 0x2f4   : > { %v4168_v45 = vpop.eup %4167  ;;  %v1378_v56 = vmul.f32 1.442695, %v1335_v26  ;;  %v1301_v15 = vand.u32 2147483647, %v4911_v49  ;;  %v1846_v35 = vmul.f32 1.442695, %v1810_v41  ;;  %v4964_v26 = vadd.f32 %v4777_v10, %v4687_v37 }
 0x2f5   : > { %v1904_v55 = vmul.f32 %v4168_v45, %v1776_v22  ;;  %v1518_v31 = vsel %vm1517_vm11, %v1515_v6, %v1512_v29  ;;  %v1306_v8 = vand.u32 2147483647, %v4920_v5  ;;  %v1811_v52 = vmul.f32 0.5, %v1747_v33 }
 0x2f6   : > { %v4170_v50 = vpop.eup %4169  ;;  %v1718_v38 = vadd.f32 %v1518_v31, %v1270_v47  ;;  %4177 = vpow2.f32 %v1378_v56  ;;  %v1333_v53 = vsub.f32 0.0, %v1301_v15  ;;  %v1304_v17 = vand.u32 2147483647, %v4929_v23 }
 0x2f7   : > { %v1936_v28 = vsel %vm4811_vm7, %v1904_v55, %v4693_v44  ;;  %v1905_v60 = vmul.f32 %v4170_v50, %v1777_v27  ;;  %4179 = vpow2.f32 %v1850_v11  ;;  %v4939_v22 = vpop.f32.mrb[60].mxu0  ;;  %v1338_v25 = vsub.f32 0.0, %v1306_v8 }
 0x2f8   : > { %v1752_v30 = vsel %vm4811_vm7, %v1718_v38, %v4728_v19  ;;  %v1374_v14 = vmul.f32 1.442695, %v1333_v53  ;;  %v4945_v18 = vpop.f32.mrb[61].mxu0  ;;  %4181 = vpow2.f32 %v1846_v35  ;;  %v1852_v12 = vmul.f32 1.442695, %v1813_v57 }
 0x2f9   : > { %v4947_v61 = vpop.eup %4171  ;;  %v1937_v44 = vsel %vm4811_vm7, %v1905_v60, %v4700_v42  ;;  %3388 = vst [vmem:[%s4827_s13 + $0xa8] sm:$0xff] %v1752_v30  ;;  %v4955_v27 = vadd.f32 %v4767_v2, %v4687_v37  ;;  %v4957_v41 = vpop.f32.mrb[62].mxu0  ;;  %v1816_v58 = vmul.f32 0.5, %v1752_v30  ;;  %v1384_v29 = vmul.f32 1.442695, %v1338_v25 }
 0x2fa   : > { %v4959_v47 = vpack.c.bf16 %v1937_v44, %v1936_v28  ;;  %v1492_v33 = vadd.f32 1.0, %v4947_v61  ;;  %v4966_v11 = vpop.f32.mrb[63].mxu0  ;;  %4183 = vpow2.f32 %v1374_v14  ;;  %v1336_v6 = vsub.f32 0.0, %v1304_v17 }
 0x2fb   : > { %6357 = vst [vmem:[#allocation10_spill] sm:$0xff] %v4955_v27  ;;  %v4969_v2 = vpop.eup %4173  ;;  %v1848_v45 = vmul.f32 1.442695, %v1811_v52  ;;  %v1495_v10 = vmul.f32 -0.5, %v4947_v61  ;;  %v1307_v57 = vand.u32 2147483647, %v4955_v27  ;;  %v4980_v38 = vadd.f32 %v4796_v48, %v4687_v37 }
 0x2fc   : > { %4185 = vlog2.f32 %v1492_v33  ;;  %v4973_v55 = vpop.eup %4175  ;;  %v1380_v35 = vmul.f32 1.442695, %v1336_v6  ;;  %v1858_v31 = vmul.f32 1.442695, %v1816_v58  ;;  %v1305_v50 = vand.u32 2147483647, %v4964_v26 }
 0x2fd   : > { %4187 = vpow2.f32 %v1852_v12  ;;  %6358 = vst [vmem:[#allocation11_spill] sm:$0xff] %v4980_v38  ;;  %v1498_v53 = vand.u32 2147483647, %v4947_v61  ;;  %v1339_v8 = vsub.f32 0.0, %v1307_v57  ;;  %v4985_v28 = vadd.f32 %v4800_v0, %v4687_v37 }
 0x2fe   : > { %4189 = vpow2.f32 %v1384_v29  ;;  %v1337_v52 = vsub.f32 0.0, %v1305_v50  ;;  %v1310_v30 = vand.u32 2147483647, %v4980_v38  ;;  %v4990_v14 = vadd.f32 %v4822_v24, %v4687_v37 }
 0x2ff   : > { %4191 = vpow2.f32 %v1380_v35  ;;  %6359 = vst [vmem:[#allocation12_spill] sm:$0xff] %v4985_v28  ;;  %v1496_v48 = vadd.f32 1.0, %v1495_v10  ;;  %v1386_v12 = vmul.f32 1.442695, %v1339_v8  ;;  %v1308_v33 = vand.u32 2147483647, %v4985_v28 }
 0x300   : > { %v4178_v60 = vpop.eup %4177  ;;  %4193 = vpow2.f32 %v1848_v45  ;;  %6360 = vst [vmem:[#allocation13_spill] sm:$0xff] %v4990_v14  ;;  %v1382_v58 = vmul.f32 1.442695, %v1337_v52  ;;  %v1342_v0 = vsub.f32 0.0, %v1310_v30  ;;  %vm4998_vm12 = vcmp.lt.f32.partialorder %v1498_v53, 0.0004427343 }
 0x301   : > { %v4992_v25 = vpop.eup %4179  ;;  %v1519_v17 = vadd.f32 1.0, %v4178_v60  ;;  %4195 = vpow2.f32 %v1858_v31  ;;  %v1522_v24 = vmul.f32 -0.5, %v4178_v60  ;;  %v5004_v45 = vadd.f32 %v4834_v34, %v4687_v37 }
 0x302   : > { %v4996_v29 = vpop.eup %4181  ;;  %v1525_v10 = vand.u32 2147483647, %v4178_v60  ;;  %v1392_v35 = vmul.f32 1.442695, %v1342_v0  ;;  %v1311_v57 = vand.u32 2147483647, %v4990_v14  ;;  %v1497_v30 = vmul.f32 %v4947_v61, %v1496_v48 }
 0x303   : > { %4197 = vlog2.f32 %v1519_v17  ;;  %6363 = vst [vmem:[#allocation14_spill] sm:$0xff] %v5004_v45  ;;  %v1340_v53 = vsub.f32 0.0, %v1308_v33  ;;  %v1523_v0 = vadd.f32 1.0, %v1522_v24  ;;  %v1309_v61 = vand.u32 2147483647, %v5004_v45 }
 0x304   : > { %4199 = vpow2.f32 %v1386_v12  ;;  %v4184_v31 = vpop.eup %4183  ;;  %vm5014_vm13 = vcmp.lt.f32.partialorder %v1525_v10, 0.0004427343 }
 0x305   : > { %4201 = vpow2.f32 %v1382_v58  ;;  %v1501_v17 = vadd.f32 1.0, %v4184_v31  ;;  %v1504_v15 = vmul.f32 -0.5, %v4184_v31  ;;  %v1343_v58 = vsub.f32 0.0, %v1311_v57 }
 0x306   : > { %v4186_v52 = vpop.eup %4185  ;;  %4203 = vpow2.f32 %v1392_v35  ;;  %v1507_v56 = vand.u32 2147483647, %v4184_v31  ;;  %v1524_v57 = vmul.f32 %v4178_v60, %v1523_v0 }
 0x307   : > { %v5011_v34 = vpop.eup %4187  ;;  %v1494_v12 = vmul.f32 0.6931472, %v4186_v52  ;;  %4205 = vlog2.f32 %v1501_v17  ;;  %v1388_v52 = vmul.f32 1.442695, %v1340_v53  ;;  %v1505_v21 = vadd.f32 1.0, %v1504_v15 }
 0x308   : > { %6364 = vst [vmem:[#allocation15_spill] sm:$0xff] %v5011_v34  ;;  %v4190_v42 = vpop.eup %4189  ;;  %v1394_v53 = vmul.f32 1.442695, %v1343_v58  ;;  %v1341_v17 = vsub.f32 0.0, %v1309_v61  ;;  %vm5033_vm14 = vcmp.lt.f32.partialorder %v1507_v56, 0.0004427343 }
 0x309   : > { %v4192_v48 = vpop.eup %4191  ;;  %v1500_v33 = vsel %vm4998_vm12, %v1497_v30, %v1494_v12  ;;  %v1546_v35 = vadd.f32 1.0, %v4190_v42  ;;  %v1549_v44 = vmul.f32 -0.5, %v4190_v42  ;;  %v1552_v40 = vand.u32 2147483647, %v4190_v42 }
 0x30a   : > { %v5021_v24 = vpop.eup %4193  ;;  %v1716_v10 = vadd.f32 %v1500_v33, %v1268_v36  ;;  %v1528_v8 = vadd.f32 1.0, %v4192_v48  ;;  %v1531_v33 = vmul.f32 -0.5, %v4192_v48  ;;  %v1390_v30 = vmul.f32 1.442695, %v1341_v17 }
 0x30b   : > { %4207 = vlog2.f32 %v1546_v35  ;;  %v5026_v19 = vpop.eup %4195  ;;  %v1550_v36 = vadd.f32 1.0, %v1549_v44  ;;  %vm5037_vm15 = vcmp.lt.f32.partialorder %v1552_v40, 0.0004427343  ;;  %v5043_v44 = vadd.f32 %v4862_v20, %v4687_v37 }
 0x30c   : > { %6367 = vst [vmem:[#allocation16_spill] sm:$0xff] %v5026_v19  ;;  %v1750_v6 = vsel %vm4811_vm7, %v1716_v10, %v4758_v59  ;;  %4209 = vlog2.f32 %v1528_v8  ;;  %v1506_v10 = vmul.f32 %v4184_v31, %v1505_v21  ;;  %v6373_v21 = vmax.f32 %v4775_v9, 0.0 }
 0x30d   : > { %v4198_v12 = vpop.eup %4197  ;;  %3386 = vst [vmem:[%s4827_s13 + $0x88] sm:$0xff] %v1750_v6  ;;  %4211 = vpow2.f32 %v1388_v52  ;;  %v1814_v15 = vmul.f32 0.5, %v1750_v6  ;;  %6372 = vst [vmem:[#allocation17_spill] sm:$0xff] %v5043_v44  ;;  %v1534_v52 = vand.u32 2147483647, %v4192_v48  ;;  %v1551_v31 = vmul.f32 %v4190_v42, %v1550_v36 }
 0x30e   : > { %v4200_v60 = vpop.eup %4199  ;;  %v1521_v0 = vmul.f32 0.6931472, %v4198_v12  ;;  %4213 = vpow2.f32 %v1394_v53  ;;  %v1532_v12 = vadd.f32 1.0, %v1531_v33 }
 0x30f   : > { %v4202_v19 = vpop.eup %4201  ;;  %v1555_v58 = vadd.f32 1.0, %v4200_v60  ;;  %v1558_v6 = vmul.f32 -0.5, %v4200_v60  ;;  %v1854_v62 = vmul.f32 1.442695, %v1814_v15  ;;  %vm5056_vm0 = vcmp.lt.f32.partialorder %v1534_v52, 0.0004427343 }
 0x310   : > { %v5045_v61 = vpop.eup %4203  ;;  %v1527_v56 = vsel %vm5014_vm13, %v1524_v57, %v1521_v0  ;;  %v1537_v53 = vadd.f32 1.0, %v4202_v19  ;;  %v1540_v20 = vmul.f32 -0.5, %v4202_v19  ;;  %v1561_v0 = vand.u32 2147483647, %v4200_v60 }
 0x311   : > { %v1719_v40 = vadd.f32 %v1527_v56, %v6373_v21  ;;  %v4206_v59 = vpop.eup %4205  ;;  %4215 = vlog2.f32 %v1555_v58  ;;  %v1582_v4 = vadd.f32 1.0, %v5045_v61  ;;  %v1559_v42 = vadd.f32 1.0, %v1558_v6 }
 0x312   : > { %v1503_v57 = vmul.f32 0.6931472, %v4206_v59  ;;  %4217 = vlog2.f32 %v1537_v53  ;;  %v1543_v17 = vand.u32 2147483647, %v4202_v19  ;;  %v1533_v58 = vmul.f32 %v4192_v48, %v1532_v12 }
 0x313   : > { %v1753_v50 = vsel %vm4811_vm7, %v1719_v40, %v4775_v9  ;;  %4219 = vlog2.f32 %v1582_v4  ;;  %v6376_v59 = vmax.f32 %v4911_v49, 0.0  ;;  %v1541_v52 = vadd.f32 1.0, %v1540_v20 }
 0x314   : > { %3389 = vst [vmem:[%s4827_s13 + $0xb8] sm:$0xff] %v1753_v50  ;;  %v1817_v33 = vmul.f32 0.5, %v1753_v50  ;;  %v1509_v15 = vsel %vm5033_vm14, %v1506_v10, %v1503_v57  ;;  %4221 = vpow2.f32 %v1390_v30  ;;  %v1585_v40 = vmul.f32 -0.5, %v5045_v61  ;;  %v4116_v50 = vld [vmem:[%s6290_s1 + $0x108] sm:$0xff]  }
 0x315   : > { %v4208_v36 = vpop.eup %4207  ;;  %v1717_v21 = vadd.f32 %v1509_v15, %v6376_v59  ;;  %4223 = vpow2.f32 %v1854_v62  ;;  %vm5067_vm1 = vcmp.lt.f32.partialorder %v1561_v0, 0.0004427343  ;;  %v1588_v48 = vand.u32 2147483647, %v5045_v61  ;;  %v4115_v62 = vld [vmem:[%s6290_s1 + $0x100] sm:$0xff]  }
 0x316   : > { %v4210_v56 = vpop.eup %4209  ;;  %v1548_v53 = vmul.f32 0.6931472, %v4208_v36  ;;  %v1560_v12 = vmul.f32 %v4200_v60, %v1559_v42  ;;  %vm5079_vm2 = vcmp.lt.f32.partialorder %v1543_v17, 0.0004427343  ;;  %v1860_v57 = vmul.f32 1.442695, %v1817_v33  ;;  %3963 = vmatprep.subr.bf16.mxu0 %v4115_v62 }
 0x317   : > { %v5065_v9 = vpop.eup %4211  ;;  %v1530_v4 = vmul.f32 0.6931472, %v4210_v56  ;;  %v1751_v35 = vsel %vm4811_vm7, %v1717_v21, %v4911_v49  ;;  %v6381_v0 = vmax.f32 %v4920_v5, 0.0  ;;  %v6382_v42 = vmax.f32 %v4929_v23, 0.0  ;;  %3964 = vmatpush3.bf16.msra.mxu0 %v4115_v62 }
 0x318   : > { %v5072_v30 = vpop.eup %4213  ;;  %v1554_v10 = vsel %vm5037_vm15, %v1551_v31, %v1548_v53  ;;  %3387 = vst [vmem:[%s4827_s13 + $0x98] sm:$0xff] %v1751_v35  ;;  %v1564_v31 = vadd.f32 1.0, %v5065_v9  ;;  %v1542_v36 = vmul.f32 %v4202_v19, %v1541_v52  ;;  %v1586_v15 = vadd.f32 1.0, %v1585_v40  ;;  %3965 = vmatprep.subr.bf16.mxu0 %v4116_v50  ;;  %v4117_v40 = vld [vmem:[%s6290_s1 + $0x110] sm:$0xff]  }
 0x319   : > { %v1722_v8 = vadd.f32 %v1554_v10, %v6381_v0  ;;  %v1536_v60 = vsel %vm5056_vm0, %v1533_v58, %v1530_v4  ;;  %v1591_v56 = vadd.f32 1.0, %v5072_v30  ;;  %v1815_v59 = vmul.f32 0.5, %v1751_v35 }
 0x31a   : > { %v1720_v17 = vadd.f32 %v1536_v60, %v6382_v42  ;;  %vm5101_vm3 = vcmp.lt.f32.partialorder %v1588_v48, 0.0004427343  ;;  %4225 = vlog2.f32 %v1564_v31  ;;  %v1567_v58 = vmul.f32 -0.5, %v5065_v9 }
 0x31b   : > { %v1756_v33 = vsel %vm4811_vm7, %v1722_v8, %v4920_v5  ;;  %v4216_v34 = vpop.eup %4215  ;;  %v1594_v53 = vmul.f32 -0.5, %v5072_v30  ;;  %v1314_v52 = vand.u32 2147483647, %v5043_v44  ;;  %4227 = vpow2.f32 %v1860_v57  ;;  %3966 = vmatpush3.bf16.msra.mxu0 %v4116_v50 }
 0x31c   : > { %3392 = vst [vmem:[%s4827_s13 + $0xe8] sm:$0xff] %v1756_v33  ;;  %v1754_v19 = vsel %vm4811_vm7, %v1720_v17, %v4929_v23  ;;  %v4218_v4 = vpop.eup %4217  ;;  %v1820_v48 = vmul.f32 0.5, %v1756_v33  ;;  %v1557_v35 = vmul.f32 0.6931472, %v4216_v34  ;;  %v5118_v10 = vadd.f32 %v4865_v3, %v4687_v37  ;;  %3967 = vmatprep.subr.bf16.mxu0 %v4117_v40 }
 0x31d   : > { %3390 = vst [vmem:[%s4827_s13 + $0xc8] sm:$0xff] %v1754_v19  ;;  %v4220_v62 = vpop.eup %4219  ;;  %v1818_v0 = vmul.f32 0.5, %v1754_v19  ;;  %v1539_v8 = vmul.f32 0.6931472, %v4218_v4  ;;  %v1570_v60 = vand.u32 2147483647, %v5065_v9  ;;  %4229 = vlog2.f32 %v1591_v56 }
 0x31e   : > { %v5121_v31 = vpop.eup %4221  ;;  %v1856_v42 = vmul.f32 1.442695, %v1815_v59  ;;  %v1563_v17 = vsel %vm5067_vm1, %v1560_v12, %v1557_v35  ;;  %v1584_v57 = vmul.f32 0.6931472, %v4220_v62  ;;  %v1587_v33 = vmul.f32 %v5045_v61, %v1586_v15  ;;  %v4118_v56 = vld [vmem:[%s6290_s1 + $0x118] sm:$0xff]  }
 0x31f   : > { %v6385_v34 = vmax.f32 %v4955_v27, 0.0  ;;  %v1545_v19 = vsel %vm5079_vm2, %v1542_v36, %v1539_v8  ;;  %v1568_v4 = vadd.f32 1.0, %v1567_v58  ;;  %v1595_v5 = vadd.f32 1.0, %v1594_v53  ;;  %v5133_v6 = vpop.eup %4223  ;;  %3968 = vmatpush3.bf16.msra.mxu0 %v4117_v40 }
 0x320   : > { %v1866_v12 = vmul.f32 1.442695, %v1820_v48  ;;  %v6386_v61 = vmax.f32 %v4964_v26, 0.0  ;;  %v1590_v15 = vsel %vm5101_vm3, %v1587_v33, %v1584_v57  ;;  %v1573_v20 = vadd.f32 1.0, %v5121_v31  ;;  %3969 = vmatprep.subr.bf16.mxu0 %v4118_v56 }
 0x321   : > { %v1723_v3 = vadd.f32 %v1563_v17, %v6385_v34  ;;  %v1862_v36 = vmul.f32 1.442695, %v1818_v0  ;;  %v6387_v58 = vmax.f32 %v4980_v38, 0.0  ;;  %vm5145_vm4 = vcmp.lt.f32.partialorder %v1570_v60, 0.0004427343  ;;  %v4119_v17 = vld [vmem:[%s6290_s1 + $0x120] sm:$0xff]  }
 0x322   : > { %v1721_v50 = vadd.f32 %v1545_v19, %v6386_v61  ;;  %v1597_v48 = vand.u32 2147483647, %v5072_v30  ;;  %4231 = vlog2.f32 %v1573_v20  ;;  %v1576_v62 = vmul.f32 -0.5, %v5121_v31 }
 0x323   : > { %v1757_v59 = vsel %vm4811_vm7, %v1723_v3, %v4955_v27  ;;  %v1726_v53 = vadd.f32 %v1590_v15, %v6387_v58  ;;  %4233 = vpow2.f32 %v1856_v42  ;;  %v1346_v60 = vsub.f32 0.0, %v1314_v52  ;;  %3970 = vmatpush3.bf16.msra.mxu0 %v4118_v56 }
 0x324   : > { %3393 = vst [vmem:[%s4827_s13 + $0xf8] sm:$0xff] %v1757_v59  ;;  %v1755_v21 = vsel %vm4811_vm7, %v1721_v50, %v4964_v26  ;;  %v1821_v0 = vmul.f32 0.5, %v1757_v59  ;;  %v4226_v57 = vpop.eup %4225  ;;  %4235 = vpow2.f32 %v1866_v12  ;;  %v1569_v33 = vmul.f32 %v5065_v9, %v1568_v4  ;;  %3971 = vmatprep.subr.bf16.mxu0 %v4119_v17 }
 0x325   : > { %3391 = vst [vmem:[%s4827_s13 + $0xd8] sm:$0xff] %v1755_v21  ;;  %v1760_v8 = vsel %vm4811_vm7, %v1726_v53, %v4980_v38  ;;  %v1596_v40 = vmul.f32 %v5072_v30, %v1595_v5  ;;  %v1579_v42 = vand.u32 2147483647, %v5121_v31  ;;  %4237 = vpow2.f32 %v1862_v36  ;;  %v5166_v61 = vpop.eup %4227  ;;  %v4120_v36 = vld [vmem:[%s6290_s1 + $0x128] sm:$0xff]  }
 0x326   : > { %3396 = vst [vmem:[%s4827_s13 + $0x128] sm:$0xff] %v1760_v8  ;;  %v1819_v34 = vmul.f32 0.5, %v1755_v21  ;;  %v1566_v3 = vmul.f32 0.6931472, %v4226_v57  ;;  %v1400_v19 = vmul.f32 1.442695, %v1346_v60  ;;  %v5175_v9 = vadd.f32 %v4870_v43, %v4687_v37 }
 0x327   : > { %vm5168_vm5 = vcmp.lt.f32.partialorder %v1597_v48, 0.0004427343  ;;  %v1577_v50 = vadd.f32 1.0, %v1576_v62  ;;  %v1312_v12 = vand.u32 2147483647, %v5118_v10  ;;  %v4230_v5 = vpop.eup %4229  ;;  %v1824_v4 = vmul.f32 0.5, %v1760_v8  ;;  %3972 = vmatpush3.bf16.msra.mxu0 %v4119_v17 }
 0x328   : > { %v1868_v30 = vmul.f32 1.442695, %v1821_v0  ;;  %v1572_v15 = vsel %vm5145_vm4, %v1569_v33, %v1566_v3  ;;  %v5181_v20 = vadd.f32 %v4876_v13, %v4687_v37  ;;  %v6392_v43 = vmax.f32 %v4985_v28, 0.0  ;;  %3973 = vmatprep.subr.bf16.mxu0 %v4120_v36 }
 0x329   : > { %v1593_v56 = vmul.f32 0.6931472, %v4230_v5  ;;  %v1344_v58 = vsub.f32 0.0, %v1312_v12  ;;  %v5190_v53 = vadd.f32 %v4895_v63, %v4687_v37  ;;  %v1864_v35 = vmul.f32 1.442695, %v1819_v34  ;;  %v4121_v34 = vld [vmem:[%s6290_s1 + $0x130] sm:$0xff]  }
 0x32a   : > { %v1724_v59 = vadd.f32 %v1572_v15, %v6392_v43  ;;  %vm5192_vm6 = vcmp.lt.f32.partialorder %v1579_v42, 0.0004427343  ;;  %4239 = vpow2.f32 %v1400_v19  ;;  %v1315_v13 = vand.u32 2147483647, %v5175_v9 }
 0x32b   : > { %v1599_v62 = vsel %vm5168_vm5, %v1596_v40, %v1593_v56  ;;  %v1396_v0 = vmul.f32 1.442695, %v1344_v58  ;;  %v1313_v8 = vand.u32 2147483647, %v5181_v20  ;;  %v6395_v60 = vmax.f32 %v4990_v14, 0.0  ;;  %3974 = vmatpush3.bf16.msra.mxu0 %v4120_v36 }
 0x32c   : > { %v1758_v48 = vsel %vm4811_vm7, %v1724_v59, %v4985_v28  ;;  %v1578_v33 = vmul.f32 %v5121_v31, %v1577_v50  ;;  %v1347_v42 = vsub.f32 0.0, %v1315_v13  ;;  %v4232_v3 = vpop.eup %4231  ;;  %v1318_v19 = vand.u32 2147483647, %v5190_v53  ;;  %3975 = vmatprep.subr.bf16.mxu0 %v4121_v34 }
 0x32d   : > { %v1822_v63 = vmul.f32 0.5, %v1758_v48  ;;  %3394 = vst [vmem:[%s4827_s13 + $0x108] sm:$0xff] %v1758_v48  ;;  %v1727_v57 = vadd.f32 %v1599_v62, %v6395_v60  ;;  %4241 = vpow2.f32 %v1396_v0  ;;  %v1345_v40 = vsub.f32 0.0, %v1313_v8  ;;  %v5215_v52 = vpop.eup %4233 }
 0x32e   : > { %v5213_v17 = vadd.f32 %v4904_v54, %v4687_v37  ;;  %4243 = vpow2.f32 %v1868_v30  ;;  %v1575_v50 = vmul.f32 0.6931472, %v4232_v3  ;;  %v1402_v12 = vmul.f32 1.442695, %v1347_v42  ;;  %v5220_v5 = vpop.eup %4235  ;;  %v5244_v42 = vld [vmem:[%s4503_s24 + $0x4] ss:$8 sps:$4 sm:$0xff]  }
 0x32f   : > { %v1761_v31 = vsel %vm4811_vm7, %v1727_v57, %v4990_v14  ;;  %v1874_v15 = vmul.f32 1.442695, %v1824_v4  ;;  %v1398_v59 = vmul.f32 1.442695, %v1345_v40  ;;  %v1350_v56 = vsub.f32 0.0, %v1318_v19  ;;  %v5223_v58 = vpop.eup %4237  ;;  %3976 = vmatpush3.bf16.msra.mxu0 %v4121_v34 }
 0x330   : > { %v1825_v43 = vmul.f32 0.5, %v1761_v31  ;;  %3397 = vst [vmem:[%s4827_s13 + $0x138] sm:$0xff] %v1761_v31  ;;  %4245 = vpow2.f32 %v1864_v35  ;;  %v1581_v54 = vsel %vm5192_vm6, %v1578_v33, %v1575_v50  ;;  %v1316_v30 = vand.u32 2147483647, %v5213_v17 }
 0x331   : > { %v5230_v13 = vadd.f32 %v4913_v16, %v4687_v37  ;;  %v1870_v4 = vmul.f32 1.442695, %v1822_v63  ;;  %v6396_v48 = vmax.f32 %v5004_v45, 0.0  ;;  %4247 = vpow2.f32 %v1402_v12 }
 0x332   : > { %v1408_v36 = vmul.f32 1.442695, %v1350_v56  ;;  %4249 = vpow2.f32 %v1398_v59  ;;  %v1348_v35 = vsub.f32 0.0, %v1316_v30  ;;  %v1876_v0 = vmul.f32 1.442695, %v1825_v43 }
 0x333   : > { %v1725_v62 = vadd.f32 %v1581_v54, %v6396_v48  ;;  %v1319_v21 = vand.u32 2147483647, %v5230_v13  ;;  %4251 = vpow2.f32 %v1874_v15  ;;  %v5240_v8 = vadd.f32 %v4922_v39, %v4687_v37 }
 0x334   : > { %v4240_v63 = vpop.eup %4239  ;;  %4253 = vpow2.f32 %v1408_v36  ;;  %v1404_v57 = vmul.f32 1.442695, %v1348_v35  ;;  %v5248_v40 = vadd.f32 %v4939_v22, %v4687_v37  ;;  %v1282_v56 = vmax.f32 %v5043_v44, 0.0 }
 0x335   : > { %v1759_v16 = vsel %vm4811_vm7, %v1725_v62, %v5004_v45  ;;  %v1351_v33 = vsub.f32 0.0, %v1319_v21  ;;  %4255 = vpow2.f32 %v1870_v4  ;;  %v1618_v3 = vadd.f32 1.0, %v4240_v63 }
 0x336   : > { %v1823_v60 = vmul.f32 0.5, %v1759_v16  ;;  %3395 = vst [vmem:[%s4827_s13 + $0x118] sm:$0xff] %v1759_v16  ;;  %4257 = vpow2.f32 %v1404_v57  ;;  %v1317_v39 = vand.u32 2147483647, %v5240_v8  ;;  %v1621_v34 = vmul.f32 -0.5, %v4240_v63 }
 0x337   : > { %v1410_v19 = vmul.f32 1.442695, %v1351_v33  ;;  %v4242_v31 = vpop.eup %4241  ;;  %4259 = vlog2.f32 %v1618_v3  ;;  %v1322_v54 = vand.u32 2147483647, %v5248_v40  ;;  %v1624_v4 = vand.u32 2147483647, %v4240_v63 }
 0x338   : > { %v5252_v12 = vpop.eup %4243  ;;  %4261 = vpow2.f32 %v1876_v0  ;;  %v1872_v15 = vmul.f32 1.442695, %v1823_v60  ;;  %v1600_v43 = vadd.f32 1.0, %v4242_v31  ;;  %v1349_v22 = vsub.f32 0.0, %v1317_v39 }
 0x339   : > { %4263 = vpow2.f32 %v1410_v19  ;;  %v1622_v35 = vadd.f32 1.0, %v1621_v34  ;;  %v1603_v21 = vmul.f32 -0.5, %v4242_v31  ;;  %v1354_v16 = vsub.f32 0.0, %v1322_v54 }
 0x33a   : > { %v5257_v30 = vpop.eup %4245  ;;  %4265 = vlog2.f32 %v1600_v43  ;;  %v1406_v0 = vmul.f32 1.442695, %v1349_v22  ;;  %v1606_v57 = vand.u32 2147483647, %v4242_v31  ;;  %vm5272_vm8 = vcmp.lt.f32.partialorder %v1624_v4, 0.0004427343 }
 0x33b   : > { %v5261_v36 = vpop.eup %4247  ;;  %4267 = vpow2.f32 %v1872_v15  ;;  %v1416_v54 = vmul.f32 1.442695, %v1354_v16  ;;  %v1623_v3 = vmul.f32 %v4240_v63, %v1622_v35  ;;  %v1604_v62 = vadd.f32 1.0, %v1603_v21 }
 0x33c   : > { %v5263_v60 = vpop.eup %4249  ;;  %v1627_v33 = vadd.f32 1.0, %v5261_v36  ;;  %4269 = vpow2.f32 %v1406_v0  ;;  %vm5279_vm9 = vcmp.lt.f32.partialorder %v1606_v57, 0.0004427343  ;;  %v1630_v4 = vmul.f32 -0.5, %v5261_v36 }
 0x33d   : > { %v5267_v19 = vpop.eup %4251  ;;  %v1609_v39 = vadd.f32 1.0, %v5263_v60  ;;  %v1612_v0 = vmul.f32 -0.5, %v5263_v60  ;;  %v5287_v63 = vadd.f32 %v4945_v18, %v4687_v37  ;;  %v1633_v57 = vand.u32 2147483647, %v5261_v36 }
 0x33e   : > { %6397 = vst [vmem:[#allocation18_spill] sm:$0xff] %v5267_v19  ;;  %v4254_v34 = vpop.eup %4253  ;;  %4271 = vlog2.f32 %v1627_v33  ;;  %v5294_v59 = vadd.f32 %v4957_v41, %v4687_v37  ;;  %v5301_v18 = vadd.f32 %v4966_v11, %v4687_v37 }
 0x33f   : > { %v5277_v50 = vpop.eup %4255  ;;  %4273 = vlog2.f32 %v1609_v39  ;;  %v1654_v48 = vadd.f32 1.0, %v4254_v34  ;;  %v1657_v15 = vmul.f32 -0.5, %v4254_v34  ;;  %v1613_v28 = vadd.f32 1.0, %v1612_v0 }
 0x340   : > { %6400 = vst [vmem:[#allocation19_spill] sm:$0xff] %v5277_v50  ;;  %v4258_v38 = vpop.eup %4257  ;;  %4275 = vpow2.f32 %v1416_v54  ;;  %v1605_v54 = vmul.f32 %v4242_v31, %v1604_v62  ;;  %v1660_v31 = vand.u32 2147483647, %v4254_v34  ;;  %vm5308_vm10 = vcmp.lt.f32.partialorder %v1633_v57, 0.0004427343 }
 0x341   : > { %v4260_v33 = vpop.eup %4259  ;;  %4277 = vlog2.f32 %v1654_v48  ;;  %v1636_v16 = vadd.f32 1.0, %v4258_v38  ;;  %v1639_v39 = vmul.f32 -0.5, %v4258_v38  ;;  %v1615_v48 = vand.u32 2147483647, %v5263_v60 }
 0x342   : > { %v5289_v35 = vpop.eup %4261  ;;  %v1620_v21 = vmul.f32 0.6931472, %v4260_v33  ;;  %v1658_v27 = vadd.f32 1.0, %v1657_v15  ;;  %v1642_v11 = vand.u32 2147483647, %v4258_v38  ;;  %v6408_v0 = vmax.f32 %v5118_v10, 0.0 }
 0x343   : > { %6403 = vst [vmem:[#allocation20_spill] sm:$0xff] %v5289_v35  ;;  %v5296_v14 = vpop.eup %4263  ;;  %4279 = vlog2.f32 %v1636_v16  ;;  %v1631_v35 = vadd.f32 1.0, %v1630_v4  ;;  %v1640_v37 = vadd.f32 1.0, %v1639_v39  ;;  %vm5319_vm11 = vcmp.lt.f32.partialorder %v1615_v48, 0.0004427343 }
 0x344   : > { %v4266_v19 = vpop.eup %4265  ;;  %v1626_v33 = vsel %vm5272_vm8, %v1623_v3, %v1620_v21  ;;  %v1663_v45 = vadd.f32 1.0, %v5296_v14  ;;  %v1666_v15 = vmul.f32 -0.5, %v5296_v14  ;;  %v1614_v57 = vmul.f32 %v5263_v60, %v1613_v28 }
 0x345   : > { %v1730_v41 = vadd.f32 %v1626_v33, %v1282_v56  ;;  %v1602_v50 = vmul.f32 0.6931472, %v4266_v19  ;;  %v5306_v62 = vpop.eup %4267  ;;  %v1632_v21 = vmul.f32 %v5261_v36, %v1631_v35  ;;  %v1320_v39 = vand.u32 2147483647, %v5287_v63 }
 0x346   : > { %4281 = vlog2.f32 %v1663_v45  ;;  %v5312_v22 = vpop.eup %4269  ;;  %vm5330_vm12 = vcmp.lt.f32.partialorder %v1660_v31, 0.0004427343  ;;  %v1641_v35 = vmul.f32 %v4258_v38, %v1640_v37  ;;  %vm5340_vm13 = vcmp.lt.f32.partialorder %v1642_v11, 0.0004427343 }
 0x347   : > { %v1764_v3 = vsel %vm4811_vm7, %v1730_v41, %v5043_v44  ;;  %v1608_v56 = vsel %vm5279_vm9, %v1605_v54, %v1602_v50  ;;  %v1659_v54 = vmul.f32 %v4254_v34, %v1658_v27  ;;  %v1645_v33 = vadd.f32 1.0, %v5312_v22 }
 0x348   : > { %v4272_v4 = vpop.eup %4271  ;;  %3400 = vst [vmem:[%s4827_s13 + $0x168] sm:$0xff] %v1764_v3  ;;  %v1728_v45 = vadd.f32 %v1608_v56, %v6408_v0  ;;  %v1828_v27 = vmul.f32 0.5, %v1764_v3  ;;  %v1667_v31 = vadd.f32 1.0, %v1666_v15  ;;  %v1352_v37 = vsub.f32 0.0, %v1320_v39 }
 0x349   : > { %v4274_v43 = vpop.eup %4273  ;;  %v1629_v50 = vmul.f32 0.6931472, %v4272_v4  ;;  %4283 = vlog2.f32 %v1645_v33  ;;  %v6413_v4 = vmax.f32 %v5175_v9, 0.0  ;;  %v1669_v44 = vand.u32 2147483647, %v5296_v14 }
 0x34a   : > { %v5335_v41 = vpop.eup %4275  ;;  %v1762_v56 = vsel %vm4811_vm7, %v1728_v45, %v5118_v10  ;;  %v1611_v36 = vmul.f32 0.6931472, %v4274_v43  ;;  %v6414_v43 = vmax.f32 %v5181_v20, 0.0  ;;  %v1648_v16 = vmul.f32 -0.5, %v5312_v22 }
 0x34b   : > { %v4278_v60 = vpop.eup %4277  ;;  %3398 = vst [vmem:[%s4827_s13 + $0x148] sm:$0xff] %v1762_v56  ;;  %v1635_v34 = vsel %vm5308_vm10, %v1632_v21, %v1629_v50  ;;  %v1323_v15 = vand.u32 2147483647, %v5294_v59  ;;  %v1690_v39 = vadd.f32 1.0, %v5335_v41  ;;  %v1882_v50 = vmul.f32 1.442695, %v1828_v27 }
 0x34c   : > { %v1731_v0 = vadd.f32 %v1635_v34, %v6413_v4  ;;  %v1617_v45 = vsel %vm5319_vm11, %v1614_v57, %v1611_v36  ;;  %v1656_v38 = vmul.f32 0.6931472, %v4278_v60  ;;  %v6415_v36 = vmax.f32 %v5190_v53, 0.0 }
 0x34d   : > { %v4280_v11 = vpop.eup %4279  ;;  %v1729_v3 = vadd.f32 %v1617_v45, %v6414_v43  ;;  %v1668_v34 = vmul.f32 %v5296_v14, %v1667_v31  ;;  %4285 = vlog2.f32 %v1690_v39  ;;  %v1412_v48 = vmul.f32 1.442695, %v1352_v37 }
 0x34e   : > { %v1765_v21 = vsel %vm4811_vm7, %v1731_v0, %v5175_v9  ;;  %v1662_v19 = vsel %vm5330_vm12, %v1659_v54, %v1656_v38  ;;  %v1638_v57 = vmul.f32 0.6931472, %v4280_v11  ;;  %v1826_v0 = vmul.f32 0.5, %v1762_v56 }
 0x34f   : > { %3401 = vst [vmem:[%s4827_s13 + $0x178] sm:$0xff] %v1765_v21  ;;  %v1763_v33 = vsel %vm4811_vm7, %v1729_v3, %v5181_v20  ;;  %v1734_v60 = vadd.f32 %v1662_v19, %v6415_v36  ;;  %v6416_v45 = vmax.f32 %v5213_v17, 0.0  ;;  %v1649_v43 = vadd.f32 1.0, %v1648_v16 }
 0x350   : > { %v4282_v4 = vpop.eup %4281  ;;  %3399 = vst [vmem:[%s4827_s13 + $0x158] sm:$0xff] %v1763_v33  ;;  %v1644_v54 = vsel %vm5340_vm13, %v1641_v35, %v1638_v57  ;;  %v1829_v14 = vmul.f32 0.5, %v1765_v21  ;;  %vm1670_vm14 = vcmp.lt.f32.partialorder %v1669_v44, 0.0004427343  ;;  %v1651_v56 = vand.u32 2147483647, %v5312_v22 }
 0x351   : > { %v5375_v27 = vsel %vm4811_vm7, %v1734_v60, %v5190_v53  ;;  %v1732_v38 = vadd.f32 %v1644_v54, %v6416_v45  ;;  %v1665_v11 = vmul.f32 0.6931472, %v4282_v4  ;;  %v1693_v35 = vmul.f32 -0.5, %v5335_v41  ;;  %v216_v60 = vld [vmem:[%s4503_s24 + $0x24] ss:$8 sps:$4 sm:$0xff]  }
 0x352   : > { %3404 = vst [vmem:[%s4827_s13 + $0x1a8] sm:$0xff] %v5375_v27  ;;  %v1827_v28 = vmul.f32 0.5, %v1763_v33  ;;  %v1355_v3 = vsub.f32 0.0, %v1323_v15  ;;  %4287 = vpow2.f32 %v1882_v50  ;;  %v6417_v16 = vmax.f32 %v5230_v13, 0.0  ;;  %v218_v4 = vld [vmem:[%s4503_s24 + $0x34] ss:$8 sps:$4 sm:$0xff]  }
 0x353   : > { %v1766_v31 = vsel %vm4811_vm7, %v1732_v38, %v5213_v17  ;;  %v1671_v37 = vsel %vm1670_vm14, %v1668_v34, %v1665_v11  ;;  %v1285_v44 = vmax.f32 %v5240_v8, 0.0  ;;  %v1290_v19 = vmax.f32 %v5248_v40, 0.0  ;;  %v4284_v57 = vpop.eup %4283 }
 0x354   : > { %3402 = vst [vmem:[%s4827_s13 + $0x188] sm:$0xff] %v1766_v31  ;;  %v1735_v21 = vadd.f32 %v1671_v37, %v6417_v16  ;;  %v1878_v39 = vmul.f32 1.442695, %v1826_v0  ;;  %v1650_v33 = vmul.f32 %v5312_v22, %v1649_v43  ;;  %4289 = vpow2.f32 %v1412_v48 }
 0x355   : > { %v1418_v36 = vmul.f32 1.442695, %v1355_v3  ;;  %v1647_v50 = vmul.f32 0.6931472, %v4284_v57  ;;  %vm1652_vm15 = vcmp.lt.f32.partialorder %v1651_v56, 0.0004427343  ;;  %v6418_v38 = vunpack.c.l.bf16 %v5244_v42 }
 0x356   : > { %v5397_v15 = vsel %vm4811_vm7, %v1735_v21, %v5230_v13  ;;  %v1694_v34 = vadd.f32 1.0, %v1693_v35  ;;  %v1884_v54 = vmul.f32 1.442695, %v1829_v14  ;;  %v1880_v45 = vmul.f32 1.442695, %v1827_v28 }
 0x357   : > { %3405 = vst [vmem:[%s4827_s13 + $0x1b8] sm:$0xff] %v5397_v15  ;;  %4291 = vpow2.f32 %v1418_v36  ;;  %v1321_v0 = vand.u32 2147483647, %v5301_v18  ;;  %v1653_v22 = vsel %vm1652_vm15, %v1650_v33, %v1647_v50  ;;  %v1696_v48 = vand.u32 2147483647, %v5335_v41  ;;  %v4286_v3 = vpop.eup %4285 }
 0x358   : > { %v1902_v11 = vmul.f32 %v4969_v2, %v6418_v38  ;;  %v6419_v43 = vunpack.c.h.bf16 %v5244_v42  ;;  %v1830_v35 = vmul.f32 0.5, %v1766_v31  ;;  %v1733_v14 = vadd.f32 %v1653_v22, %v1285_v44 }
 0x359   : > { %v1353_v28 = vsub.f32 0.0, %v1321_v0  ;;  %v1778_v37 = vunpack.c.l.bf16 %v216_v60  ;;  %v1695_v16 = vmul.f32 %v5335_v41, %v1694_v34  ;;  %v1779_v57 = vunpack.c.h.bf16 %v216_v60  ;;  %v220_v34 = vld [vmem:[%s4503_s24 + $0x44] ss:$8 sps:$4 sm:$0xff]  }
 0x35a   : > { %v1903_v56 = vmul.f32 %v4973_v55, %v6419_v43  ;;  %v1780_v33 = vunpack.c.l.bf16 %v218_v4  ;;  %v1767_v2 = vsel %vm4811_vm7, %v1733_v14, %v5240_v8  ;;  %v1692_v42 = vmul.f32 0.6931472, %v4286_v3  ;;  %v6422_v14 = vld [vmem:[#allocation3_spill] sm:$0xff] }
 0x35b   : > { %v1414_v55 = vmul.f32 1.442695, %v1353_v28  ;;  %v1934_v31 = vsel %vm4811_vm7, %v1902_v11, %v4696_v46  ;;  %3403 = vst [vmem:[%s4827_s13 + $0x198] sm:$0xff] %v1767_v2  ;;  %vm1697_vm0 = vcmp.lt.f32.partialorder %v1696_v48, 0.0004427343  ;;  %v1906_v44 = vmul.f32 %v4996_v29, %v1778_v37 }
 0x35c   : > { %v1935_v21 = vsel %vm4811_vm7, %v1903_v56, %v4704_v51  ;;  %v1907_v51 = vmul.f32 %v5021_v24, %v1779_v57  ;;  %v1831_v36 = vmul.f32 0.5, %v1767_v2  ;;  %v1698_v60 = vsel %vm1697_vm0, %v1695_v16, %v1692_v42  ;;  %v5423_v0 = vpop.eup %4287  ;;  %v222_v37 = vld [vmem:[%s4503_s24 + $0x54] ss:$8 sps:$4 sm:$0xff]  }
 0x35d   : > { %v1966_v41 = vpack.c.bf16 %v1935_v21, %v1934_v31  ;;  %4293 = vpow2.f32 %v1414_v55  ;;  %v1781_v50 = vunpack.c.h.bf16 %v218_v4  ;;  %v1738_v22 = vadd.f32 %v1698_v60, %v1290_v19  ;;  %v6420_v19 = vld [vmem:[#allocation15_spill] sm:$0xff]  ;;  %v226_v42 = vld [vmem:[%s4503_s24 + $0x74] ss:$8 sps:$4 sm:$0xff]  }
 0x35e   : > { %v1938_v46 = vsel %vm4811_vm7, %v1906_v44, %v4712_v1  ;;  %v1939_v29 = vsel %vm4811_vm7, %v1907_v51, %v4720_v7  ;;  %v1908_v24 = vmul.f32 %v4992_v25, %v1780_v33  ;;  %v5432_v48 = vpop.eup %4289  ;;  %4295 = vpow2.f32 %v1878_v39  ;;  %v224_v21 = vld [vmem:[%s4503_s24 + $0x64] ss:$8 sps:$4 sm:$0xff]  }
 0x35f   : > { %3931 = vmatprep.mubr.bf16.mxu1 %v1966_v41  ;;  %v1886_v4 = vmul.f32 1.442695, %v1830_v35  ;;  %v1968_v38 = vpack.c.bf16 %v1939_v29, %v1938_v46  ;;  %v1909_v11 = vmul.f32 %v6420_v19, %v1781_v50  ;;  %4297 = vpow2.f32 %v1884_v54  ;;  %v6423_v51 = vld [vmem:[#allocation7_spill] sm:$0xff] }
 0x360   : > { %3932 = vmatmul.mubr.bf16.vlgmr.msra.gmra.mrb[32].mxu1 %v4959_v47  ;;  %v5439_v1 = vsel %vm4811_vm7, %v1738_v22, %v5248_v40  ;;  %v1672_v7 = vadd.f32 1.0, %v5432_v48  ;;  %v1782_v43 = vunpack.c.l.bf16 %v220_v34  ;;  %4299 = vpow2.f32 %v1880_v45  ;;  %v6421_v47 = vld [vmem:[#allocation4_spill] sm:$0xff] }
 0x361   : > { %v5442_v25 = vpop.eup %4291  ;;  %v1888_v39 = vmul.f32 1.442695, %v1831_v36  ;;  %3408 = vst [vmem:[%s4827_s13 + $0x1e8] sm:$0xff] %v5439_v1  ;;  %3935 = vmatprep.mubr.bf16.mxu1 %v1968_v38  ;;  %v1941_v54 = vsel %vm4811_vm7, %v1909_v11, %v6421_v47  ;;  %v1783_v56 = vunpack.c.h.bf16 %v220_v34  ;;  %v1940_v28 = vsel %vm4811_vm7, %v1908_v24, %v6422_v14  ;;  %v6425_v47 = vld [vmem:[#allocation5_spill] sm:$0xff] }
 0x362   : > { %4301 = vlog2.f32 %v1672_v7  ;;  %v1699_v35 = vadd.f32 1.0, %v5442_v25  ;;  %v1288_v45 = vmax.f32 %v5287_v63, 0.0  ;;  %v1291_v3 = vmax.f32 %v5294_v59, 0.0 }
 0x363   : > { %4303 = vpow2.f32 %v1886_v4  ;;  %v1969_v16 = vpack.c.bf16 %v1941_v54, %v1940_v28  ;;  %v5458_v57 = vmul.f32 0.5, %v5375_v27  ;;  %v1675_v33 = vmul.f32 -0.5, %v5432_v48  ;;  %v6426_v28 = vld [vmem:[#allocation8_spill] sm:$0xff] }
 0x364   : > { %4305 = vlog2.f32 %v1699_v35  ;;  %v1910_v2 = vmul.f32 %v5133_v6, %v1782_v43  ;;  %v5464_v55 = vmul.f32 0.5, %v5397_v15  ;;  %v1911_v31 = vmul.f32 %v5215_v52, %v1783_v56  ;;  %v6424_v15 = vld [vmem:[#allocation16_spill] sm:$0xff]  ;;  %v228_v35 = vld [vmem:[%s4503_s24 + $0x84] ss:$8 sps:$4 sm:$0xff]  }
 0x365   : > { %4307 = vpow2.f32 %v1888_v39  ;;  %v1784_v41 = vunpack.c.l.bf16 %v222_v37  ;;  %v1702_v44 = vmul.f32 -0.5, %v5442_v25  ;;  %v1785_v36 = vunpack.c.h.bf16 %v222_v37 }
 0x366   : > { %v1942_v27 = vsel %vm4811_vm7, %v1910_v2, %v6423_v51  ;;  %v1786_v60 = vunpack.c.l.bf16 %v224_v21  ;;  %v1943_v6 = vsel %vm4811_vm7, %v1911_v31, %v4911_v49  ;;  %v1787_v22 = vunpack.c.h.bf16 %v224_v21 }
 0x367   : > { %v5471_v50 = vpop.eup %4293  ;;  %v1912_v34 = vmul.f32 %v6424_v15, %v1784_v41  ;;  %v1788_v52 = vunpack.c.l.bf16 %v226_v42  ;;  %v1676_v46 = vadd.f32 1.0, %v1675_v33  ;;  %v1678_v29 = vand.u32 2147483647, %v5432_v48 }
 0x368   : > { %3936 = vmatmul.mubr.bf16.gmra.mrb[36].mxu1 %v1969_v16  ;;  %v1681_v24 = vadd.f32 1.0, %v5471_v50  ;;  %v1970_v4 = vpack.c.bf16 %v1943_v6, %v1942_v27  ;;  %v5479_v38 = vpop.eup %4295  ;;  %v1705_v19 = vand.u32 2147483647, %v5442_v25  ;;  %v1913_v11 = vmul.f32 %v5166_v61, %v1785_v36  ;;  %v6428_v36 = vld [vmem:[#allocation10_spill] sm:$0xff] }
 0x369   : > { %v1914_v7 = vmul.f32 %v5223_v58, %v1786_v60  ;;  %v1915_v49 = vmul.f32 %v5257_v30, %v1787_v22  ;;  %v5485_v43 = vpop.eup %4297  ;;  %v1703_v39 = vadd.f32 1.0, %v1702_v44  ;;  %v1944_v54 = vsel %vm4811_vm7, %v1912_v34, %v6425_v47  ;;  %v6429_v22 = vld [vmem:[#allocation19_spill] sm:$0xff] }
 0x36a   : > { %4309 = vlog2.f32 %v1681_v24  ;;  %3939 = vmatprep.mubr.bf16.mxu1 %v1970_v4  ;;  %v1789_v56 = vunpack.c.h.bf16 %v226_v42  ;;  %v4300_v14 = vpop.eup %4299  ;;  %v1945_v61 = vsel %vm4811_vm7, %v1913_v11, %v6426_v28  ;;  %v1916_v37 = vmul.f32 %v5220_v5, %v1788_v52  ;;  %v6427_v5 = vld [vmem:[#allocation9_spill] sm:$0xff]  ;;  %v6431_v28 = vld [vmem:[#allocation12_spill] sm:$0xff] }
 0x36b   : > { %v1946_v58 = vsel %vm4811_vm7, %v1914_v7, %v4929_v23  ;;  %v1947_v30 = vsel %vm4811_vm7, %v1915_v49, %v4964_v26  ;;  %v1677_v21 = vmul.f32 %v5432_v48, %v1676_v46  ;;  %v1971_v33 = vpack.c.bf16 %v1945_v61, %v1944_v54  ;;  %v232_v46 = vld [vmem:[%s4503_s24 + $0xa4] ss:$8 sps:$4 sm:$0xff]   ;;  %v230_v4 = vld [vmem:[%s4503_s24 + $0x94] ss:$8 sps:$4 sm:$0xff]  }
 0x36c   : > { %v4302_v16 = vpop.eup %4301  ;;  %v1972_v2 = vpack.c.bf16 %v1947_v30, %v1946_v58  ;;  %v1917_v42 = vmul.f32 %v5252_v12, %v1789_v56  ;;  %v1684_v44 = vmul.f32 -0.5, %v5471_v50  ;;  %v1790_v23 = vunpack.c.l.bf16 %v228_v35  ;;  %v6430_v54 = vld [vmem:[#allocation14_spill] sm:$0xff] }
 0x36d   : > { %v5503_v31 = vpop.eup %4303  ;;  %v1674_v41 = vmul.f32 0.6931472, %v4302_v16  ;;  %v1791_v51 = vunpack.c.h.bf16 %v228_v35  ;;  %vm1679_vm1 = vcmp.lt.f32.partialorder %v1678_v29, 0.0004427343  ;;  %v1704_v26 = vmul.f32 %v5442_v25, %v1703_v39 }
 0x36e   : > { %v4306_v27 = vpop.eup %4305  ;;  %v1948_v48 = vsel %vm4811_vm7, %v1916_v37, %v6427_v5  ;;  %v1949_v12 = vsel %vm4811_vm7, %v1917_v42, %v6428_v36  ;;  %v1918_v52 = vmul.f32 %v6429_v22, %v1790_v23  ;;  %vm1706_vm2 = vcmp.lt.f32.partialorder %v1705_v19, 0.0004427343  ;;  %v6433_v5 = vld [vmem:[#allocation18_spill] sm:$0xff] }
 0x36f   : > { %v5513_v60 = vpop.eup %4307  ;;  %v1680_v6 = vsel %vm1679_vm1, %v1677_v21, %v1674_v41  ;;  %v1701_v15 = vmul.f32 0.6931472, %v4306_v27  ;;  %v1973_v34 = vpack.c.bf16 %v1949_v12, %v1948_v48  ;;  %v1687_v29 = vand.u32 2147483647, %v5471_v50  ;;  %v6432_v41 = vld [vmem:[#allocation20_spill] sm:$0xff] }
 0x370   : > { %3940 = vmatmul.mubr.bf16.gmra.mrb[40].mxu1 %v1971_v33  ;;  %v1736_v25 = vadd.f32 %v1680_v6, %v1288_v45  ;;  %v1919_v24 = vmul.f32 %v5306_v62, %v1791_v51  ;;  %v1685_v7 = vadd.f32 1.0, %v1684_v44  ;;  %v1793_v49 = vunpack.c.h.bf16 %v230_v4  ;;  %v234_v48 = vld [vmem:[%s4503_s24 + $0xb4] ss:$8 sps:$4 sm:$0xff]  }
 0x371   : > { %3943 = vmatprep.mubr.bf16.mxu1 %v1972_v2  ;;  %v1707_v11 = vsel %vm1706_vm2, %v1704_v26, %v1701_v15  ;;  %v1795_v39 = vunpack.c.h.bf16 %v232_v46  ;;  %v1794_v56 = vunpack.c.l.bf16 %v232_v46  ;;  %v1890_v62 = vmul.f32 1.442695, %v5458_v57  ;;  %v6434_v15 = vld [vmem:[#allocation13_spill] sm:$0xff] }
 0x372   : > { %v1770_v47 = vsel %vm4811_vm7, %v1736_v25, %v5287_v63  ;;  %v1739_v45 = vadd.f32 %v1707_v11, %v1291_v3  ;;  %v1951_v19 = vsel %vm4811_vm7, %v1919_v24, %v6430_v54  ;;  %v1950_v61 = vsel %vm4811_vm7, %v1918_v52, %v6431_v28  ;;  %v6435_v25 = vld [vmem:[#allocation11_spill] sm:$0xff] }
 0x373   : > { %v1834_v35 = vmul.f32 0.5, %v1770_v47  ;;  %3406 = vst [vmem:[%s4827_s13 + $0x1c8] sm:$0xff] %v1770_v47  ;;  %v1892_v30 = vmul.f32 1.442695, %v5464_v55  ;;  %v1974_v37 = vpack.c.bf16 %v1951_v19, %v1950_v61  ;;  %v1792_v16 = vunpack.c.l.bf16 %v230_v4 }
 0x374   : > { %v4310_v58 = vpop.eup %4309  ;;  %v1773_v3 = vsel %vm4811_vm7, %v1739_v45, %v5294_v59  ;;  %v1686_v57 = vmul.f32 %v5471_v50, %v1685_v7  ;;  %v1923_v2 = vmul.f32 %v4300_v14, %v1795_v39  ;;  %v1289_v42 = vmax.f32 %v5301_v18, 0.0  ;;  %v236_v14 = vld [vmem:[%s4503_s24 + $0xc4] ss:$8 sps:$4 sm:$0xff]   ;;  %v242_v45 = vld [vmem:[%s4503_s24 + $0xf4] ss:$8 sps:$4 sm:$0xff]  }
 0x375   : > { %v1837_v21 = vmul.f32 0.5, %v1773_v3  ;;  %3409 = vst [vmem:[%s4827_s13 + $0x1f8] sm:$0xff] %v1773_v3  ;;  %v1683_v33 = vmul.f32 0.6931472, %v4310_v58  ;;  %vm1688_vm3 = vcmp.lt.f32.partialorder %v1687_v29, 0.0004427343  ;;  %v1921_v44 = vmul.f32 %v6432_v41, %v1793_v49 }
 0x376   : > { %v1922_v55 = vmul.f32 %v5479_v38, %v1794_v56  ;;  %4311 = vpow2.f32 %v1890_v62  ;;  %v1894_v23 = vmul.f32 1.442695, %v1834_v35  ;;  %v1920_v50 = vmul.f32 %v6433_v5, %v1792_v16  ;;  %v238_v62 = vld [vmem:[%s4503_s24 + $0xd4] ss:$8 sps:$4 sm:$0xff]   ;;  %v240_v35 = vld [vmem:[%s4503_s24 + $0xe4] ss:$8 sps:$4 sm:$0xff]  }
 0x377   : > { %v1900_v51 = vmul.f32 1.442695, %v1837_v21  ;;  %v1689_v27 = vsel %vm1688_vm3, %v1686_v57, %v1683_v33  ;;  %4313 = vpow2.f32 %v1892_v30  ;;  %v1836_v36 = vmul.f32 0.5, %v5439_v1 }
 0x378   : > { %3944 = vmatmul.mubr.bf16.gmra.mrb[44].mxu1 %v1973_v34  ;;  %v1737_v26 = vadd.f32 %v1689_v27, %v1289_v42  ;;  %v1955_v38 = vsel %vm4811_vm7, %v1923_v2, %v5181_v20  ;;  %v1799_v12 = vunpack.c.h.bf16 %v236_v14  ;;  %v1953_v34 = vsel %vm4811_vm7, %v1921_v44, %v6434_v15  ;;  %v5629_v15 = vld [vmem:[%s6291_s2] sm:$0xff] }
 0x379   : > { %3947 = vmatprep.mubr.bf16.mxu1 %v1974_v37  ;;  %4315 = vpow2.f32 %v1900_v51  ;;  %v1954_v22 = vsel %vm4811_vm7, %v1922_v55, %v5118_v10  ;;  %v1797_v52 = vunpack.c.h.bf16 %v234_v48  ;;  %v1796_v46 = vunpack.c.l.bf16 %v234_v48  ;;  %v4124_v48 = vld [vmem:[%s6290_s1 + $0x148] sm:$0xff]  }
 0x37a   : > { %v1771_v6 = vsel %vm4811_vm7, %v1737_v26, %v5301_v18  ;;  %4317 = vpow2.f32 %v1894_v23  ;;  %v1798_v20 = vunpack.c.l.bf16 %v236_v14  ;;  %v1952_v29 = vsel %vm4811_vm7, %v1920_v50, %v6435_v25  ;;  %v4127_v14 = vld [vmem:[%s6290_s1 + $0x160] sm:$0xff]  }
 0x37b   : > { %v1835_v1 = vmul.f32 0.5, %v1771_v6  ;;  %3407 = vst [vmem:[%s4827_s13 + $0x1d8] sm:$0xff] %v1771_v6  ;;  %v1976_v24 = vpack.c.bf16 %v1955_v38, %v1954_v22  ;;  %v1975_v11 = vpack.c.bf16 %v1953_v34, %v1952_v29  ;;  %v1927_v7 = vmul.f32 %v5513_v60, %v1799_v12  ;;  %v4129_v38 = vld [vmem:[%s6290_s1 + $0x170] sm:$0xff]   ;;  %v6437_v12 = vld [vmem:[#allocation2_spill] sm:$0xff] }
 0x37c   : > { %v1925_v10 = vmul.f32 %v5485_v43, %v1797_v52  ;;  %v1898_v49 = vmul.f32 1.442695, %v1836_v36  ;;  %v1924_v39 = vmul.f32 %v5423_v0, %v1796_v46  ;;  %v1926_v47 = vmul.f32 %v5503_v31, %v1798_v20  ;;  %v6436_v0 = vld [vmem:[#allocation17_spill] sm:$0xff]  ;;  %v4128_v36 = vld [vmem:[%s6290_s1 + $0x168] sm:$0xff]  }
 0x37d   : > { %v1896_v4 = vmul.f32 1.442695, %v1835_v1  ;;  %v1805_v54 = vunpack.c.h.bf16 %v242_v45  ;;  %v1959_v56 = vsel %vm4811_vm7, %v1927_v7, %v5240_v8  ;;  %v1801_v28 = vunpack.c.h.bf16 %v238_v62 }
 0x37e   : > { %v1957_v43 = vsel %vm4811_vm7, %v1925_v10, %v5175_v9  ;;  %v1956_v31 = vsel %vm4811_vm7, %v1924_v39, %v6436_v0  ;;  %v1958_v58 = vsel %vm4811_vm7, %v1926_v47, %v5213_v17  ;;  %v1800_v8 = vunpack.c.l.bf16 %v238_v62 }
 0x37f   : > { %4319 = vpow2.f32 %v1896_v4  ;;  %v1978_v30 = vpack.c.bf16 %v1959_v56, %v1958_v58  ;;  %v1802_v3 = vunpack.c.l.bf16 %v240_v35  ;;  %v1977_v21 = vpack.c.bf16 %v1957_v43, %v1956_v31 }
 0x380   : > { %3948 = vmatmul.mubr.bf16.gmra.mrb[48].mxu1 %v1975_v11  ;;  %v4312_v19 = vpop.eup %4311  ;;  %4321 = vpow2.f32 %v1898_v49  ;;  %v1803_v57 = vunpack.c.h.bf16 %v240_v35  ;;  %v1804_v51 = vunpack.c.l.bf16 %v242_v45  ;;  %v2001_v6 = vsub.s32 3, %v6437_v12 }
 0x381   : > { %3951 = vmatprep.mubr.bf16.mxu1 %v1976_v24  ;;  %v4314_v60 = vpop.eup %4313  ;;  %v1928_v2 = vmul.f32 %v4312_v19, %v1800_v8 }
 0x382   : > { %v1929_v33 = vmul.f32 %v4314_v60, %v1801_v28  ;;  %v5632_v34 = vrot.slane %v5629_v15, %v2001_v6 }
 0x383   : > { %v4316_v61 = vpop.eup %4315  ;;  %v1960_v55 = vsel %vm4811_vm7, %v1928_v2, %v5190_v53 }
 0x384   : > { %v1933_v37 = vmul.f32 %v4316_v61, %v1805_v54  ;;  %v4318_v16 = vpop.eup %4317  ;;  %v1961_v17 = vsel %vm4811_vm7, %v1929_v33, %v5230_v13 }
 0x385   : > { %v1930_v42 = vmul.f32 %v4318_v16, %v1802_v3  ;;  %v1979_v26 = vpack.c.bf16 %v1961_v17, %v1960_v55 }
 0x386   : > { %v1965_v9 = vsel %vm4811_vm7, %v1933_v37, %v5294_v59 }
 0x387   : > { %v1962_v23 = vsel %vm4811_vm7, %v1930_v42, %v5287_v63  ;;  %v4122_v63 = vld [vmem:[%s6290_s1 + $0x138] sm:$0xff]  }
 0x388   : > { %3952 = vmatmul.mubr.bf16.gmra.mrb[52].mxu1 %v1977_v21  ;;  %3977 = vmatprep.subr.bf16.mxu0 %v4122_v63 }
 0x389   : > { %3955 = vmatprep.mubr.bf16.mxu1 %v1978_v30  ;;  %v4320_v41 = vpop.eup %4319  ;;  %3978 = vmatpush3.bf16.msra.mxu0 %v4122_v63 }
 0x38a   : > { %v1931_v44 = vmul.f32 %v4320_v41, %v1803_v57  ;;  %v4322_v27 = vpop.eup %4321 }
 0x38b   : > { %v1932_v13 = vmul.f32 %v4322_v27, %v1804_v51 }
 0x38c   : > { %v1963_v59 = vsel %vm4811_vm7, %v1931_v44, %v5301_v18  ;;  %v4123_v18 = vld [vmem:[%s6290_s1 + $0x140] sm:$0xff]  }
 0x38d   : > { %v1980_v5 = vpack.c.bf16 %v1963_v59, %v1962_v23  ;;  %v1964_v50 = vsel %vm4811_vm7, %v1932_v13, %v5248_v40  ;;  %4011 = vmatprep.subr.bf16.mxu1 %v4123_v18  ;;  %v4126_v40 = vld [vmem:[%s6290_s1 + $0x158] sm:$0xff]  }
 0x38e   : > { %v1981_v53 = vpack.c.bf16 %v1965_v9, %v1964_v50  ;;  %4012 = vmatpush3.bf16.msra.mxu1 %v4123_v18 }
 0x38f   : > { %4013 = vmatprep.subr.bf16.mxu1 %v4124_v48 }
 0x390   : > { %3956 = vmatmul.mubr.bf16.gmra.mrb[56].mxu1 %v1979_v26 }
 0x391   : > { %3959 = vmatprep.mubr.bf16.mxu1 %v1980_v5 }
 0x392   : > { %4014 = vmatpush3.bf16.msra.mxu1 %v4124_v48 }
 0x393   : > { %4015 = vmatprep.subr.bf16.mxu1 %v4125_v32 }
 0x396   : > { %4016 = vmatpush3.bf16.msra.mxu1 %v4125_v32 }
 0x397   : > { %4017 = vmatprep.subr.bf16.mxu1 %v4126_v40 }
 0x398   : > { %3960 = vmatmul.mubr.bf16.gmra.mrb[60].mxu1 %v1981_v53 }
 0x39a   : > { %4018 = vmatpush3.bf16.msra.mxu1 %v4126_v40 }
 0x39b   : > { %4019 = vmatprep.subr.bf16.mxu1 %v4127_v14 }
 0x39e   : > { %4020 = vmatpush3.bf16.msra.mxu1 %v4127_v14 }
 0x39f   : > { %4021 = vmatprep.subr.bf16.mxu1 %v4128_v36 }
 0x3a2   : > { %4022 = vmatpush3.bf16.msra.mxu1 %v4128_v36 }
 0x3a3   : > { %4023 = vmatprep.subr.bf16.mxu1 %v4129_v38 }
 0x3a6   : > { %4024 = vmatpush3.bf16.msra.mxu1 %v4129_v38 }
 0x433   : > { %v3933_v22 = vpop.f32.mrb[32].mxu1 }
 0x434   : > { %v2094_v52 = vadd.f32 %v3933_v22, %v5632_v34  ;;  %v2085_v1 = vpop.f32.mrb[33].mxu1 }
 0x435   : > { %v2086_v46 = vadd.f32 %v2085_v1, %v5632_v34  ;;  %v3934_v20 = vpop.f32.mrb[34].mxu1 }
 0x436   : > { %v2246_v25 = vmul.f32 0.01, %v2094_v52  ;;  %v2097_v29 = vadd.f32 %v3934_v20, %v5632_v34  ;;  %v2088_v24 = vpop.f32.mrb[35].mxu1  ;;  %vm2214_vm7 = vcmp.ge.f32.partialorder %v2094_v52, 0.0 }
 0x437   : > { %v2244_v4 = vmul.f32 0.01, %v2086_v46  ;;  %v2089_v11 = vadd.f32 %v2088_v24, %v5632_v34  ;;  %vm2212_vm4 = vcmp.ge.f32.partialorder %v2086_v46, 0.0 }
 0x438   : > { %vm2215_vm5 = vcmp.ge.f32.partialorder %v2097_v29, 0.0  ;;  %v2247_v7 = vmul.f32 0.01, %v2097_v29  ;;  %v2278_v49 = vsel %vm2214_vm7, %v2094_v52, %v2246_v25 }
 0x439   : > { %vm2213_vm6 = vcmp.ge.f32.partialorder %v2089_v11, 0.0  ;;  %v2245_v10 = vmul.f32 0.01, %v2089_v11  ;;  %v2276_v54 = vsel %vm2212_vm4, %v2086_v46, %v2244_v4 }
 0x43a   : > { %v2279_v39 = vsel %vm2215_vm5, %v2097_v29, %v2247_v7 }
 0x43b   : > { %v2309_v47 = vpack.c.bf16 %v2279_v39, %v2278_v49  ;;  %v3937_v45 = vpop.f32.mrb[36].mxu1  ;;  %v2277_v19 = vsel %vm2213_vm6, %v2089_v11, %v2245_v10 }
 0x43c   : > { %v2110_v56 = vadd.f32 %v3937_v45, %v5632_v34  ;;  %v2101_v62 = vpop.f32.mrb[37].mxu1  ;;  %v2308_v35 = vpack.c.bf16 %v2277_v19, %v2276_v54 }
 0x43d   : > { %v2102_v60 = vadd.f32 %v2101_v62, %v5632_v34  ;;  %v3938_v43 = vpop.f32.mrb[38].mxu1 }
 0x43e   : > { %v2250_v28 = vmul.f32 0.01, %v2110_v56  ;;  %v2113_v61 = vadd.f32 %v3938_v43, %v5632_v34  ;;  %v2104_v0 = vpop.f32.mrb[39].mxu1  ;;  %3979 = vmatprep.mubr.bf16.mxu0 %v2308_v35  ;;  %vm2218_vm8 = vcmp.ge.f32.partialorder %v2110_v56, 0.0 }
 0x43f   : > { %v2248_v31 = vmul.f32 0.01, %v2102_v60  ;;  %v2105_v58 = vadd.f32 %v2104_v0, %v5632_v34  ;;  %3980 = vmatmul.mubr.bf16.vlgmr.msra.gmra.mrb[64].mxu0 %v2309_v47  ;;  %vm2216_vm9 = vcmp.ge.f32.partialorder %v2102_v60, 0.0 }
 0x440   : > { %vm2219_vm10 = vcmp.ge.f32.partialorder %v2113_v61, 0.0  ;;  %v2251_v30 = vmul.f32 0.01, %v2113_v61  ;;  %v2282_v3 = vsel %vm2218_vm8, %v2110_v56, %v2250_v28 }
 0x441   : > { %vm2217_vm11 = vcmp.ge.f32.partialorder %v2105_v58, 0.0  ;;  %v2249_v8 = vmul.f32 0.01, %v2105_v58  ;;  %v2280_v21 = vsel %vm2216_vm9, %v2102_v60, %v2248_v31 }
 0x442   : > { %v2283_v37 = vsel %vm2219_vm10, %v2113_v61, %v2251_v30 }
 0x443   : > { %v3941_v16 = vpop.f32.mrb[40].mxu1  ;;  %v2281_v33 = vsel %vm2217_vm11, %v2105_v58, %v2249_v8  ;;  %v2311_v57 = vpack.c.bf16 %v2283_v37, %v2282_v3 }
 0x444   : > { %v2126_v9 = vadd.f32 %v3941_v16, %v5632_v34  ;;  %v2117_v2 = vpop.f32.mrb[41].mxu1  ;;  %v2310_v42 = vpack.c.bf16 %v2281_v33, %v2280_v21 }
 0x445   : > { %v2118_v41 = vadd.f32 %v2117_v2, %v5632_v34  ;;  %v3942_v17 = vpop.f32.mrb[42].mxu1 }
 0x446   : > { %v2254_v44 = vmul.f32 0.01, %v2126_v9  ;;  %v2129_v55 = vadd.f32 %v3942_v17, %v5632_v34  ;;  %v2120_v23 = vpop.f32.mrb[43].mxu1  ;;  %3983 = vmatprep.mubr.bf16.mxu0 %v2310_v42  ;;  %vm2222_vm12 = vcmp.ge.f32.partialorder %v2126_v9, 0.0 }
 0x447   : > { %v2252_v59 = vmul.f32 0.01, %v2118_v41  ;;  %v2121_v51 = vadd.f32 %v2120_v23, %v5632_v34  ;;  %3984 = vmatmul.mubr.bf16.gmra.mrb[68].mxu0 %v2311_v57  ;;  %vm2220_vm13 = vcmp.ge.f32.partialorder %v2118_v41, 0.0 }
 0x448   : > { %vm2223_vm14 = vcmp.ge.f32.partialorder %v2129_v55, 0.0  ;;  %v2255_v27 = vmul.f32 0.01, %v2129_v55  ;;  %v2286_v5 = vsel %vm2222_vm12, %v2126_v9, %v2254_v44 }
 0x449   : > { %vm2221_vm15 = vcmp.ge.f32.partialorder %v2121_v51, 0.0  ;;  %v2253_v26 = vmul.f32 0.01, %v2121_v51  ;;  %v2284_v53 = vsel %vm2220_vm13, %v2118_v41, %v2252_v59 }
 0x44a   : > { %v2287_v13 = vsel %vm2223_vm14, %v2129_v55, %v2255_v27 }
 0x44b   : > { %v3945_v50 = vpop.f32.mrb[44].mxu1  ;;  %v2285_v63 = vsel %vm2221_vm15, %v2121_v51, %v2253_v26  ;;  %v2313_v18 = vpack.c.bf16 %v2287_v13, %v2286_v5 }
 0x44c   : > { %v2142_v48 = vadd.f32 %v3945_v50, %v5632_v34  ;;  %v2133_v32 = vpop.f32.mrb[45].mxu1  ;;  %v2312_v40 = vpack.c.bf16 %v2285_v63, %v2284_v53 }
 0x44d   : > { %v2134_v14 = vadd.f32 %v2133_v32, %v5632_v34  ;;  %v3946_v36 = vpop.f32.mrb[46].mxu1 }
 0x44e   : > { %v2258_v38 = vmul.f32 0.01, %v2142_v48  ;;  %v2145_v6 = vadd.f32 %v3946_v36, %v5632_v34  ;;  %v2136_v22 = vpop.f32.mrb[47].mxu1  ;;  %3987 = vmatprep.mubr.bf16.mxu0 %v2312_v40  ;;  %vm2226_vm0 = vcmp.ge.f32.partialorder %v2142_v48, 0.0 }
 0x44f   : > { %v2256_v52 = vmul.f32 0.01, %v2134_v14  ;;  %v2137_v1 = vadd.f32 %v2136_v22, %v5632_v34  ;;  %3988 = vmatmul.mubr.bf16.gmra.mrb[72].mxu0 %v2313_v18  ;;  %vm2224_vm1 = vcmp.ge.f32.partialorder %v2134_v14, 0.0 }
 0x450   : > { %vm2227_vm2 = vcmp.ge.f32.partialorder %v2145_v6, 0.0  ;;  %v2259_v46 = vmul.f32 0.01, %v2145_v6  ;;  %v2290_v25 = vsel %vm2226_vm0, %v2142_v48, %v2258_v38 }
 0x451   : > { %vm2225_vm3 = vcmp.ge.f32.partialorder %v2137_v1, 0.0  ;;  %v2257_v20 = vmul.f32 0.01, %v2137_v1  ;;  %v2288_v4 = vsel %vm2224_vm1, %v2134_v14, %v2256_v52 }
 0x452   : > { %v2291_v29 = vsel %vm2227_vm2, %v2145_v6, %v2259_v46 }
 0x453   : > { %v3949_v24 = vpop.f32.mrb[48].mxu1  ;;  %v2289_v11 = vsel %vm2225_vm3, %v2137_v1, %v2257_v20  ;;  %v2315_v7 = vpack.c.bf16 %v2291_v29, %v2290_v25 }
 0x454   : > { %v2158_v10 = vadd.f32 %v3949_v24, %v5632_v34  ;;  %v2149_v49 = vpop.f32.mrb[49].mxu1  ;;  %v2314_v39 = vpack.c.bf16 %v2289_v11, %v2288_v4 }
 0x455   : > { %v2150_v47 = vadd.f32 %v2149_v49, %v5632_v34  ;;  %v3950_v45 = vpop.f32.mrb[50].mxu1 }
 0x456   : > { %v2262_v54 = vmul.f32 0.01, %v2158_v10  ;;  %v2161_v19 = vadd.f32 %v3950_v45, %v5632_v34  ;;  %v2152_v56 = vpop.f32.mrb[51].mxu1  ;;  %3991 = vmatprep.mubr.bf16.mxu0 %v2314_v39  ;;  %vm2230_vm7 = vcmp.ge.f32.partialorder %v2158_v10, 0.0 }
 0x457   : > { %v2260_v62 = vmul.f32 0.01, %v2150_v47  ;;  %v2153_v35 = vadd.f32 %v2152_v56, %v5632_v34  ;;  %3992 = vmatmul.mubr.bf16.gmra.mrb[76].mxu0 %v2315_v7  ;;  %vm2228_vm4 = vcmp.ge.f32.partialorder %v2150_v47, 0.0 }
 0x458   : > { %vm2231_vm5 = vcmp.ge.f32.partialorder %v2161_v19, 0.0  ;;  %v2263_v60 = vmul.f32 0.01, %v2161_v19  ;;  %v2294_v28 = vsel %vm2230_vm7, %v2158_v10, %v2262_v54 }
 0x459   : > { %vm2229_vm6 = vcmp.ge.f32.partialorder %v2153_v35, 0.0  ;;  %v2261_v43 = vmul.f32 0.01, %v2153_v35  ;;  %v2292_v31 = vsel %vm2228_vm4, %v2150_v47, %v2260_v62 }
 0x45a   : > { %v2295_v61 = vsel %vm2231_vm5, %v2161_v19, %v2263_v60 }
 0x45b   : > { %v3953_v0 = vpop.f32.mrb[52].mxu1  ;;  %v2293_v58 = vsel %vm2229_vm6, %v2153_v35, %v2261_v43  ;;  %v2317_v30 = vpack.c.bf16 %v2295_v61, %v2294_v28  ;;  %v4130_v43 = vld [vmem:[%s6290_s1 + $0x178] sm:$0xff]  }
 0x45c   : > { %v2174_v8 = vadd.f32 %v3953_v0, %v5632_v34  ;;  %v2165_v3 = vpop.f32.mrb[53].mxu1  ;;  %v2316_v37 = vpack.c.bf16 %v2293_v58, %v2292_v31  ;;  %4025 = vmatprep.subr.bf16.mxu1 %v4130_v43 }
 0x45d   : > { %v2166_v16 = vadd.f32 %v2165_v3, %v5632_v34  ;;  %v3954_v21 = vpop.f32.mrb[54].mxu1  ;;  %4026 = vmatpush3.bf16.msra.mxu1 %v4130_v43 }
 0x45e   : > { %v2266_v33 = vmul.f32 0.01, %v2174_v8  ;;  %v2177_v57 = vadd.f32 %v3954_v21, %v5632_v34  ;;  %v2168_v9 = vpop.f32.mrb[55].mxu1  ;;  %3995 = vmatprep.mubr.bf16.mxu0 %v2316_v37  ;;  %vm2234_vm8 = vcmp.ge.f32.partialorder %v2174_v8, 0.0 }
 0x45f   : > { %v2264_v2 = vmul.f32 0.01, %v2166_v16  ;;  %v2169_v42 = vadd.f32 %v2168_v9, %v5632_v34  ;;  %3996 = vmatmul.mubr.bf16.gmra.mrb[80].mxu0 %v2317_v30  ;;  %vm2232_vm9 = vcmp.ge.f32.partialorder %v2166_v16, 0.0 }
 0x460   : > { %vm2235_vm10 = vcmp.ge.f32.partialorder %v2177_v57, 0.0  ;;  %v2267_v41 = vmul.f32 0.01, %v2177_v57  ;;  %v2298_v44 = vsel %vm2234_vm8, %v2174_v8, %v2266_v33 }
 0x461   : > { %vm2233_vm11 = vcmp.ge.f32.partialorder %v2169_v42, 0.0  ;;  %v2265_v17 = vmul.f32 0.01, %v2169_v42  ;;  %v2296_v59 = vsel %vm2232_vm9, %v2166_v16, %v2264_v2 }
 0x462   : > { %v2299_v55 = vsel %vm2235_vm10, %v2177_v57, %v2267_v41 }
 0x463   : > { %v3957_v23 = vpop.f32.mrb[56].mxu1  ;;  %v2297_v51 = vsel %vm2233_vm11, %v2169_v42, %v2265_v17  ;;  %v2319_v27 = vpack.c.bf16 %v2299_v55, %v2298_v44 }
 0x464   : > { %v2190_v26 = vadd.f32 %v3957_v23, %v5632_v34  ;;  %v2181_v5 = vpop.f32.mrb[57].mxu1  ;;  %v2318_v13 = vpack.c.bf16 %v2297_v51, %v2296_v59 }
 0x465   : > { %v2182_v50 = vadd.f32 %v2181_v5, %v5632_v34  ;;  %v3958_v53 = vpop.f32.mrb[58].mxu1 }
 0x466   : > { %v2270_v63 = vmul.f32 0.01, %v2190_v26  ;;  %v2193_v18 = vadd.f32 %v3958_v53, %v5632_v34  ;;  %v2184_v48 = vpop.f32.mrb[59].mxu1  ;;  %3999 = vmatprep.mubr.bf16.mxu0 %v2318_v13  ;;  %vm2238_vm12 = vcmp.ge.f32.partialorder %v2190_v26, 0.0 }
 0x467   : > { %v2268_v32 = vmul.f32 0.01, %v2182_v50  ;;  %v2185_v40 = vadd.f32 %v2184_v48, %v5632_v34  ;;  %4000 = vmatmul.mubr.bf16.gmra.mrb[84].mxu0 %v2319_v27  ;;  %vm2236_vm13 = vcmp.ge.f32.partialorder %v2182_v50, 0.0 }
 0x468   : > { %vm2239_vm14 = vcmp.ge.f32.partialorder %v2193_v18, 0.0  ;;  %v2271_v14 = vmul.f32 0.01, %v2193_v18  ;;  %v2302_v38 = vsel %vm2238_vm12, %v2190_v26, %v2270_v63 }
 0x469   : > { %vm2237_vm15 = vcmp.ge.f32.partialorder %v2185_v40, 0.0  ;;  %v2269_v36 = vmul.f32 0.01, %v2185_v40  ;;  %v2300_v52 = vsel %vm2236_vm13, %v2182_v50, %v2268_v32 }
 0x46a   : > { %v2303_v6 = vsel %vm2239_vm14, %v2193_v18, %v2271_v14 }
 0x46b   : > { %v3961_v22 = vpop.f32.mrb[60].mxu1  ;;  %v2301_v1 = vsel %vm2237_vm15, %v2185_v40, %v2269_v36  ;;  %v2321_v46 = vpack.c.bf16 %v2303_v6, %v2302_v38 }
 0x46c   : > { %v2206_v20 = vadd.f32 %v3961_v22, %v5632_v34  ;;  %v2197_v25 = vpop.f32.mrb[61].mxu1  ;;  %v2320_v29 = vpack.c.bf16 %v2301_v1, %v2300_v52 }
 0x46d   : > { %v2198_v24 = vadd.f32 %v2197_v25, %v5632_v34  ;;  %v3962_v4 = vpop.f32.mrb[62].mxu1 }
 0x46e   : > { %v2274_v11 = vmul.f32 0.01, %v2206_v20  ;;  %v2209_v7 = vadd.f32 %v3962_v4, %v5632_v34  ;;  %v2200_v10 = vpop.f32.mrb[63].mxu1  ;;  %4003 = vmatprep.mubr.bf16.mxu0 %v2320_v29  ;;  %vm2242_vm0 = vcmp.ge.f32.partialorder %v2206_v20, 0.0 }
 0x46f   : > { %v2272_v49 = vmul.f32 0.01, %v2198_v24  ;;  %v2201_v39 = vadd.f32 %v2200_v10, %v5632_v34  ;;  %4004 = vmatmul.mubr.bf16.gmra.mrb[88].mxu0 %v2321_v46  ;;  %vm2240_vm1 = vcmp.ge.f32.partialorder %v2198_v24, 0.0  ;;  %v2343_v34 = vsub.s32 4, %v6437_v12 }
 0x470   : > { %vm2243_vm2 = vcmp.ge.f32.partialorder %v2209_v7, 0.0  ;;  %v2275_v47 = vmul.f32 0.01, %v2209_v7  ;;  %v2306_v54 = vsel %vm2242_vm0, %v2206_v20, %v2274_v11 }
 0x471   : > { %vm2241_vm3 = vcmp.ge.f32.partialorder %v2201_v39, 0.0  ;;  %v2273_v45 = vmul.f32 0.01, %v2201_v39  ;;  %v2304_v56 = vsel %vm2240_vm1, %v2198_v24, %v2272_v49  ;;  %v5671_v28 = vrot.slane %v5629_v15, %v2343_v34 }
 0x472   : > { %v2307_v19 = vsel %vm2243_vm2, %v2209_v7, %v2275_v47 }
 0x473   : > { %v2305_v62 = vsel %vm2241_vm3, %v2201_v39, %v2273_v45  ;;  %v2323_v35 = vpack.c.bf16 %v2307_v19, %v2306_v54 }
 0x474   : > { %v2322_v60 = vpack.c.bf16 %v2305_v62, %v2304_v56 }
 0x476   : > { %4007 = vmatprep.mubr.bf16.mxu0 %v2322_v60 }
 0x477   : > { %4008 = vmatmul.mubr.bf16.gmra.mrb[92].mxu0 %v2323_v35 }
 0x512   : > { %v3981_v61 = vpop.f32.mrb[64].mxu0 }
 0x513   : > { %v2436_v0 = vadd.f32 %v3981_v61, %v5671_v28  ;;  %v2427_v31 = vpop.f32.mrb[65].mxu0 }
 0x514   : > { %v2428_v58 = vadd.f32 %v2427_v31, %v5671_v28  ;;  %v3982_v30 = vpop.f32.mrb[66].mxu0 }
 0x515   : > { %v2588_v8 = vmul.f32 0.01, %v2436_v0  ;;  %v2439_v3 = vadd.f32 %v3982_v30, %v5671_v28  ;;  %v2430_v37 = vpop.f32.mrb[67].mxu0  ;;  %vm2556_vm7 = vcmp.ge.f32.partialorder %v2436_v0, 0.0 }
 0x516   : > { %v2586_v16 = vmul.f32 0.01, %v2428_v58  ;;  %v2431_v21 = vadd.f32 %v2430_v37, %v5671_v28  ;;  %vm2554_vm4 = vcmp.ge.f32.partialorder %v2428_v58, 0.0 }
 0x517   : > { %vm2557_vm5 = vcmp.ge.f32.partialorder %v2439_v3, 0.0  ;;  %v2589_v33 = vmul.f32 0.01, %v2439_v3  ;;  %v2620_v9 = vsel %vm2556_vm7, %v2436_v0, %v2588_v8 }
 0x518   : > { %vm2555_vm6 = vcmp.ge.f32.partialorder %v2431_v21, 0.0  ;;  %v2587_v57 = vmul.f32 0.01, %v2431_v21  ;;  %v2618_v17 = vsel %vm2554_vm4, %v2428_v58, %v2586_v16 }
 0x519   : > { %v2621_v2 = vsel %vm2557_vm5, %v2439_v3, %v2589_v33 }
 0x51a   : > { %v2651_v42 = vpack.c.bf16 %v2621_v2, %v2620_v9  ;;  %v3985_v41 = vpop.f32.mrb[68].mxu0  ;;  %v2619_v44 = vsel %vm2555_vm6, %v2431_v21, %v2587_v57 }
 0x51b   : > { %v2452_v55 = vadd.f32 %v3985_v41, %v5671_v28  ;;  %v2443_v23 = vpop.f32.mrb[69].mxu0  ;;  %v2650_v59 = vpack.c.bf16 %v2619_v44, %v2618_v17 }
 0x51c   : > { %v2444_v51 = vadd.f32 %v2443_v23, %v5671_v28  ;;  %v3986_v27 = vpop.f32.mrb[70].mxu0 }
 0x51d   : > { %v2592_v26 = vmul.f32 0.01, %v2452_v55  ;;  %v2455_v5 = vadd.f32 %v3986_v27, %v5671_v28  ;;  %v2446_v13 = vpop.f32.mrb[71].mxu0  ;;  %4027 = vmatprep.mubr.bf16.mxu1 %v2650_v59  ;;  %vm2560_vm8 = vcmp.ge.f32.partialorder %v2452_v55, 0.0 }
 0x51e   : > { %v2590_v50 = vmul.f32 0.01, %v2444_v51  ;;  %v2447_v53 = vadd.f32 %v2446_v13, %v5671_v28  ;;  %4028 = vmatmul.mubr.bf16.vlgmr.msra.gmra.mrb[64].mxu1 %v2651_v42  ;;  %vm2558_vm9 = vcmp.ge.f32.partialorder %v2444_v51, 0.0 }
 0x51f   : > { %vm2561_vm10 = vcmp.ge.f32.partialorder %v2455_v5, 0.0  ;;  %v2593_v63 = vmul.f32 0.01, %v2455_v5  ;;  %v2624_v48 = vsel %vm2560_vm8, %v2452_v55, %v2592_v26 }
 0x520   : > { %vm2559_vm11 = vcmp.ge.f32.partialorder %v2447_v53, 0.0  ;;  %v2591_v18 = vmul.f32 0.01, %v2447_v53  ;;  %v2622_v14 = vsel %vm2558_vm9, %v2444_v51, %v2590_v50 }
 0x521   : > { %v2625_v32 = vsel %vm2561_vm10, %v2455_v5, %v2593_v63 }
 0x522   : > { %v3989_v40 = vpop.f32.mrb[72].mxu0  ;;  %v2623_v36 = vsel %vm2559_vm11, %v2447_v53, %v2591_v18  ;;  %v2653_v38 = vpack.c.bf16 %v2625_v32, %v2624_v48 }
 0x523   : > { %v2468_v6 = vadd.f32 %v3989_v40, %v5671_v28  ;;  %v2459_v22 = vpop.f32.mrb[73].mxu0  ;;  %v2652_v52 = vpack.c.bf16 %v2623_v36, %v2622_v14 }
 0x524   : > { %v2460_v1 = vadd.f32 %v2459_v22, %v5671_v28  ;;  %v3990_v46 = vpop.f32.mrb[74].mxu0 }
 0x525   : > { %v2596_v20 = vmul.f32 0.01, %v2468_v6  ;;  %v2471_v25 = vadd.f32 %v3990_v46, %v5671_v28  ;;  %v2462_v29 = vpop.f32.mrb[75].mxu0  ;;  %4031 = vmatprep.mubr.bf16.mxu1 %v2652_v52  ;;  %vm2564_vm12 = vcmp.ge.f32.partialorder %v2468_v6, 0.0 }
 0x526   : > { %v2594_v24 = vmul.f32 0.01, %v2460_v1  ;;  %v2463_v4 = vadd.f32 %v2462_v29, %v5671_v28  ;;  %4032 = vmatmul.mubr.bf16.gmra.mrb[68].mxu1 %v2653_v38  ;;  %vm2562_vm13 = vcmp.ge.f32.partialorder %v2460_v1, 0.0 }
 0x527   : > { %vm2565_vm14 = vcmp.ge.f32.partialorder %v2471_v25, 0.0  ;;  %v2597_v11 = vmul.f32 0.01, %v2471_v25  ;;  %v2628_v10 = vsel %vm2564_vm12, %v2468_v6, %v2596_v20 }
 0x528   : > { %vm2563_vm15 = vcmp.ge.f32.partialorder %v2463_v4, 0.0  ;;  %v2595_v7 = vmul.f32 0.01, %v2463_v4  ;;  %v2626_v47 = vsel %vm2562_vm13, %v2460_v1, %v2594_v24 }
 0x529   : > { %v2629_v49 = vsel %vm2565_vm14, %v2471_v25, %v2597_v11 }
 0x52a   : > { %v3993_v39 = vpop.f32.mrb[76].mxu0  ;;  %v2627_v45 = vsel %vm2563_vm15, %v2463_v4, %v2595_v7  ;;  %v2655_v54 = vpack.c.bf16 %v2629_v49, %v2628_v10 }
 0x52b   : > { %v2484_v19 = vadd.f32 %v3993_v39, %v5671_v28  ;;  %v2475_v56 = vpop.f32.mrb[77].mxu0  ;;  %v2654_v62 = vpack.c.bf16 %v2627_v45, %v2626_v47 }
 0x52c   : > { %v2476_v35 = vadd.f32 %v2475_v56, %v5671_v28  ;;  %v3994_v60 = vpop.f32.mrb[78].mxu0 }
 0x52d   : > { %v2600_v43 = vmul.f32 0.01, %v2484_v19  ;;  %v2487_v34 = vadd.f32 %v3994_v60, %v5671_v28  ;;  %v2478_v61 = vpop.f32.mrb[79].mxu0  ;;  %4035 = vmatprep.mubr.bf16.mxu1 %v2654_v62  ;;  %vm2568_vm0 = vcmp.ge.f32.partialorder %v2484_v19, 0.0 }
 0x52e   : > { %v2598_v0 = vmul.f32 0.01, %v2476_v35  ;;  %v2479_v31 = vadd.f32 %v2478_v61, %v5671_v28  ;;  %4036 = vmatmul.mubr.bf16.gmra.mrb[72].mxu1 %v2655_v54  ;;  %vm2566_vm1 = vcmp.ge.f32.partialorder %v2476_v35, 0.0 }
 0x52f   : > { %vm2569_vm2 = vcmp.ge.f32.partialorder %v2487_v34, 0.0  ;;  %v2601_v58 = vmul.f32 0.01, %v2487_v34  ;;  %v2632_v8 = vsel %vm2568_vm0, %v2484_v19, %v2600_v43 }
 0x530   : > { %vm2567_vm3 = vcmp.ge.f32.partialorder %v2479_v31, 0.0  ;;  %v2599_v30 = vmul.f32 0.01, %v2479_v31  ;;  %v2630_v16 = vsel %vm2566_vm1, %v2476_v35, %v2598_v0 }
 0x531   : > { %v2633_v3 = vsel %vm2569_vm2, %v2487_v34, %v2601_v58 }
 0x532   : > { %v3997_v37 = vpop.f32.mrb[80].mxu0  ;;  %v2631_v21 = vsel %vm2567_vm3, %v2479_v31, %v2599_v30  ;;  %v2657_v33 = vpack.c.bf16 %v2633_v3, %v2632_v8 }
 0x533   : > { %v2500_v57 = vadd.f32 %v3997_v37, %v5671_v28  ;;  %v2491_v9 = vpop.f32.mrb[81].mxu0  ;;  %v2656_v2 = vpack.c.bf16 %v2631_v21, %v2630_v16 }
 0x534   : > { %v2492_v42 = vadd.f32 %v2491_v9, %v5671_v28  ;;  %v3998_v41 = vpop.f32.mrb[82].mxu0 }
 0x535   : > { %v2604_v17 = vmul.f32 0.01, %v2500_v57  ;;  %v2503_v44 = vadd.f32 %v3998_v41, %v5671_v28  ;;  %v2494_v55 = vpop.f32.mrb[83].mxu0  ;;  %4039 = vmatprep.mubr.bf16.mxu1 %v2656_v2  ;;  %vm2572_vm7 = vcmp.ge.f32.partialorder %v2500_v57, 0.0 }
 0x536   : > { %v2602_v23 = vmul.f32 0.01, %v2492_v42  ;;  %v2495_v59 = vadd.f32 %v2494_v55, %v5671_v28  ;;  %4040 = vmatmul.mubr.bf16.gmra.mrb[76].mxu1 %v2657_v33  ;;  %vm2570_vm4 = vcmp.ge.f32.partialorder %v2492_v42, 0.0 }
 0x537   : > { %vm2573_vm5 = vcmp.ge.f32.partialorder %v2503_v44, 0.0  ;;  %v2605_v51 = vmul.f32 0.01, %v2503_v44  ;;  %v2636_v26 = vsel %vm2572_vm7, %v2500_v57, %v2604_v17 }
 0x538   : > { %vm2571_vm6 = vcmp.ge.f32.partialorder %v2495_v59, 0.0  ;;  %v2603_v27 = vmul.f32 0.01, %v2495_v59  ;;  %v2634_v50 = vsel %vm2570_vm4, %v2492_v42, %v2602_v23 }
 0x539   : > { %v2637_v5 = vsel %vm2573_vm5, %v2503_v44, %v2605_v51 }
 0x53a   : > { %v4001_v13 = vpop.f32.mrb[84].mxu0  ;;  %v2635_v53 = vsel %vm2571_vm6, %v2495_v59, %v2603_v27  ;;  %v2659_v63 = vpack.c.bf16 %v2637_v5, %v2636_v26  ;;  %v2685_v27 = vsub.s32 5, %v6437_v12 }
 0x53b   : > { %v2516_v18 = vadd.f32 %v4001_v13, %v5671_v28  ;;  %v2507_v48 = vpop.f32.mrb[85].mxu0  ;;  %v2658_v32 = vpack.c.bf16 %v2635_v53, %v2634_v50 }
 0x53c   : > { %v2508_v40 = vadd.f32 %v2507_v48, %v5671_v28  ;;  %v4002_v14 = vpop.f32.mrb[86].mxu0  ;;  %v5707_v26 = vrot.slane %v5629_v15, %v2685_v27 }
 0x53d   : > { %v2608_v36 = vmul.f32 0.01, %v2516_v18  ;;  %v2519_v38 = vadd.f32 %v4002_v14, %v5671_v28  ;;  %v2510_v6 = vpop.f32.mrb[87].mxu0  ;;  %4043 = vmatprep.mubr.bf16.mxu1 %v2658_v32  ;;  %vm2576_vm8 = vcmp.ge.f32.partialorder %v2516_v18, 0.0 }
 0x53e   : > { %v2606_v22 = vmul.f32 0.01, %v2508_v40  ;;  %v2511_v52 = vadd.f32 %v2510_v6, %v5671_v28  ;;  %4044 = vmatmul.mubr.bf16.gmra.mrb[80].mxu1 %v2659_v63  ;;  %vm2574_vm9 = vcmp.ge.f32.partialorder %v2508_v40, 0.0 }
 0x53f   : > { %vm2577_vm10 = vcmp.ge.f32.partialorder %v2519_v38, 0.0  ;;  %v2609_v1 = vmul.f32 0.01, %v2519_v38  ;;  %v2640_v20 = vsel %vm2576_vm8, %v2516_v18, %v2608_v36 }
 0x540   : > { %vm2575_vm11 = vcmp.ge.f32.partialorder %v2511_v52, 0.0  ;;  %v2607_v46 = vmul.f32 0.01, %v2511_v52  ;;  %v2638_v24 = vsel %vm2574_vm9, %v2508_v40, %v2606_v22 }
 0x541   : > { %v2641_v25 = vsel %vm2577_vm10, %v2519_v38, %v2609_v1 }
 0x542   : > { %v4005_v29 = vpop.f32.mrb[88].mxu0  ;;  %v2639_v4 = vsel %vm2575_vm11, %v2511_v52, %v2607_v46  ;;  %v2661_v11 = vpack.c.bf16 %v2641_v25, %v2640_v20 }
 0x543   : > { %v2532_v7 = vadd.f32 %v4005_v29, %v5671_v28  ;;  %v2523_v10 = vpop.f32.mrb[89].mxu0  ;;  %v2660_v49 = vpack.c.bf16 %v2639_v4, %v2638_v24 }
 0x544   : > { %v2524_v39 = vadd.f32 %v2523_v10, %v5671_v28  ;;  %v4006_v47 = vpop.f32.mrb[90].mxu0 }
 0x545   : > { %v2612_v45 = vmul.f32 0.01, %v2532_v7  ;;  %v2535_v54 = vadd.f32 %v4006_v47, %v5671_v28  ;;  %v2526_v19 = vpop.f32.mrb[91].mxu0  ;;  %4047 = vmatprep.mubr.bf16.mxu1 %v2660_v49  ;;  %vm2580_vm12 = vcmp.ge.f32.partialorder %v2532_v7, 0.0 }
 0x546   : > { %v2610_v56 = vmul.f32 0.01, %v2524_v39  ;;  %v2527_v62 = vadd.f32 %v2526_v19, %v5671_v28  ;;  %4048 = vmatmul.mubr.bf16.gmra.mrb[84].mxu1 %v2661_v11  ;;  %vm2578_vm13 = vcmp.ge.f32.partialorder %v2524_v39, 0.0 }
 0x547   : > { %vm2581_vm14 = vcmp.ge.f32.partialorder %v2535_v54, 0.0  ;;  %v2613_v35 = vmul.f32 0.01, %v2535_v54  ;;  %v2644_v43 = vsel %vm2580_vm12, %v2532_v7, %v2612_v45 }
 0x548   : > { %vm2579_vm15 = vcmp.ge.f32.partialorder %v2527_v62, 0.0  ;;  %v2611_v60 = vmul.f32 0.01, %v2527_v62  ;;  %v2642_v0 = vsel %vm2578_vm13, %v2524_v39, %v2610_v56 }
 0x549   : > { %v2645_v34 = vsel %vm2581_vm14, %v2535_v54, %v2613_v35 }
 0x54a   : > { %v4009_v61 = vpop.f32.mrb[92].mxu0  ;;  %v2643_v31 = vsel %vm2579_vm15, %v2527_v62, %v2611_v60  ;;  %v2663_v58 = vpack.c.bf16 %v2645_v34, %v2644_v43 }
 0x54b   : > { %v2548_v30 = vadd.f32 %v4009_v61, %v5671_v28  ;;  %v2539_v8 = vpop.f32.mrb[93].mxu0  ;;  %v2662_v3 = vpack.c.bf16 %v2643_v31, %v2642_v0 }
 0x54c   : > { %v2540_v37 = vadd.f32 %v2539_v8, %v5671_v28  ;;  %v4010_v16 = vpop.f32.mrb[94].mxu0 }
 0x54d   : > { %v2616_v21 = vmul.f32 0.01, %v2548_v30  ;;  %v2551_v33 = vadd.f32 %v4010_v16, %v5671_v28  ;;  %v2542_v57 = vpop.f32.mrb[95].mxu0  ;;  %4051 = vmatprep.mubr.bf16.mxu1 %v2662_v3  ;;  %vm2584_vm0 = vcmp.ge.f32.partialorder %v2548_v30, 0.0 }
 0x54e   : > { %v2614_v9 = vmul.f32 0.01, %v2540_v37  ;;  %v2543_v2 = vadd.f32 %v2542_v57, %v5671_v28  ;;  %4052 = vmatmul.mubr.bf16.gmra.mrb[88].mxu1 %v2663_v58  ;;  %vm2582_vm1 = vcmp.ge.f32.partialorder %v2540_v37, 0.0  ;;  %v6438_v28 = vld [vmem:[#allocation6_spill] sm:$0xff] }
 0x54f   : > { %vm2585_vm2 = vcmp.ge.f32.partialorder %v2551_v33, 0.0  ;;  %v2617_v42 = vmul.f32 0.01, %v2551_v33  ;;  %v2648_v17 = vsel %vm2584_vm0, %v2548_v30, %v2616_v21  ;;  %vm250_vm7 = vcmp.lt.s32.totalorder %v6438_v28, 8 }
 0x550   : > { %vm2583_vm3 = vcmp.ge.f32.partialorder %v2543_v2, 0.0  ;;  %v2615_v41 = vmul.f32 0.01, %v2543_v2  ;;  %v2646_v55 = vsel %vm2582_vm1, %v2540_v37, %v2614_v9 }
 0x551   : > { %v2649_v44 = vsel %vm2585_vm2, %v2551_v33, %v2617_v42 }
 0x552   : > { %v2647_v23 = vsel %vm2583_vm3, %v2543_v2, %v2615_v41  ;;  %v2665_v59 = vpack.c.bf16 %v2649_v44, %v2648_v17 }
 0x553   : > { %v2664_v51 = vpack.c.bf16 %v2647_v23, %v2646_v55 }
 0x555   : > { %4055 = vmatprep.mubr.bf16.mxu1 %v2664_v51 }
 0x556   : > { %4056 = vmatmul.mubr.bf16.gmra.mrb[92].mxu1 %v2665_v59 }
 0x5f1   : > { %v4029_v5 = vpop.f32.mrb[64].mxu1 }
 0x5f2   : > { %v5711_v13 = vadd.f32 %v4029_v5, %v5707_v26  ;;  %v2769_v50 = vpop.f32.mrb[65].mxu1 }
 0x5f3   : > { %v5714_v53 = vadd.f32 %v2769_v50, %v5707_v26  ;;  %v4030_v63 = vpop.f32.mrb[66].mxu1 }
 0x5f4   : > { %v5717_v18 = vadd.f32 %v4030_v63, %v5707_v26  ;;  %v2772_v48 = vpop.f32.mrb[67].mxu1  ;;  %v5722_v12 = vsel %vm250_vm7, %v5711_v13, -1e+30 }
 0x5f5   : > { %v5725_v15 = vadd.f32 %v2772_v48, %v5707_v26  ;;  %2934 = vmax.xlane.f32.xlu1 %v5722_v12  ;;  %v5731_v32 = vsel %vm250_vm7, %v5714_v53, -1e+30 }
 0x5f6   : > { %2930 = vmax.xlane.f32.xlu0 %v5731_v32  ;;  %v5737_v40 = vsel %vm250_vm7, %v5717_v18, -1e+30 }
 0x5f7   : > { %v5743_v36 = vsel %vm250_vm7, %v5725_v15, -1e+30 }
 0x5f9   : > { %2936 = vmax.xlane.f32.xlu1 %v5737_v40  ;;  %v4033_v14 = vpop.f32.mrb[68].mxu1 }
 0x5fa   : > { %v5746_v38 = vadd.f32 %v4033_v14, %v5707_v26  ;;  %v2785_v6 = vpop.f32.mrb[69].mxu1  ;;  %2932 = vmax.xlane.f32.xlu0 %v5743_v36 }
 0x5fb   : > { %v4034_v22 = vpop.f32.mrb[70].mxu1  ;;  %v5758_v20 = vadd.f32 %v2785_v6, %v5707_v26 }
 0x5fc   : > { %v5750_v52 = vadd.f32 %v4034_v22, %v5707_v26  ;;  %v2788_v1 = vpop.f32.mrb[71].mxu1  ;;  %v5755_v46 = vsel %vm250_vm7, %v5746_v38, -1e+30 }
 0x5fd   : > { %v5761_v25 = vadd.f32 %v2788_v1, %v5707_v26  ;;  %v5773_v4 = vsel %vm250_vm7, %v5758_v20, -1e+30 }
 0x5fe   : > { %2942 = vmax.xlane.f32.xlu0 %v5755_v46  ;;  %v5767_v29 = vsel %vm250_vm7, %v5750_v52, -1e+30 }
 0x5ff   : > { %2944 = vmax.xlane.f32.xlu1 %v5767_v29  ;;  %v5782_v10 = vsel %vm250_vm7, %v5761_v25, -1e+30 }
 0x601   : > { %v4037_v24 = vpop.f32.mrb[72].mxu1 }
 0x602   : > { %v5776_v11 = vadd.f32 %v4037_v24, %v5707_v26  ;;  %v2801_v7 = vpop.f32.mrb[73].mxu1  ;;  %2938 = vmax.xlane.f32.xlu0 %v5773_v4 }
 0x603   : > { %v4038_v49 = vpop.f32.mrb[74].mxu1  ;;  %2940 = vmax.xlane.f32.xlu1 %v5782_v10  ;;  %v5794_v54 = vadd.f32 %v2801_v7, %v5707_v26 }
 0x604   : > { %v5786_v39 = vadd.f32 %v4038_v49, %v5707_v26  ;;  %v2804_v47 = vpop.f32.mrb[75].mxu1  ;;  %v5791_v45 = vsel %vm250_vm7, %v5776_v11, -1e+30 }
 0x605   : > { %v5797_v19 = vadd.f32 %v2804_v47, %v5707_v26  ;;  %v5809_v35 = vsel %vm250_vm7, %v5794_v54, -1e+30 }
 0x606   : > { %2950 = vmax.xlane.f32.xlu0 %v5791_v45  ;;  %v5803_v56 = vsel %vm250_vm7, %v5786_v39, -1e+30 }
 0x607   : > { %2952 = vmax.xlane.f32.xlu1 %v5803_v56  ;;  %v5818_v34 = vsel %vm250_vm7, %v5797_v19, -1e+30 }
 0x609   : > { %v4041_v62 = vpop.f32.mrb[76].mxu1 }
 0x60a   : > { %v5812_v60 = vadd.f32 %v4041_v62, %v5707_v26  ;;  %v2817_v43 = vpop.f32.mrb[77].mxu1  ;;  %2946 = vmax.xlane.f32.xlu0 %v5809_v35 }
 0x60b   : > { %v4042_v61 = vpop.f32.mrb[78].mxu1  ;;  %2948 = vmax.xlane.f32.xlu1 %v5818_v34  ;;  %v5830_v30 = vadd.f32 %v2817_v43, %v5707_v26 }
 0x60c   : > { %v5822_v0 = vadd.f32 %v4042_v61, %v5707_v26  ;;  %v2820_v31 = vpop.f32.mrb[79].mxu1  ;;  %v5827_v58 = vsel %vm250_vm7, %v5812_v60, -1e+30 }
 0x60d   : > { %v5833_v8 = vadd.f32 %v2820_v31, %v5707_v26  ;;  %v5845_v16 = vsel %vm250_vm7, %v5830_v30, -1e+30 }
 0x60e   : > { %2958 = vmax.xlane.f32.xlu0 %v5827_v58  ;;  %v5839_v3 = vsel %vm250_vm7, %v5822_v0, -1e+30 }
 0x60f   : > { %2960 = vmax.xlane.f32.xlu1 %v5839_v3  ;;  %v5854_v57 = vsel %vm250_vm7, %v5833_v8, -1e+30 }
 0x611   : > { %v4045_v37 = vpop.f32.mrb[80].mxu1 }
 0x612   : > { %v5848_v21 = vadd.f32 %v4045_v37, %v5707_v26  ;;  %v2833_v33 = vpop.f32.mrb[81].mxu1  ;;  %2954 = vmax.xlane.f32.xlu0 %v5845_v16 }
 0x613   : > { %v4046_v9 = vpop.f32.mrb[82].mxu1  ;;  %2956 = vmax.xlane.f32.xlu1 %v5854_v57  ;;  %v5866_v17 = vadd.f32 %v2833_v33, %v5707_v26 }
 0x614   : > { %v5858_v2 = vadd.f32 %v4046_v9, %v5707_v26  ;;  %v2836_v42 = vpop.f32.mrb[83].mxu1  ;;  %v5863_v41 = vsel %vm250_vm7, %v5848_v21, -1e+30 }
 0x615   : > { %6440 = vst [vmem:[#allocation4_spill] sm:$0xff] %v5866_v17  ;;  %v5869_v44 = vadd.f32 %v2836_v42, %v5707_v26  ;;  %v5881_v59 = vsel %vm250_vm7, %v5866_v17, -1e+30 }
 0x616   : > { %6439 = vst [vmem:[#allocation15_spill] sm:$0xff] %v5858_v2  ;;  %2966 = vmax.xlane.f32.xlu0 %v5863_v41  ;;  %v5875_v55 = vsel %vm250_vm7, %v5858_v2, -1e+30 }
 0x617   : > { %6441 = vst [vmem:[#allocation3_spill] sm:$0xff] %v5869_v44  ;;  %2968 = vmax.xlane.f32.xlu1 %v5875_v55  ;;  %v5890_v5 = vsel %vm250_vm7, %v5869_v44, -1e+30 }
 0x619   : > { %v4049_v23 = vpop.f32.mrb[84].mxu1 }
 0x61a   : > { %v5884_v51 = vadd.f32 %v4049_v23, %v5707_v26  ;;  %v2849_v27 = vpop.f32.mrb[85].mxu1  ;;  %2962 = vmax.xlane.f32.xlu0 %v5881_v59 }
 0x61b   : > { %v4050_v50 = vpop.f32.mrb[86].mxu1  ;;  %2964 = vmax.xlane.f32.xlu1 %v5890_v5  ;;  %v5902_v6 = vadd.f32 %v2849_v27, %v5707_v26 }
 0x61c   : > { %6442 = vst [vmem:[#allocation7_spill] sm:$0xff] %v5884_v51  ;;  %v5894_v63 = vadd.f32 %v4050_v50, %v5707_v26  ;;  %v2852_v48 = vpop.f32.mrb[87].mxu1  ;;  %v5899_v14 = vsel %vm250_vm7, %v5884_v51, -1e+30 }
 0x61d   : > { %6444 = vst [vmem:[#allocation5_spill] sm:$0xff] %v5902_v6  ;;  %v5905_v22 = vadd.f32 %v2852_v48, %v5707_v26  ;;  %v5917_v7 = vsel %vm250_vm7, %v5902_v6, -1e+30 }
 0x61e   : > { %6443 = vst [vmem:[#allocation16_spill] sm:$0xff] %v5894_v63  ;;  %2974 = vmax.xlane.f32.xlu0 %v5899_v14  ;;  %v5911_v1 = vsel %vm250_vm7, %v5894_v63, -1e+30 }
 0x61f   : > { %6445 = vst [vmem:[#allocation8_spill] sm:$0xff] %v5905_v22  ;;  %2976 = vmax.xlane.f32.xlu1 %v5911_v1  ;;  %v5926_v62 = vsel %vm250_vm7, %v5905_v22, -1e+30 }
 0x621   : > { %v4053_v24 = vpop.f32.mrb[88].mxu1 }
 0x622   : > { %v5920_v49 = vadd.f32 %v4053_v24, %v5707_v26  ;;  %v2865_v47 = vpop.f32.mrb[89].mxu1  ;;  %2970 = vmax.xlane.f32.xlu0 %v5917_v7 }
 0x623   : > { %v4054_v43 = vpop.f32.mrb[90].mxu1  ;;  %2972 = vmax.xlane.f32.xlu1 %v5926_v62  ;;  %v5938_v33 = vadd.f32 %v2865_v47, %v5707_v26 }
 0x624   : > { %6446 = vst [vmem:[#allocation9_spill] sm:$0xff] %v5920_v49  ;;  %v5930_v61 = vadd.f32 %v4054_v43, %v5707_v26  ;;  %v2868_v31 = vpop.f32.mrb[91].mxu1  ;;  %v5935_v37 = vsel %vm250_vm7, %v5920_v49, -1e+30 }
 0x625   : > { %6448 = vst [vmem:[#allocation19_spill] sm:$0xff] %v5938_v33  ;;  %v5941_v9 = vadd.f32 %v2868_v31, %v5707_v26  ;;  %v5953_v27 = vsel %vm250_vm7, %v5938_v33, -1e+30 }
 0x626   : > { %6447 = vst [vmem:[#allocation10_spill] sm:$0xff] %v5930_v61  ;;  %2982 = vmax.xlane.f32.xlu0 %v5935_v37  ;;  %v5947_v42 = vsel %vm250_vm7, %v5930_v61, -1e+30 }
 0x627   : > { %6449 = vst [vmem:[#allocation14_spill] sm:$0xff] %v5941_v9  ;;  %2984 = vmax.xlane.f32.xlu1 %v5947_v42  ;;  %v5959_v48 = vsel %vm250_vm7, %v5941_v9, -1e+30 }
 0x629   : > { %v4057_v23 = vpop.f32.mrb[92].mxu1 }
 0x62a   : > { %v2881_v50 = vpop.f32.mrb[93].mxu1  ;;  %2978 = vmax.xlane.f32.xlu0 %v5953_v27  ;;  %v5969_v33 = vadd.f32 %v4057_v23, %v5707_v26 }
 0x62b   : > { %v5962_v24 = vadd.f32 %v2881_v50, %v5707_v26  ;;  %v4058_v47 = vpop.f32.mrb[94].mxu1  ;;  %2980 = vmax.xlane.f32.xlu1 %v5959_v48 }
 0x62c   : > { %v5966_v43 = vadd.f32 %v4058_v47, %v5707_v26  ;;  %v2884_v31 = vpop.f32.mrb[95].mxu1  ;;  %6452 = vst [vmem:[#allocation18_spill] sm:$0xff] %v5969_v33  ;;  %v5989_v23 = vsel %vm250_vm7, %v5969_v33, -1e+30 }
 0x62d   : > { %6450 = vst [vmem:[#allocation12_spill] sm:$0xff] %v5962_v24  ;;  %v5972_v61 = vadd.f32 %v2884_v31, %v5707_v26  ;;  %v5977_v9 = vsel %vm250_vm7, %v5962_v24, -1e+30 }
 0x62e   : > { %6451 = vst [vmem:[#allocation20_spill] sm:$0xff] %v5966_v43  ;;  %2986 = vmax.xlane.f32.xlu0 %v5977_v9  ;;  %v5995_v26 = vsel %vm250_vm7, %v5966_v43, -1e+30 }
 0x62f   : > { %6453 = vst [vmem:[#allocation13_spill] sm:$0xff] %v5972_v61  ;;  %v5983_v50 = vsel %vm250_vm7, %v5972_v61, -1e+30 }
 0x630   : > { %2988 = vmax.xlane.f32.xlu1 %v5983_v50 }
 0x632   : > { %2990 = vmax.xlane.f32.xlu0 %v5989_v23 }
 0x634   : > { %2992 = vmax.xlane.f32.xlu1 %v5995_v26 }
 0x682   : > { %v2935_v47 = vpop.xlane.xlu1 %2934 }
 0x683   : > { %v2996_v31 = vsub.f32 %v5722_v12, %v2935_v47  ;;  %v2931_v61 = vpop.xlane.xlu0 %2930 }
 0x684   : > { %v2994_v24 = vsub.f32 %v5731_v32, %v2931_v61 }
 0x685   : > { %v3030_v49 = vmul.f32 1.442695, %v2996_v31 }
 0x686   : > { %v3026_v22 = vmul.f32 1.442695, %v2994_v24  ;;  %v2937_v6 = vpop.xlane.xlu1 %2936 }
 0x687   : > { %4323 = vpow2.f32 %v3030_v49  ;;  %v2997_v33 = vsub.f32 %v5737_v40, %v2937_v6  ;;  %v2933_v63 = vpop.xlane.xlu0 %2932 }
 0x688   : > { %v2995_v51 = vsub.f32 %v5743_v36, %v2933_v63  ;;  %4325 = vpow2.f32 %v3026_v22 }
 0x689   : > { %v3032_v44 = vmul.f32 1.442695, %v2997_v33 }
 0x68a   : > { %v3028_v43 = vmul.f32 1.442695, %v2995_v51 }
 0x68b   : > { %4327 = vpow2.f32 %v3032_v44  ;;  %v2943_v17 = vpop.xlane.xlu0 %2942 }
 0x68c   : > { %v3000_v2 = vsub.f32 %v5755_v46, %v2943_v17  ;;  %v2945_v12 = vpop.xlane.xlu1 %2944  ;;  %4329 = vpow2.f32 %v3028_v43 }
 0x68d   : > { %v3001_v47 = vsub.f32 %v5767_v29, %v2945_v12 }
 0x68e   : > { %v3038_v32 = vmul.f32 1.442695, %v3000_v2 }
 0x68f   : > { %v3040_v61 = vmul.f32 1.442695, %v3001_v47  ;;  %v2939_v24 = vpop.xlane.xlu0 %2938 }
 0x690   : > { %4331 = vpow2.f32 %v3038_v32  ;;  %v2998_v40 = vsub.f32 %v5773_v4, %v2939_v24  ;;  %v2941_v6 = vpop.xlane.xlu1 %2940 }
 0x691   : > { %v6005_v49 = vpop.eup %4323  ;;  %v2999_v36 = vsub.f32 %v5782_v10, %v2941_v6  ;;  %4333 = vpow2.f32 %v3040_v61 }
 0x692   : > { %v3034_v44 = vmul.f32 1.442695, %v2998_v40  ;;  %3094 = vadd.xlane.f32.xlu0 %v6005_v49  ;;  %v6009_v51 = vpop.eup %4325 }
 0x693   : > { %v3036_v46 = vmul.f32 1.442695, %v2999_v36  ;;  %v2951_v17 = vpop.xlane.xlu0 %2950 }
 0x694   : > { %4335 = vpow2.f32 %v3034_v44  ;;  %v3004_v29 = vsub.f32 %v5791_v45, %v2951_v17  ;;  %v2953_v2 = vpop.xlane.xlu1 %2952 }
 0x695   : > { %v6012_v63 = vpop.eup %4327  ;;  %v3005_v4 = vsub.f32 %v5803_v56, %v2953_v2  ;;  %4337 = vpow2.f32 %v3036_v46 }
 0x696   : > { %v3046_v22 = vmul.f32 1.442695, %v3004_v29  ;;  %3096 = vadd.xlane.f32.xlu1 %v6012_v63  ;;  %3090 = vadd.xlane.f32.xlu0 %v6009_v51  ;;  %v6018_v12 = vpop.eup %4329 }
 0x697   : > { %v3048_v10 = vmul.f32 1.442695, %v3005_v4  ;;  %v2947_v33 = vpop.xlane.xlu0 %2946 }
 0x698   : > { %4339 = vpow2.f32 %v3046_v22  ;;  %v3002_v43 = vsub.f32 %v5809_v35, %v2947_v33  ;;  %v2949_v31 = vpop.xlane.xlu1 %2948 }
 0x699   : > { %v3003_v45 = vsub.f32 %v5818_v34, %v2949_v31  ;;  %4341 = vpow2.f32 %v3048_v10 }
 0x69a   : > { %v6021_v47 = vpop.eup %4331  ;;  %v3042_v32 = vmul.f32 1.442695, %v3002_v43  ;;  %3092 = vadd.xlane.f32.xlu1 %v6018_v12 }
 0x69b   : > { %v3044_v56 = vmul.f32 1.442695, %v3003_v45  ;;  %3102 = vadd.xlane.f32.xlu0 %v6021_v47  ;;  %v2959_v61 = vpop.xlane.xlu0 %2958  ;;  %v6026_v35 = vpop.eup %4333 }
 0x69c   : > { %4343 = vpow2.f32 %v3042_v32  ;;  %v3008_v24 = vsub.f32 %v5827_v58, %v2959_v61  ;;  %v2961_v40 = vpop.xlane.xlu1 %2960 }
 0x69d   : > { %v3009_v6 = vsub.f32 %v5839_v3, %v2961_v40  ;;  %4345 = vpow2.f32 %v3044_v56 }
 0x69e   : > { %v6029_v36 = vpop.eup %4335  ;;  %v3054_v34 = vmul.f32 1.442695, %v3008_v24  ;;  %3104 = vadd.xlane.f32.xlu1 %v6026_v35 }
 0x69f   : > { %v3056_v44 = vmul.f32 1.442695, %v3009_v6  ;;  %3098 = vadd.xlane.f32.xlu0 %v6029_v36  ;;  %v2955_v46 = vpop.xlane.xlu0 %2954  ;;  %v6034_v58 = vpop.eup %4337 }
 0x6a0   : > { %4347 = vpow2.f32 %v3054_v34  ;;  %v3006_v17 = vsub.f32 %v5845_v16, %v2955_v46  ;;  %v2957_v29 = vpop.xlane.xlu1 %2956 }
 0x6a1   : > { %v3007_v2 = vsub.f32 %v5854_v57, %v2957_v29  ;;  %4349 = vpow2.f32 %v3056_v44 }
 0x6a2   : > { %v6037_v4 = vpop.eup %4339  ;;  %v3050_v3 = vmul.f32 1.442695, %v3006_v17  ;;  %3100 = vadd.xlane.f32.xlu1 %v6034_v58 }
 0x6a3   : > { %v3052_v22 = vmul.f32 1.442695, %v3007_v2  ;;  %3110 = vadd.xlane.f32.xlu0 %v6037_v4  ;;  %v2967_v10 = vpop.xlane.xlu0 %2966  ;;  %v6042_v16 = vpop.eup %4341 }
 0x6a4   : > { %4351 = vpow2.f32 %v3050_v3  ;;  %v3012_v33 = vsub.f32 %v5863_v41, %v2967_v10  ;;  %v2969_v43 = vpop.xlane.xlu1 %2968 }
 0x6a5   : > { %v3013_v31 = vsub.f32 %v5875_v55, %v2969_v43  ;;  %4353 = vpow2.f32 %v3052_v22 }
 0x6a6   : > { %v6045_v45 = vpop.eup %4343  ;;  %v3062_v57 = vmul.f32 1.442695, %v3012_v33  ;;  %3112 = vadd.xlane.f32.xlu1 %v6042_v16 }
 0x6a7   : > { %v3064_v32 = vmul.f32 1.442695, %v3013_v31  ;;  %3106 = vadd.xlane.f32.xlu0 %v6045_v45  ;;  %v2963_v56 = vpop.xlane.xlu0 %2962  ;;  %v6050_v41 = vpop.eup %4345 }
 0x6a8   : > { %4355 = vpow2.f32 %v3062_v57  ;;  %v3010_v61 = vsub.f32 %v5881_v59, %v2963_v56  ;;  %v2965_v24 = vpop.xlane.xlu1 %2964 }
 0x6a9   : > { %v3011_v40 = vsub.f32 %v5890_v5, %v2965_v24  ;;  %4357 = vpow2.f32 %v3064_v32 }
 0x6aa   : > { %v6053_v6 = vpop.eup %4347  ;;  %v3058_v55 = vmul.f32 1.442695, %v3010_v61  ;;  %3108 = vadd.xlane.f32.xlu1 %v6050_v41 }
 0x6ab   : > { %v3060_v34 = vmul.f32 1.442695, %v3011_v40  ;;  %3118 = vadd.xlane.f32.xlu0 %v6053_v6  ;;  %v2975_v44 = vpop.xlane.xlu0 %2974  ;;  %v6058_v59 = vpop.eup %4349 }
 0x6ac   : > { %4359 = vpow2.f32 %v3058_v55  ;;  %v3016_v46 = vsub.f32 %v5899_v14, %v2975_v44  ;;  %v2977_v17 = vpop.xlane.xlu1 %2976 }
 0x6ad   : > { %v3017_v29 = vsub.f32 %v5911_v1, %v2977_v17  ;;  %4361 = vpow2.f32 %v3060_v34 }
 0x6ae   : > { %v6061_v2 = vpop.eup %4351  ;;  %v3070_v5 = vmul.f32 1.442695, %v3016_v46  ;;  %3120 = vadd.xlane.f32.xlu1 %v6058_v59 }
 0x6af   : > { %v3072_v3 = vmul.f32 1.442695, %v3017_v29  ;;  %3114 = vadd.xlane.f32.xlu0 %v6061_v2  ;;  %v2971_v22 = vpop.xlane.xlu0 %2970  ;;  %v6066_v14 = vpop.eup %4353 }
 0x6b0   : > { %4363 = vpow2.f32 %v3070_v5  ;;  %v3014_v10 = vsub.f32 %v5917_v7, %v2971_v22  ;;  %v2973_v33 = vpop.xlane.xlu1 %2972 }
 0x6b1   : > { %v3015_v43 = vsub.f32 %v5926_v62, %v2973_v33  ;;  %4365 = vpow2.f32 %v3072_v3 }
 0x6b2   : > { %v6069_v31 = vpop.eup %4355  ;;  %v3066_v1 = vmul.f32 1.442695, %v3014_v10  ;;  %3116 = vadd.xlane.f32.xlu1 %v6066_v14 }
 0x6b3   : > { %v3068_v57 = vmul.f32 1.442695, %v3015_v43  ;;  %3126 = vadd.xlane.f32.xlu0 %v6069_v31  ;;  %v2983_v32 = vpop.xlane.xlu0 %2982  ;;  %v6074_v7 = vpop.eup %4357 }
 0x6b4   : > { %4367 = vpow2.f32 %v3066_v1  ;;  %v3020_v56 = vsub.f32 %v5935_v37, %v2983_v32  ;;  %v2985_v61 = vpop.xlane.xlu1 %2984 }
 0x6b5   : > { %v3021_v24 = vsub.f32 %v5947_v42, %v2985_v61  ;;  %4369 = vpow2.f32 %v3068_v57 }
 0x6b6   : > { %v6077_v40 = vpop.eup %4359  ;;  %v3078_v62 = vmul.f32 1.442695, %v3020_v56  ;;  %3128 = vadd.xlane.f32.xlu1 %v6074_v7 }
 0x6b7   : > { %v3080_v55 = vmul.f32 1.442695, %v3021_v24  ;;  %3122 = vadd.xlane.f32.xlu0 %v6077_v40  ;;  %v2979_v34 = vpop.xlane.xlu0 %2978  ;;  %v6082_v37 = vpop.eup %4361 }
 0x6b8   : > { %4371 = vpow2.f32 %v3078_v62  ;;  %v3018_v44 = vsub.f32 %v5953_v27, %v2979_v34  ;;  %v2981_v46 = vpop.xlane.xlu1 %2980 }
 0x6b9   : > { %v3019_v17 = vsub.f32 %v5959_v48, %v2981_v46  ;;  %4373 = vpow2.f32 %v3080_v55 }
 0x6ba   : > { %v6085_v29 = vpop.eup %4363  ;;  %v3074_v42 = vmul.f32 1.442695, %v3018_v44  ;;  %3124 = vadd.xlane.f32.xlu1 %v6082_v37 }
 0x6bb   : > { %v3076_v5 = vmul.f32 1.442695, %v3019_v17  ;;  %3134 = vadd.xlane.f32.xlu0 %v6085_v29  ;;  %v2987_v3 = vpop.xlane.xlu0 %2986  ;;  %v6090_v10 = vpop.eup %4365 }
 0x6bc   : > { %4375 = vpow2.f32 %v3074_v42  ;;  %v3022_v22 = vsub.f32 %v5977_v9, %v2987_v3  ;;  %6454 = vst [vmem:[#allocation11_spill] sm:$0xff] %v6090_v10 }
 0x6bd   : > { %v2989_v27 = vpop.xlane.xlu1 %2988  ;;  %4377 = vpow2.f32 %v3076_v5 }
 0x6be   : > { %v6092_v33 = vpop.eup %4367  ;;  %v3082_v43 = vmul.f32 1.442695, %v3022_v22  ;;  %v3023_v48 = vsub.f32 %v5983_v50, %v2989_v27  ;;  %3136 = vadd.xlane.f32.xlu1 %v6090_v10 }
 0x6bf   : > { %6455 = vst [vmem:[#allocation17_spill] sm:$0xff] %v6092_v33  ;;  %3130 = vadd.xlane.f32.xlu0 %v6092_v33  ;;  %v2991_v1 = vpop.xlane.xlu0 %2990  ;;  %v6098_v56 = vpop.eup %4369 }
 0x6c0   : > { %4379 = vpow2.f32 %v3082_v43  ;;  %v3084_v57 = vmul.f32 1.442695, %v3023_v48  ;;  %v3024_v32 = vsub.f32 %v5989_v23, %v2991_v1  ;;  %6456 = vst [vmem:[#allocation2_spill] sm:$0xff] %v6098_v56 }
 0x6c1   : > { %v2993_v9 = vpop.xlane.xlu1 %2992 }
 0x6c2   : > { %v6100_v61 = vpop.eup %4371  ;;  %4381 = vpow2.f32 %v3084_v57  ;;  %v3086_v24 = vmul.f32 1.442695, %v3024_v32  ;;  %v3025_v62 = vsub.f32 %v5995_v26, %v2993_v9  ;;  %3132 = vadd.xlane.f32.xlu1 %v6098_v56 }
 0x6c3   : > { %6457 = vst [vmem:[#allocation6_spill] sm:$0xff] %v6100_v61  ;;  %3142 = vadd.xlane.f32.xlu0 %v6100_v61  ;;  %v6105_v55 = vpop.eup %4373 }
 0x6c4   : > { %4383 = vpow2.f32 %v3086_v24  ;;  %v3088_v50 = vmul.f32 1.442695, %v3025_v62  ;;  %6458 = vst [vmem:[#allocation21_spill] sm:$0xff] %v6105_v55 }
 0x6c6   : > { %v6107_v34 = vpop.eup %4375  ;;  %4385 = vpow2.f32 %v3088_v50  ;;  %3144 = vadd.xlane.f32.xlu1 %v6105_v55 }
 0x6c7   : > { %6459 = vst [vmem:[#allocation22_spill] sm:$0xff] %v6107_v34  ;;  %3138 = vadd.xlane.f32.xlu0 %v6107_v34  ;;  %v6111_v23 = vpop.eup %4377 }
 0x6c8   : > { %6460 = vst [vmem:[#allocation23_spill] sm:$0xff] %v6111_v23 }
 0x6ca   : > { %v6113_v44 = vpop.eup %4379  ;;  %3140 = vadd.xlane.f32.xlu1 %v6111_v23 }
 0x6cb   : > { %6461 = vst [vmem:[#allocation24_spill] sm:$0xff] %v6113_v44  ;;  %3146 = vadd.xlane.f32.xlu0 %v6113_v44 }
 0x6cc   : > { %v6117_v26 = vpop.eup %4381 }
 0x6cd   : > { %6462 = vst [vmem:[#allocation25_spill] sm:$0xff] %v6117_v26 }
 0x6ce   : > { %v6119_v46 = vpop.eup %4383  ;;  %3148 = vadd.xlane.f32.xlu1 %v6117_v26 }
 0x6cf   : > { %6463 = vst [vmem:[#allocation26_spill] sm:$0xff] %v6119_v46  ;;  %3150 = vadd.xlane.f32.xlu0 %v6119_v46 }
 0x6d0   : > { %v6123_v17 = vpop.eup %4385 }
 0x6d1   : > { %6464 = vst [vmem:[#allocation27_spill] sm:$0xff] %v6123_v17 }
 0x6d2   : > { %3152 = vadd.xlane.f32.xlu1 %v6123_v17 }
 0x71f   : > { %v3095_v42 = vpop.xlane.xlu0 %3094 }
 0x720   : > { %4387 = vrcp.f32 %v3095_v42 }
 0x723   : > { %v3097_v5 = vpop.xlane.xlu1 %3096  ;;  %v3091_v3 = vpop.xlane.xlu0 %3090 }
 0x724   : > { %4389 = vrcp.f32 %v3097_v5 }
 0x725   : > { %4391 = vrcp.f32 %v3091_v3 }
 0x727   : > { %v3093_v22 = vpop.xlane.xlu1 %3092 }
 0x728   : > { %4393 = vrcp.f32 %v3093_v22  ;;  %v3103_v27 = vpop.xlane.xlu0 %3102 }
 0x729   : > { %4395 = vrcp.f32 %v3103_v27 }
 0x72a   : > { %v4388_v43 = vpop.eup %4387 }
 0x72b   : > { %v3188_v48 = vmul.f32 %v4388_v43, %v3095_v42  ;;  %v3105_v1 = vpop.xlane.xlu1 %3104 }
 0x72c   : > { %4397 = vrcp.f32 %v3105_v1  ;;  %v3099_v57 = vpop.xlane.xlu0 %3098 }
 0x72d   : > { %v3220_v32 = vsub.f32 2.0, %v3188_v48  ;;  %4399 = vrcp.f32 %v3099_v57 }
 0x72e   : > { %v4390_v9 = vpop.eup %4389 }
 0x72f   : > { %v4392_v24 = vpop.eup %4391  ;;  %v3252_v62 = vmul.f32 %v4388_v43, %v3220_v32  ;;  %v3189_v50 = vmul.f32 %v4390_v9, %v3097_v5  ;;  %v3101_v17 = vpop.xlane.xlu1 %3100 }
 0x730   : > { %v3186_v46 = vmul.f32 %v4392_v24, %v3091_v3  ;;  %4401 = vrcp.f32 %v3101_v17  ;;  %v3111_v26 = vpop.xlane.xlu0 %3110 }
 0x731   : > { %v3284_v44 = vmul.f32 %v6005_v49, %v3252_v62  ;;  %v3221_v23 = vsub.f32 2.0, %v3189_v50  ;;  %4403 = vrcp.f32 %v3111_v26 }
 0x732   : > { %v4394_v34 = vpop.eup %4393  ;;  %v3218_v42 = vsub.f32 2.0, %v3186_v46 }
 0x733   : > { %v4396_v55 = vpop.eup %4395  ;;  %v3316_v48 = vsel %vm250_vm7, %v3284_v44, %v5711_v13  ;;  %v3253_v61 = vmul.f32 %v4390_v9, %v3221_v23  ;;  %v3187_v56 = vmul.f32 %v4394_v34, %v3093_v22  ;;  %v3113_v43 = vpop.xlane.xlu1 %3112 }
 0x734   : > { %3348 = vst [vmem:[%s4827_s13 + $0x20] sm:$0xff] %v3316_v48  ;;  %v3250_v5 = vmul.f32 %v4392_v24, %v3218_v42  ;;  %v3192_v3 = vmul.f32 %v4396_v55, %v3103_v27  ;;  %4405 = vrcp.f32 %v3113_v43  ;;  %v3107_v32 = vpop.xlane.xlu0 %3106 }
 0x735   : > { %v3285_v49 = vmul.f32 %v6012_v63, %v3253_v61  ;;  %v3219_v62 = vsub.f32 2.0, %v3187_v56  ;;  %4407 = vrcp.f32 %v3107_v32 }
 0x736   : > { %v4398_v46 = vpop.eup %4397  ;;  %v3282_v50 = vmul.f32 %v6009_v51, %v3250_v5  ;;  %v3224_v33 = vsub.f32 2.0, %v3192_v3 }
 0x737   : > { %v4400_v10 = vpop.eup %4399  ;;  %v3317_v13 = vsel %vm250_vm7, %v3285_v49, %v5717_v18  ;;  %v3251_v23 = vmul.f32 %v4394_v34, %v3219_v62  ;;  %v3193_v44 = vmul.f32 %v4398_v46, %v3105_v1  ;;  %v3109_v22 = vpop.xlane.xlu1 %3108 }
 0x738   : > { %3349 = vst [vmem:[%s4827_s13 + $0x30] sm:$0xff] %v3317_v13  ;;  %v3314_v63 = vsel %vm250_vm7, %v3282_v50, %v5714_v53  ;;  %v3256_v56 = vmul.f32 %v4396_v55, %v3224_v33  ;;  %v3190_v61 = vmul.f32 %v4400_v10, %v3099_v57  ;;  %4409 = vrcp.f32 %v3109_v22  ;;  %v3119_v27 = vpop.xlane.xlu0 %3118 }
 0x739   : > { %3346 = vst [vmem:[%s4827_s13] sm:$0xff] %v3314_v63  ;;  %v3283_v51 = vmul.f32 %v6018_v12, %v3251_v23  ;;  %v3225_v9 = vsub.f32 2.0, %v3193_v44  ;;  %4411 = vrcp.f32 %v3119_v27 }
 0x73a   : > { %v4402_v18 = vpop.eup %4401  ;;  %v3288_v34 = vmul.f32 %v6021_v47, %v3256_v56  ;;  %v3222_v1 = vsub.f32 2.0, %v3190_v61 }
 0x73b   : > { %v4404_v24 = vpop.eup %4403  ;;  %v3315_v53 = vsel %vm250_vm7, %v3283_v51, %v5725_v15  ;;  %v3257_v33 = vmul.f32 %v4398_v46, %v3225_v9  ;;  %v3191_v55 = vmul.f32 %v4402_v18, %v3101_v17  ;;  %v3121_v57 = vpop.xlane.xlu1 %3120 }
 0x73c   : > { %3347 = vst [vmem:[%s4827_s13 + $0x10] sm:$0xff] %v3315_v53  ;;  %v3320_v12 = vsel %vm250_vm7, %v3288_v34, %v5746_v38  ;;  %v3254_v42 = vmul.f32 %v4400_v10, %v3222_v1  ;;  %v3196_v48 = vmul.f32 %v4404_v24, %v3111_v26  ;;  %4413 = vrcp.f32 %v3121_v57  ;;  %v3115_v5 = vpop.xlane.xlu0 %3114 }
 0x73d   : > { %3352 = vst [vmem:[%s4827_s13 + $0x60] sm:$0xff] %v3320_v12  ;;  %v3289_v47 = vmul.f32 %v6026_v35, %v3257_v33  ;;  %v3223_v3 = vsub.f32 2.0, %v3191_v55  ;;  %4415 = vrcp.f32 %v3115_v5 }
 0x73e   : > { %v4406_v15 = vpop.eup %4405  ;;  %v3286_v17 = vmul.f32 %v6029_v36, %v3254_v42  ;;  %v3228_v49 = vsub.f32 2.0, %v3196_v48 }
 0x73f   : > { %v4408_v62 = vpop.eup %4407  ;;  %v3321_v38 = vsel %vm250_vm7, %v3289_v47, %v5750_v52  ;;  %v3255_v10 = vmul.f32 %v4402_v18, %v3223_v3  ;;  %v3197_v46 = vmul.f32 %v4406_v15, %v3113_v43  ;;  %v3117_v26 = vpop.xlane.xlu1 %3116 }
 0x740   : > { %3353 = vst [vmem:[%s4827_s13 + $0x70] sm:$0xff] %v3321_v38  ;;  %v3318_v35 = vsel %vm250_vm7, %v3286_v17, %v5758_v20  ;;  %v3260_v50 = vmul.f32 %v4404_v24, %v3228_v49  ;;  %v3194_v13 = vmul.f32 %v4408_v62, %v3107_v32  ;;  %4417 = vrcp.f32 %v3117_v26  ;;  %v3127_v23 = vpop.xlane.xlu0 %3126 }
 0x741   : > { %3350 = vst [vmem:[%s4827_s13 + $0x40] sm:$0xff] %v3318_v35  ;;  %v3287_v36 = vmul.f32 %v6034_v58, %v3255_v10  ;;  %v3229_v44 = vsub.f32 2.0, %v3197_v46  ;;  %4419 = vrcp.f32 %v3127_v23 }
 0x742   : > { %v4410_v52 = vpop.eup %4409  ;;  %v3292_v43 = vmul.f32 %v6037_v4, %v3260_v50  ;;  %v3226_v63 = vsub.f32 2.0, %v3194_v13 }
 0x743   : > { %v4412_v56 = vpop.eup %4411  ;;  %v3319_v20 = vsel %vm250_vm7, %v3287_v36, %v5761_v25  ;;  %v3261_v61 = vmul.f32 %v4406_v15, %v3229_v44  ;;  %v3195_v51 = vmul.f32 %v4410_v52, %v3109_v22  ;;  %v3129_v32 = vpop.xlane.xlu1 %3128 }
 0x744   : > { %3351 = vst [vmem:[%s4827_s13 + $0x50] sm:$0xff] %v3319_v20  ;;  %v3324_v58 = vsel %vm250_vm7, %v3292_v43, %v5776_v11  ;;  %v3258_v9 = vmul.f32 %v4408_v62, %v3226_v63  ;;  %v3200_v18 = vmul.f32 %v4412_v56, %v3119_v27  ;;  %4421 = vrcp.f32 %v3129_v32  ;;  %v3123_v34 = vpop.xlane.xlu0 %3122 }
 0x745   : > { %3356 = vst [vmem:[%s4827_s13 + $0xa0] sm:$0xff] %v3324_v58  ;;  %v3293_v4 = vmul.f32 %v6042_v16, %v3261_v61  ;;  %v3227_v1 = vsub.f32 2.0, %v3195_v51  ;;  %4423 = vrcp.f32 %v3123_v34 }
 0x746   : > { %v4414_v25 = vpop.eup %4413  ;;  %v3290_v22 = vmul.f32 %v6045_v45, %v3258_v9  ;;  %v3232_v24 = vsub.f32 2.0, %v3200_v18 }
 0x747   : > { %v4416_v53 = vpop.eup %4415  ;;  %v3325_v11 = vsel %vm250_vm7, %v3293_v4, %v5786_v39  ;;  %v3259_v33 = vmul.f32 %v4410_v52, %v3227_v1  ;;  %v3201_v55 = vmul.f32 %v4414_v25, %v3121_v57  ;;  %v3125_v27 = vpop.xlane.xlu1 %3124 }
 0x748   : > { %3357 = vst [vmem:[%s4827_s13 + $0xb0] sm:$0xff] %v3325_v11  ;;  %v3322_v16 = vsel %vm250_vm7, %v3290_v22, %v5794_v54  ;;  %v3264_v12 = vmul.f32 %v4412_v56, %v3232_v24  ;;  %v3198_v42 = vmul.f32 %v4416_v53, %v3115_v5  ;;  %4425 = vrcp.f32 %v3125_v27  ;;  %v3135_v48 = vpop.xlane.xlu0 %3134  ;;  %v6465_v24 = vld [vmem:[#allocation15_spill] sm:$0xff] }
 0x749   : > { %3354 = vst [vmem:[%s4827_s13 + $0x80] sm:$0xff] %v3322_v16  ;;  %v3291_v45 = vmul.f32 %v6050_v41, %v3259_v33  ;;  %v3233_v47 = vsub.f32 2.0, %v3201_v55  ;;  %4427 = vrcp.f32 %v3135_v48  ;;  %v6466_v55 = vld [vmem:[#allocation4_spill] sm:$0xff] }
 0x74a   : > { %v4418_v39 = vpop.eup %4417  ;;  %v3296_v57 = vmul.f32 %v6053_v6, %v3264_v12  ;;  %v3230_v3 = vsub.f32 2.0, %v3198_v42 }
 0x74b   : > { %v4420_v15 = vpop.eup %4419  ;;  %v3323_v54 = vsel %vm250_vm7, %v3291_v45, %v5797_v19  ;;  %v3265_v17 = vmul.f32 %v4414_v25, %v3233_v47  ;;  %v3199_v49 = vmul.f32 %v4418_v39, %v3117_v26  ;;  %v3137_v5 = vpop.xlane.xlu1 %3136 }
 0x74c   : > { %3355 = vst [vmem:[%s4827_s13 + $0x90] sm:$0xff] %v3323_v54  ;;  %v3328_v41 = vsel %vm250_vm7, %v3296_v57, %v5812_v60  ;;  %v3262_v62 = vmul.f32 %v4416_v53, %v3230_v3  ;;  %v3204_v38 = vmul.f32 %v4420_v15, %v3127_v23  ;;  %4429 = vrcp.f32 %v3137_v5  ;;  %v3131_v10 = vpop.xlane.xlu0 %3130  ;;  %v6467_v57 = vld [vmem:[#allocation3_spill] sm:$0xff] }
 0x74d   : > { %3360 = vst [vmem:[%s4827_s13 + $0xe0] sm:$0xff] %v3328_v41  ;;  %v3297_v6 = vmul.f32 %v6058_v59, %v3265_v17  ;;  %v3231_v46 = vsub.f32 2.0, %v3199_v49  ;;  %4431 = vrcp.f32 %v3131_v10  ;;  %v6468_v49 = vld [vmem:[#allocation7_spill] sm:$0xff] }
 0x74e   : > { %v4422_v19 = vpop.eup %4421  ;;  %v3294_v26 = vmul.f32 %v6061_v2, %v3262_v62  ;;  %v3236_v35 = vsub.f32 2.0, %v3204_v38 }
 0x74f   : > { %v4424_v50 = vpop.eup %4423  ;;  %v3329_v60 = vsel %vm250_vm7, %v3297_v6, %v5822_v0  ;;  %v3263_v13 = vmul.f32 %v4418_v39, %v3231_v46  ;;  %v3205_v36 = vmul.f32 %v4422_v19, %v3129_v32  ;;  %v3133_v23 = vpop.xlane.xlu1 %3132  ;;  %v6470_v46 = vld [vmem:[#allocation17_spill] sm:$0xff] }
 0x750   : > { %3361 = vst [vmem:[%s4827_s13 + $0xf0] sm:$0xff] %v3329_v60  ;;  %v3326_v59 = vsel %vm250_vm7, %v3294_v26, %v5830_v30  ;;  %v3268_v44 = vmul.f32 %v4420_v15, %v3236_v35  ;;  %v3202_v52 = vmul.f32 %v4424_v50, %v3123_v34  ;;  %4433 = vrcp.f32 %v3133_v23  ;;  %v3143_v43 = vpop.xlane.xlu0 %3142 }
 0x751   : > { %3358 = vst [vmem:[%s4827_s13 + $0xc0] sm:$0xff] %v3326_v59  ;;  %v3295_v2 = vmul.f32 %v6066_v14, %v3263_v13  ;;  %v3237_v63 = vsub.f32 2.0, %v3205_v36  ;;  %4435 = vrcp.f32 %v3143_v43  ;;  %v6472_v59 = vld [vmem:[#allocation5_spill] sm:$0xff] }
 0x752   : > { %v4426_v0 = vpop.eup %4425  ;;  %v3300_v56 = vmul.f32 %v6069_v31, %v3268_v44  ;;  %v3234_v20 = vsub.f32 2.0, %v3202_v52 }
 0x753   : > { %v4428_v61 = vpop.eup %4427  ;;  %v3327_v30 = vsel %vm250_vm7, %v3295_v2, %v5833_v8  ;;  %v3269_v51 = vmul.f32 %v4422_v19, %v3237_v63  ;;  %v3203_v32 = vmul.f32 %v4426_v0, %v3125_v27  ;;  %v3145_v58 = vpop.xlane.xlu1 %3144  ;;  %v6473_v2 = vld [vmem:[#allocation2_spill] sm:$0xff] }
 0x754   : > { %3359 = vst [vmem:[%s4827_s13 + $0xd0] sm:$0xff] %v3327_v30  ;;  %v3332_v14 = vsel %vm250_vm7, %v3300_v56, %v5848_v21  ;;  %v3266_v9 = vmul.f32 %v4424_v50, %v3234_v20  ;;  %v3208_v18 = vmul.f32 %v4428_v61, %v3135_v48  ;;  %4437 = vrcp.f32 %v3145_v58  ;;  %v3139_v34 = vpop.xlane.xlu0 %3138  ;;  %v6471_v50 = vld [vmem:[#allocation16_spill] sm:$0xff]  ;;  %v6474_v20 = vld [vmem:[#allocation6_spill] sm:$0xff] }
 0x755   : > { %3364 = vst [vmem:[%s4827_s13 + $0x120] sm:$0xff] %v3332_v14  ;;  %v3301_v31 = vmul.f32 %v6074_v7, %v3269_v51  ;;  %v3235_v4 = vsub.f32 2.0, %v3203_v32  ;;  %4439 = vrcp.f32 %v3139_v34  ;;  %v6475_v32 = vld [vmem:[#allocation8_spill] sm:$0xff] }
 0x756   : > { %v4430_v8 = vpop.eup %4429  ;;  %v3298_v1 = vmul.f32 %v6077_v40, %v3266_v9  ;;  %v3240_v25 = vsub.f32 2.0, %v3208_v18  ;;  %v6476_v18 = vld [vmem:[#allocation9_spill] sm:$0xff] }
 0x757   : > { %v4432_v22 = vpop.eup %4431  ;;  %v3333_v21 = vsel %vm250_vm7, %v3301_v31, %v6465_v24  ;;  %v3267_v53 = vmul.f32 %v4426_v0, %v3235_v4  ;;  %v3209_v11 = vmul.f32 %v4430_v8, %v3137_v5  ;;  %v3141_v33 = vpop.xlane.xlu1 %3140  ;;  %v6478_v24 = vld [vmem:[#allocation22_spill] sm:$0xff] }
 0x758   : > { %3365 = vst [vmem:[%s4827_s13 + $0x130] sm:$0xff] %v3333_v21  ;;  %v3330_v7 = vsel %vm250_vm7, %v3298_v1, %v6466_v55  ;;  %v3272_v27 = vmul.f32 %v4428_v61, %v3240_v25  ;;  %v3206_v16 = vmul.f32 %v4432_v22, %v3131_v10  ;;  %4441 = vrcp.f32 %v3141_v33  ;;  %v3147_v12 = vpop.xlane.xlu0 %3146  ;;  %v6479_v55 = vld [vmem:[#allocation10_spill] sm:$0xff] }
 0x759   : > { %3362 = vst [vmem:[%s4827_s13 + $0x100] sm:$0xff] %v3330_v7  ;;  %v3299_v40 = vmul.f32 %v6082_v37, %v3267_v53  ;;  %v3241_v42 = vsub.f32 2.0, %v3209_v11  ;;  %4443 = vrcp.f32 %v3147_v12 }
 0x75a   : > { %v4434_v48 = vpop.eup %4433  ;;  %v3304_v45 = vmul.f32 %v6085_v29, %v3272_v27  ;;  %v3238_v47 = vsub.f32 2.0, %v3206_v16  ;;  %v6469_v29 = vld [vmem:[#allocation11_spill] sm:$0xff] }
 0x75b   : > { %v4436_v39 = vpop.eup %4435  ;;  %v3331_v3 = vsel %vm250_vm7, %v3299_v40, %v6467_v57  ;;  %v3273_v15 = vmul.f32 %v4430_v8, %v3241_v42  ;;  %v3207_v54 = vmul.f32 %v4434_v48, %v3133_v23  ;;  %v3149_v17 = vpop.xlane.xlu1 %3148  ;;  %v6477_v8 = vld [vmem:[#allocation21_spill] sm:$0xff]  ;;  %v6480_v16 = vld [vmem:[#allocation19_spill] sm:$0xff]  ;;  %v6482_v57 = vld [vmem:[#allocation24_spill] sm:$0xff] }
 0x75c   : > { %3363 = vst [vmem:[%s4827_s13 + $0x110] sm:$0xff] %v3331_v3  ;;  %v3336_v37 = vsel %vm250_vm7, %v3304_v45, %v6468_v49  ;;  %v3270_v5 = vmul.f32 %v4432_v22, %v3238_v47  ;;  %v3212_v41 = vmul.f32 %v4436_v39, %v3143_v43  ;;  %4445 = vrcp.f32 %v3149_v17  ;;  %v3151_v62 = vpop.xlane.xlu0 %3150 }
 0x75d   : > { %3368 = vst [vmem:[%s4827_s13 + $0x160] sm:$0xff] %v3336_v37  ;;  %v3305_v38 = vmul.f32 %v6469_v29, %v3273_v15  ;;  %v3239_v10 = vsub.f32 2.0, %v3207_v54  ;;  %4447 = vrcp.f32 %v3151_v62  ;;  %v6483_v54 = vld [vmem:[#allocation14_spill] sm:$0xff]  ;;  %v6485_v29 = vld [vmem:[#allocation25_spill] sm:$0xff] }
 0x75e   : > { %v4438_v6 = vpop.eup %4437  ;;  %v3302_v19 = vmul.f32 %v6470_v46, %v3270_v5  ;;  %v3244_v26 = vsub.f32 2.0, %v3212_v41  ;;  %v6484_v5 = vld [vmem:[#allocation12_spill] sm:$0xff] }
 0x75f   : > { %v4440_v35 = vpop.eup %4439  ;;  %v3337_v60 = vsel %vm250_vm7, %v3305_v38, %v6471_v50  ;;  %v3271_v13 = vmul.f32 %v4434_v48, %v3239_v10  ;;  %v3213_v36 = vmul.f32 %v4438_v6, %v3145_v58  ;;  %v3153_v23 = vpop.xlane.xlu1 %3152  ;;  %v6481_v48 = vld [vmem:[#allocation23_spill] sm:$0xff]  ;;  %v6488_v50 = vld [vmem:[#allocation18_spill] sm:$0xff] }
 0x760   : > { %3369 = vst [vmem:[%s4827_s13 + $0x170] sm:$0xff] %v3337_v60  ;;  %v3334_v44 = vsel %vm250_vm7, %v3302_v19, %v6472_v59  ;;  %v3276_v52 = vmul.f32 %v4436_v39, %v3244_v26  ;;  %v3210_v43 = vmul.f32 %v4440_v35, %v3139_v34  ;;  %4449 = vrcp.f32 %v3153_v23  ;;  %v6487_v19 = vld [vmem:[#allocation13_spill] sm:$0xff] }
 0x761   : > { %3366 = vst [vmem:[%s4827_s13 + $0x140] sm:$0xff] %v3334_v44  ;;  %v3303_v63 = vmul.f32 %v6473_v2, %v3271_v13  ;;  %v3245_v0 = vsub.f32 2.0, %v3213_v36  ;;  %v6489_v13 = vld [vmem:[#allocation27_spill] sm:$0xff] }
 0x762   : > { %v4442_v56 = vpop.eup %4441  ;;  %v3308_v61 = vmul.f32 %v6474_v20, %v3276_v52  ;;  %v3242_v30 = vsub.f32 2.0, %v3210_v43 }
 0x763   : > { %v4444_v51 = vpop.eup %4443  ;;  %v3335_v58 = vsel %vm250_vm7, %v3303_v63, %v6475_v32  ;;  %v3277_v14 = vmul.f32 %v4438_v6, %v3245_v0  ;;  %v3211_v9 = vmul.f32 %v4442_v56, %v3141_v33  ;;  %v6486_v6 = vld [vmem:[#allocation26_spill] sm:$0xff] }
 0x764   : > { %3367 = vst [vmem:[%s4827_s13 + $0x150] sm:$0xff] %v3335_v58  ;;  %v3340_v34 = vsel %vm250_vm7, %v3308_v61, %v6476_v18  ;;  %v3274_v31 = vmul.f32 %v4440_v35, %v3242_v30  ;;  %v3214_v4 = vmul.f32 %v4444_v51, %v3147_v12 }
 0x765   : > { %3372 = vst [vmem:[%s4827_s13 + $0x1a0] sm:$0xff] %v3340_v34  ;;  %v3309_v1 = vmul.f32 %v6477_v8, %v3277_v14  ;;  %v3243_v25 = vsub.f32 2.0, %v3211_v9 }
 0x766   : > { %v4446_v22 = vpop.eup %4445  ;;  %v3306_v21 = vmul.f32 %v6478_v24, %v3274_v31  ;;  %v3246_v53 = vsub.f32 2.0, %v3214_v4 }
 0x767   : > { %v4448_v11 = vpop.eup %4447  ;;  %v3341_v33 = vsel %vm250_vm7, %v3309_v1, %v6479_v55  ;;  %v3275_v7 = vmul.f32 %v4442_v56, %v3243_v25  ;;  %v3215_v27 = vmul.f32 %v4446_v22, %v3149_v17 }
 0x768   : > { %3373 = vst [vmem:[%s4827_s13 + $0x1b0] sm:$0xff] %v3341_v33  ;;  %v3338_v12 = vsel %vm250_vm7, %v3306_v21, %v6480_v16  ;;  %v3278_v40 = vmul.f32 %v4444_v51, %v3246_v53  ;;  %v3216_v42 = vmul.f32 %v4448_v11, %v3151_v62 }
 0x769   : > { %3370 = vst [vmem:[%s4827_s13 + $0x180] sm:$0xff] %v3338_v12  ;;  %v3307_v45 = vmul.f32 %v6481_v48, %v3275_v7  ;;  %v3247_v47 = vsub.f32 2.0, %v3215_v27 }
 0x76a   : > { %v4450_v39 = vpop.eup %4449  ;;  %v3310_v3 = vmul.f32 %v6482_v57, %v3278_v40  ;;  %v3248_v15 = vsub.f32 2.0, %v3216_v42 }
 0x76b   : > { %v3339_v17 = vsel %vm250_vm7, %v3307_v45, %v6483_v54  ;;  %v3279_v49 = vmul.f32 %v4446_v22, %v3247_v47  ;;  %v3217_v37 = vmul.f32 %v4450_v39, %v3153_v23  ;;  %v6490_v23 = vld [vmem:[#allocation20_spill] sm:$0xff] }
 0x76c   : > { %3371 = vst [vmem:[%s4827_s13 + $0x190] sm:$0xff] %v3339_v17  ;;  %v3342_v41 = vsel %vm250_vm7, %v3310_v3, %v6484_v5  ;;  %v3280_v62 = vmul.f32 %v4448_v11, %v3248_v15 }
 0x76d   : > { %3374 = vst [vmem:[%s4827_s13 + $0x1c0] sm:$0xff] %v3342_v41  ;;  %v3311_v38 = vmul.f32 %v6485_v29, %v3279_v49  ;;  %v3249_v10 = vsub.f32 2.0, %v3217_v37 }
 0x76e   : > { %v3312_v46 = vmul.f32 %v6486_v6, %v3280_v62 }
 0x76f   : > { %v3343_v26 = vsel %vm250_vm7, %v3311_v38, %v6487_v19  ;;  %v3281_v35 = vmul.f32 %v4450_v39, %v3249_v10 }
 0x770   : > { %3375 = vst [vmem:[%s4827_s13 + $0x1d0] sm:$0xff] %v3343_v26  ;;  %v3344_v60 = vsel %vm250_vm7, %v3312_v46, %v6488_v50 }
 0x771   : > { %3376 = vst [vmem:[%s4827_s13 + $0x1e0] sm:$0xff] %v3344_v60  ;;  %v3313_v36 = vmul.f32 %v6489_v13, %v3281_v35 }
 0x773   : > { %v3345_v59 = vsel %vm250_vm7, %v3313_v36, %v6490_v23 }
 0x774   : > { %3377 = vst [vmem:[%s4827_s13 + $0x1f0] sm:$0xff] %v3345_v59 }
 0x775 PF: > { %s13_s12 = sadd.s32 1, %s4458_s12  }
 0x776   : > { %p10_p4 = scmp.ge.s32.totalorder %s13_s12, 4  }
 0x778   :  { %12 = sbr.rel (!%p10_p4) target bundleno = 1 (0x1), region = 67 }

</bundles_post_ra>
